<compile_context>
chip_gen: v6e
topology: v6e:2x2x1
jax: 0.10.0
libtpu: 0.0.40
codegen_flags: <defaults>
</compile_context>

<pallas_src>
import functools

import jax
import jax.numpy as jnp
from jax import lax
from jax.experimental import pallas as pl
from jax.experimental.pallas import tpu as pltpu


def _layernorm(x, gamma, beta, eps=1e-5):
    mean = jnp.mean(x, axis=-1, keepdims=True)
    var = jnp.mean(jnp.square(x - mean), axis=-1, keepdims=True)
    return (x - mean) * lax.rsqrt(var + eps) * gamma + beta


def _transformer_block_kernel(qp_ref, kp_ref, vp_ref, qres_ref, mask_ref,
                              wo_ref, bo_ref,
                              g1_ref, be1_ref, g2_ref, be2_ref,
                              w1_ref, b1_ref, w2_ref, b2_ref,
                              out_ref,
                              m_sc, l_sc, acc_sc,
                              *, fused_fc_out):
    f32 = jnp.float32
    heads, tq, hd = qp_ref.shape[1], qp_ref.shape[2], qp_ref.shape[3]
    E = qres_ref.shape[2]
    cdt = qp_ref.dtype                      # MXU compute dtype (bf16 by default)
    kv = pl.program_id(2)

    # ---- init the online-softmax state at the first KV chunk of this (n, qi) tile ----
    @pl.when(kv == 0)
    def _init():
        # finite "-inf" avoids any inf-arithmetic corner cases on the EUP exp path
        m_sc[...] = jnp.full(m_sc.shape, -1e30, f32)
        l_sc[...] = jnp.zeros(l_sc.shape, f32)
        acc_sc[...] = jnp.zeros(acc_sc.shape, f32)

    # ---- online-softmax attention over this KV chunk (heads batched on the MXU) ----
    bias = jnp.where(mask_ref[0] == 0.0, f32(-1e20), f32(0.0))          # (tq, tkv) f32
    s = jnp.einsum('hqd,hkd->hqk', qp_ref[0], kp_ref[0],
                   preferred_element_type=f32)                          # (heads, tq, tkv)
    s = s + bias[None, :, :]                 # q already carries the 1/sqrt(E) scale

    m_prev = m_sc[...]
    m_new = jnp.maximum(m_prev, jnp.max(s, axis=-1, keepdims=True))
    alpha = jnp.exp(m_prev - m_new)
    p = jnp.exp(s - m_new)
    l_sc[...] = alpha * l_sc[...] + jnp.sum(p, axis=-1, keepdims=True)
    acc_sc[...] = alpha * acc_sc[...] + jnp.einsum(
        'hqk,hkd->hqd', p.astype(cdt), vp_ref[0], preferred_element_type=f32)
    m_sc[...] = m_new

    # ---- epilogue: fc_out + residual/LN1 + FFN + residual/LN2 on the last KV chunk ----
    @pl.when(kv == pl.num_programs(2) - 1)
    def _finalize():
        # softmax denominator: divide -> EUP reciprocal (approx, ~1e-3 deviation)
        ctx = acc_sc[...] * pl.reciprocal(l_sc[...], approx=True)       # (heads, tq, hd)

        if fused_fc_out:
            # Full-depth K=E output projection: relayout head-major ctx to token-major
            # (tq, E) using only a last-two-dim transpose, a leading-dim merge reshape
            # and a 2-D transpose (all Mosaic-supported relayouts), then one MXU matmul.
            ctx2 = jnp.swapaxes(ctx, 1, 2).reshape(heads * hd, tq).T    # (tq, E) f32
            attn_out = jnp.dot(ctx2.astype(cdt), wo_ref[...],
                               preferred_element_type=f32) + bo_ref[...]
        else:
            # Conservative fallback: per-head hd-deep K-split (no relayout needed).
            fc = jnp.zeros((tq, E), f32)
            for h in range(heads):                                      # static, small
                fc = fc + jnp.dot(ctx[h].astype(cdt),
                                  wo_ref[h * hd:(h + 1) * hd, :],
                                  preferred_element_type=f32)
            attn_out = fc + bo_ref[...]

        # Residual + LayerNorm 1 (f32 element-wise math).
        x = _layernorm(attn_out + qres_ref[0].astype(f32), g1_ref[...], be1_ref[...])

        # Feed-forward (bf16 MXU operands, f32 accumulation) + ReLU.
        h1 = jnp.dot(x.astype(cdt), w1_ref[...], preferred_element_type=f32) + b1_ref[...]
        h1 = jnp.maximum(h1, 0.0)
        ff = jnp.dot(h1.astype(cdt), w2_ref[...], preferred_element_type=f32) + b2_ref[...]

        # Residual + LayerNorm 2.
        y = _layernorm(ff + x, g2_ref[...], be2_ref[...])
        out_ref[0] = y.astype(out_ref.dtype)


def transformer_block(value, key, query, mask, params, heads, *,
                      q_tile=None, kv_tile=512, compute_dtype=jnp.bfloat16):
    N, L, E = query.shape
    assert E % heads == 0, "embed_size must be divisible by heads"
    hd = E // heads
    H = params["w1_t"].shape[1]
    cdt = compute_dtype
    f32 = jnp.float32

    if mask is None:
        mask = jnp.ones((1, L, L), f32)

    # Generation-aware VMEM capacity (128 MiB on v5e/v6e, 64 MiB per TC on v7x).
    try:
        vmem_cap = int(getattr(pltpu.get_tpu_info(), "vmem_capacity_bytes", 64 << 20))
    except Exception:
        vmem_cap = 64 << 20

    # v6e/v7x MXU is 256-wide: prefer tq=256 where the 128 MiB parts have headroom.
    if q_tile is None:
        q_tile = 256 if (vmem_cap >= (100 << 20) and L % 256 == 0) else 128
    tq = min(q_tile, L)
    tkv = min(kv_tile, L)
    assert L % tq == 0 and L % tkv == 0, (
        "TODO(synk): pad/ragged handling for L not a multiple of the tiles")
    num_q, num_kv = L // tq, L // tkv

    # ---- Hoisted projections: computed once per batch element, NOT once per q tile ----
    # Shared (hd, hd) per-head matmuls done in plain XLA, stored head-major bf16 so the
    # kernel's attention einsums are batched MXU passes with no per-head slicing.
    def project_heads(x, w_t, scale=None):
        xh = x.reshape(N, L, heads, hd).astype(cdt)
        y = jnp.einsum("nlhd,de->nlhe", xh, w_t.astype(cdt),
                       preferred_element_type=f32)
        if scale is not None:
            y = y * scale
        return y.transpose(0, 2, 1, 3).astype(cdt)          # (N, heads, L, hd)

    # 1/sqrt(embed_size) softmax scale folded into the Q projection.
    qp_hm = project_heads(query, params["wq_t"], scale=1.0 / jnp.sqrt(f32(E)))
    kp_hm = project_heads(key, params["wk_t"])
    vp_hm = project_heads(value, params["wv_t"])

    wo = params["wo_t"].astype(cdt)                          # (E_in, E_out)
    w1 = params["w1_t"].astype(cdt)
    w2 = params["w2_t"].astype(cdt)

    # Batch-shared mask ((1, L, L)) is DMA'd once per (qi, kv); per-batch masks index n.
    if mask.shape[0] == 1:
        mask_map = lambda n, qi, kv: (0, qi, kv)
    else:
        mask_map = lambda n, qi, kv: (n, qi, kv)

    out_shape = jax.ShapeDtypeStruct((N, L, E), query.dtype)
    # v7x has 2 TensorCores: the two leading "parallel" axes expose N * num_q
    # independent steps for megacore sharding; kv is the sequential accumulation axis.
    grid = (N, num_q, num_kv)

    args = (qp_hm, kp_hm, vp_hm, query, mask,
            wo, params["bo"],
            params["ln1_g"], params["ln1_b"], params["ln2_g"], params["ln2_b"],
            w1, params["b1"], w2, params["b2"])

    def build(single_buffer_weights, fused_fc_out):
        def const(shape):
            idx = lambda n, qi, kv, _s=len(shape): (0,) * _s
            if single_buffer_weights:
                # grid-invariant weights: one VMEM copy instead of two
                return pl.BlockSpec(shape, idx, pipeline_mode=pl.Buffered(1))
            return pl.BlockSpec(shape, idx)

        in_specs = [
            pl.BlockSpec((1, heads, tq, hd), lambda n, qi, kv: (n, 0, qi, 0)),   # qp
            pl.BlockSpec((1, heads, tkv, hd), lambda n, qi, kv: (n, 0, kv, 0)),  # kp
            pl.BlockSpec((1, heads, tkv, hd), lambda n, qi, kv: (n, 0, kv, 0)),  # vp
            pl.BlockSpec((1, tq, E), lambda n, qi, kv: (n, qi, 0)),              # residual q
            pl.BlockSpec((1, tq, tkv), mask_map),                                # mask
            const((E, E)), const((1, E)),                                        # wo, bo
            const((1, E)), const((1, E)), const((1, E)), const((1, E)),          # LN g/b
            const((E, H)), const((1, H)), const((H, E)), const((1, E)),          # FFN
        ]
        out_spec = pl.BlockSpec((1, tq, E), lambda n, qi, kv: (n, qi, 0))

        # Explicit VMEM budget from the working set, clamped below physical capacity.
        cb = jnp.dtype(cdt).itemsize
        wbuf = 1 if single_buffer_weights else 2
        blk = (2 * (heads * tq * hd + 2 * heads * tkv * hd) * cb       # qp/kp/vp blocks
               + 2 * (tq * E + tq * tkv) * 4                            # residual + mask
               + 2 * tq * E * 4                                         # output block
               + wbuf * ((E * E + E * H + H * E) * cb + (7 * E + H) * 4))
        scratch_b = (2 * heads * tq + heads * tq * hd) * 4              # m, l, acc
        inter = (3 * heads * tq * tkv + 2 * heads * tq * hd
                 + 2 * tq * H + 8 * tq * E) * 4
        need = blk + scratch_b + inter + (4 << 20)
        vmem_limit = int(min(max(need, 32 << 20), max(int(0.85 * vmem_cap), 32 << 20)))

        kernel = functools.partial(_transformer_block_kernel, fused_fc_out=fused_fc_out)
        return pl.pallas_call(
            kernel,
            out_shape=out_shape,
            grid_spec=pltpu.PrefetchScalarGridSpec(
                num_scalar_prefetch=0,
                grid=grid,
                in_specs=in_specs,
                out_specs=out_spec,
                scratch_shapes=[
                    pltpu.VMEM((heads, tq, 1), jnp.float32),   # running max m
                    pltpu.VMEM((heads, tq, 1), jnp.float32),   # running sum l
                    pltpu.VMEM((heads, tq, hd), jnp.float32),  # acc
                ]),
            compiler_params=pltpu.CompilerParams(
                dimension_semantics=("parallel", "parallel", "arbitrary"),
                vmem_limit_bytes=vmem_limit),
        )

    # Preferred config first; fall back to progressively more conservative builds if the
    # installed jax/Mosaic rejects single-buffered weights or the fused fc_out relayout.
    attempts = ((True, True), (False, True), (True, False), (False, False))
    last_err = None
    for sb, fused in attempts:
        try:
            return build(sb, fused)(*args)
        except Exception as err:            # lowering / compile error -> next config
            last_err = err
    raise last_err


def init_params(key, embed_size, heads, forward_expansion):
    hd = embed_size // heads
    H = forward_expansion * embed_size
    ks = jax.random.split(key, 12)

    # PyTorch Linear weights are (out_features, in_features); y = x @ W.T + b.
    wv = jax.random.normal(ks[0], (hd, hd), jnp.float32) * 0.1
    wk = jax.random.normal(ks[1], (hd, hd), jnp.float32) * 0.1
    wq = jax.random.normal(ks[2], (hd, hd), jnp.float32) * 0.1
    wo = jax.random.normal(ks[3], (embed_size, embed_size), jnp.float32) * 0.1
    bo = jax.random.normal(ks[4], (embed_size,), jnp.float32) * 0.1
    w1 = jax.random.normal(ks[5], (H, embed_size), jnp.float32) * 0.1
    b1 = jax.random.normal(ks[6], (H,), jnp.float32) * 0.1
    w2 = jax.random.normal(ks[7], (embed_size, H), jnp.float32) * 0.1
    b2 = jax.random.normal(ks[8], (embed_size,), jnp.float32) * 0.1
    g1 = 1.0 + 0.1 * jax.random.normal(ks[9], (embed_size,), jnp.float32)
    b1n = 0.1 * jax.random.normal(ks[10], (embed_size,), jnp.float32)
    g2 = 1.0 + 0.1 * jax.random.normal(ks[11], (embed_size,), jnp.float32)

    return {
        "wv_t": wv.T, "wk_t": wk.T, "wq_t": wq.T,          # x @ W.T forms
        "wo_t": wo.T, "bo": bo.reshape(1, embed_size),
        "ln1_g": g1.reshape(1, embed_size), "ln1_b": b1n.reshape(1, embed_size),
        "ln2_g": g2.reshape(1, embed_size),
        "ln2_b": jnp.zeros((1, embed_size), jnp.float32),
        "w1_t": w1.T, "b1": b1.reshape(1, H),
        "w2_t": w2.T, "b2": b2.reshape(1, embed_size),
    }


def reference(value, key_, query, mask, p, heads, compute_dtype=jnp.bfloat16):
    # Pure-JAX mirror of the PyTorch forward (dropout = identity) with the same
    # bf16-operand / f32-accumulate precision policy as the kernel.
    N, L, E = query.shape
    hd = E // heads
    cdt = compute_dtype
    f32 = jnp.float32

    def proj(x, w_t):
        xh = x.reshape(N, L, heads, hd).astype(cdt)
        return jnp.einsum("nlhd,de->nlhe", xh, w_t.astype(cdt),
                          preferred_element_type=f32)

    vh = proj(value, p["wv_t"])
    kh = proj(key_, p["wk_t"])
    qh = proj(query, p["wq_t"]) * (1.0 / jnp.sqrt(f32(E)))   # scale folded, as in kernel

    energy = jnp.einsum("nqhd,nkhd->nhqk", qh.astype(cdt), kh.astype(cdt),
                        preferred_element_type=f32)
    bias = jnp.where(mask == 0.0, f32(-1e20), f32(0.0))
    attn = jax.nn.softmax(energy + bias[:, None, :, :], axis=3)
    ctx = jnp.einsum("nhqk,nkhd->nqhd", attn.astype(cdt), vh.astype(cdt),
                     preferred_element_type=f32).reshape(N, L, E)
    out = jnp.dot(ctx.astype(cdt), p["wo_t"].astype(cdt),
                  preferred_element_type=f32) + p["bo"]
    x = _layernorm(out + query.astype(f32), p["ln1_g"], p["ln1_b"])
    h1 = jnp.maximum(jnp.dot(x.astype(cdt), p["w1_t"].astype(cdt),
                             preferred_element_type=f32) + p["b1"], 0.0)
    ff = jnp.dot(h1.astype(cdt), p["w2_t"].astype(cdt),
                 preferred_element_type=f32) + p["b2"]
    return _layernorm(ff + x, p["ln2_g"], p["ln2_b"])


if __name__ == "__main__":
    N, L = 2, 8
    embed_size, heads, forward_expansion = 32, 4, 2

    root = jax.random.PRNGKey(0)
    k_in, k_params = jax.random.split(root)
    kv, kk, kq = jax.random.split(k_in, 3)

    value = jax.random.normal(kv, (N, L, embed_size), jnp.float32)
    key_ = jax.random.normal(kk, (N, L, embed_size), jnp.float32)
    query = jax.random.normal(kq, (N, L, embed_size), jnp.float32)
    # causal mask shared across batch: 1.0 = attend, 0.0 = masked; passed as (1, L, L)
    # so the kernel DMAs it once per (q, kv) tile, not per batch element.
    mask = jnp.tril(jnp.ones((L, L), jnp.float32))[None]

    params = init_params(k_params, embed_size, heads, forward_expansion)

    out = transformer_block(value, key_, query, mask, params, heads)
    out = jax.block_until_ready(out)

    ref = reference(value, key_, query, mask, params, heads)
    assert out.shape == (N, L, embed_size)
    err = jnp.max(jnp.abs(out - ref))
    assert jnp.allclose(out, ref, rtol=2e-2, atol=2e-2), f"max abs diff {err}"

    print("KERNEL_OK")
</pallas_src>

<mosaic_0001>
module attributes {stable_mosaic.version = 11 : i64} {
  func.func @_transformer_block_kernel(%arg0: i32, %arg1: i32, %arg2: i32, %arg3: memref<1x4x8x8xbf16, #tpu.memory_space<vmem>>, %arg4: memref<1x4x8x8xbf16, #tpu.memory_space<vmem>>, %arg5: memref<1x4x8x8xbf16, #tpu.memory_space<vmem>>, %arg6: memref<1x8x32xf32, #tpu.memory_space<vmem>>, %arg7: memref<1x8x8xf32, #tpu.memory_space<vmem>>, %arg8: memref<32x32xbf16, #tpu.memory_space<vmem>>, %arg9: memref<1x32xf32, #tpu.memory_space<vmem>>, %arg10: memref<1x32xf32, #tpu.memory_space<vmem>>, %arg11: memref<1x32xf32, #tpu.memory_space<vmem>>, %arg12: memref<1x32xf32, #tpu.memory_space<vmem>>, %arg13: memref<1x32xf32, #tpu.memory_space<vmem>>, %arg14: memref<32x64xbf16, #tpu.memory_space<vmem>>, %arg15: memref<1x64xf32, #tpu.memory_space<vmem>>, %arg16: memref<64x32xbf16, #tpu.memory_space<vmem>>, %arg17: memref<1x32xf32, #tpu.memory_space<vmem>>, %arg18: memref<1x8x32xf32, #tpu.memory_space<vmem>>, %arg19: memref<4x8x1xf32, #tpu.memory_space<vmem>>, %arg20: memref<4x8x1xf32, #tpu.memory_space<vmem>>, %arg21: memref<4x8x8xf32, #tpu.memory_space<vmem>>) attributes {dimension_semantics = [#tpu.dimension_semantics<parallel>, #tpu.dimension_semantics<parallel>, #tpu.dimension_semantics<arbitrary>], iteration_bounds = array<i64: 2, 1, 1>, scalar_prefetch = 0 : i64, scratch_operands = 3 : i64, tpu.core_type = #tpu.core_type<tc>, window_params = [{transform_indices = @transform_0, window_bounds = array<i64: 1, 4, 8, 8>}, {transform_indices = @transform_1, window_bounds = array<i64: 1, 4, 8, 8>}, {transform_indices = @transform_2, window_bounds = array<i64: 1, 4, 8, 8>}, {transform_indices = @transform_3, window_bounds = array<i64: 1, 8, 32>}, {transform_indices = @transform_4, window_bounds = array<i64: 1, 8, 8>}, {pipeline_mode = #tpu.pipeline_mode<synchronous>, transform_indices = @transform_5, window_bounds = array<i64: 32, 32>}, {pipeline_mode = #tpu.pipeline_mode<synchronous>, transform_indices = @transform_6, window_bounds = array<i64: 1, 32>}, {pipeline_mode = #tpu.pipeline_mode<synchronous>, transform_indices = @transform_7, window_bounds = array<i64: 1, 32>}, {pipeline_mode = #tpu.pipeline_mode<synchronous>, transform_indices = @transform_8, window_bounds = array<i64: 1, 32>}, {pipeline_mode = #tpu.pipeline_mode<synchronous>, transform_indices = @transform_9, window_bounds = array<i64: 1, 32>}, {pipeline_mode = #tpu.pipeline_mode<synchronous>, transform_indices = @transform_10, window_bounds = array<i64: 1, 32>}, {pipeline_mode = #tpu.pipeline_mode<synchronous>, transform_indices = @transform_11, window_bounds = array<i64: 32, 64>}, {pipeline_mode = #tpu.pipeline_mode<synchronous>, transform_indices = @transform_12, window_bounds = array<i64: 1, 64>}, {pipeline_mode = #tpu.pipeline_mode<synchronous>, transform_indices = @transform_13, window_bounds = array<i64: 64, 32>}, {pipeline_mode = #tpu.pipeline_mode<synchronous>, transform_indices = @transform_14, window_bounds = array<i64: 1, 32>}, {transform_indices = @transform_15, window_bounds = array<i64: 1, 8, 32>}]} {
    %c0_i32 = arith.constant 0 : i32
    %0 = arith.cmpi eq, %arg2, %c0_i32 : i32
    %1 = arith.extui %0 : i1 to i32
    %c0_i32_0 = arith.constant 0 : i32
    %2 = arith.cmpi ne, %1, %c0_i32_0 : i32
    scf.if %2 {
      %cst_41 = arith.constant -1.000000e+30 : f32
      %46 = vector.broadcast %cst_41 : f32 to vector<4x8x1xf32>
      %c0_42 = arith.constant 0 : index
      %c0_43 = arith.constant 0 : index
      %c0_44 = arith.constant 0 : index
      %47 = vector.load %arg19[%c0_42, %c0_43, %c0_44] : memref<4x8x1xf32, #tpu.memory_space<vmem>>, vector<4x8x1xf32>
      tpu.vector_store %arg19[%c0_42, %c0_43, %c0_44], %46 {strides = array<i32>} : memref<4x8x1xf32, #tpu.memory_space<vmem>>, vector<4x8x1xf32>,
      %cst_45 = arith.constant 0.000000e+00 : f32
      %48 = vector.broadcast %cst_45 : f32 to vector<4x8x1xf32>
      %c0_46 = arith.constant 0 : index
      %c0_47 = arith.constant 0 : index
      %c0_48 = arith.constant 0 : index
      %49 = vector.load %arg20[%c0_46, %c0_47, %c0_48] : memref<4x8x1xf32, #tpu.memory_space<vmem>>, vector<4x8x1xf32>
      tpu.vector_store %arg20[%c0_46, %c0_47, %c0_48], %48 {strides = array<i32>} : memref<4x8x1xf32, #tpu.memory_space<vmem>>, vector<4x8x1xf32>,
      %cst_49 = arith.constant 0.000000e+00 : f32
      %50 = vector.broadcast %cst_49 : f32 to vector<4x8x8xf32>
      %c0_50 = arith.constant 0 : index
      %c0_51 = arith.constant 0 : index
      %c0_52 = arith.constant 0 : index
      %51 = vector.load %arg21[%c0_50, %c0_51, %c0_52] : memref<4x8x8xf32, #tpu.memory_space<vmem>>, vector<4x8x8xf32>
      tpu.vector_store %arg21[%c0_50, %c0_51, %c0_52], %50 {strides = array<i32>} : memref<4x8x8xf32, #tpu.memory_space<vmem>>, vector<4x8x8xf32>,
    } else {
    }
    %c0 = arith.constant 0 : index
    %c0_1 = arith.constant 0 : index
    %c0_2 = arith.constant 0 : index
    %3 = vector.load %arg7[%c0, %c0_1, %c0_2] : memref<1x8x8xf32, #tpu.memory_space<vmem>>, vector<1x8x8xf32>
    %4 = vector.shape_cast %3 : vector<1x8x8xf32> to vector<8x8xf32>
    %cst = arith.constant 0.000000e+00 : f32
    %5 = vector.broadcast %cst : f32 to vector<8x8xf32>
    %6 = arith.cmpf oeq, %4, %5 : vector<8x8xf32>
    %cst_3 = arith.constant -1.000000e+20 : f32
    %cst_4 = arith.constant 0.000000e+00 : f32
    %7 = vector.broadcast %cst_3 : f32 to vector<8x8xf32>
    %8 = vector.broadcast %cst_4 : f32 to vector<8x8xf32>
    %9 = arith.select %6, %7, %8 : vector<8x8xi1>, vector<8x8xf32>
    %c0_5 = arith.constant 0 : index
    %c0_6 = arith.constant 0 : index
    %c0_7 = arith.constant 0 : index
    %c0_8 = arith.constant 0 : index
    %10 = vector.load %arg3[%c0_5, %c0_6, %c0_7, %c0_8] : memref<1x4x8x8xbf16, #tpu.memory_space<vmem>>, vector<1x4x8x8xbf16>
    %11 = vector.shape_cast %10 : vector<1x4x8x8xbf16> to vector<4x8x8xbf16>
    %c0_9 = arith.constant 0 : index
    %c0_10 = arith.constant 0 : index
    %c0_11 = arith.constant 0 : index
    %c0_12 = arith.constant 0 : index
    %12 = vector.load %arg4[%c0_9, %c0_10, %c0_11, %c0_12] : memref<1x4x8x8xbf16, #tpu.memory_space<vmem>>, vector<1x4x8x8xbf16>
    %13 = vector.shape_cast %12 : vector<1x4x8x8xbf16> to vector<4x8x8xbf16>
    "tpu.trace_start"() <{level = 10 : i32, message = "hqd,hkd->hqk"}> : () -> ()
    %cst_13 = arith.constant dense<0.000000e+00> : vector<4x8x8xf32>
    %14 = tpu.matmul %11, %13, %cst_13 {dimension_numbers = #tpu.dot_dimension_numbers<[2], [2], [1], [1], [0, 0, 0, 1, 1, 1], [0], [0]>} : vector<4x8x8xbf16>, vector<4x8x8xbf16>, vector<4x8x8xf32> -> vector<4x8x8xf32>
    "tpu.trace_stop"() : () -> ()
    %15 = vector.shape_cast %9 : vector<8x8xf32> to vector<1x8x8xf32>
    %16 = vector.broadcast %15 : vector<1x8x8xf32> to vector<4x8x8xf32>
    %17 = arith.addf %14, %16 : vector<4x8x8xf32>
    %c0_14 = arith.constant 0 : index
    %c0_15 = arith.constant 0 : index
    %c0_16 = arith.constant 0 : index
    %18 = vector.load %arg19[%c0_14, %c0_15, %c0_16] : memref<4x8x1xf32, #tpu.memory_space<vmem>>, vector<4x8x1xf32>
    %cst_17 = arith.constant dense<0xFF800000> : vector<4x8xf32>
    %19 = vector.multi_reduction <maximumf>, %17, %cst_17 [2] : vector<4x8x8xf32> to vector<4x8xf32>
    %20 = vector.shape_cast %19 : vector<4x8xf32> to vector<4x8x1xf32>
    %21 = arith.maximumf %18, %20 : vector<4x8x1xf32>
    %22 = arith.subf %18, %21 : vector<4x8x1xf32>
    %23 = math.exp %22 : vector<4x8x1xf32>
    %24 = vector.broadcast %21 : vector<4x8x1xf32> to vector<4x8x8xf32>
    %25 = arith.subf %17, %24 : vector<4x8x8xf32>
    %26 = math.exp %25 : vector<4x8x8xf32>
    %c0_18 = arith.constant 0 : index
    %c0_19 = arith.constant 0 : index
    %c0_20 = arith.constant 0 : index
    %27 = vector.load %arg20[%c0_18, %c0_19, %c0_20] : memref<4x8x1xf32, #tpu.memory_space<vmem>>, vector<4x8x1xf32>
    %28 = arith.mulf %23, %27 : vector<4x8x1xf32>
    %cst_21 = arith.constant dense<0.000000e+00> : vector<4x8xf32>
    %29 = vector.multi_reduction <add>, %26, %cst_21 [2] : vector<4x8x8xf32> to vector<4x8xf32>
    %30 = vector.shape_cast %29 : vector<4x8xf32> to vector<4x8x1xf32>
    %31 = arith.addf %28, %30 : vector<4x8x1xf32>
    %c0_22 = arith.constant 0 : index
    %c0_23 = arith.constant 0 : index
    %c0_24 = arith.constant 0 : index
    %32 = vector.load %arg20[%c0_22, %c0_23, %c0_24] : memref<4x8x1xf32, #tpu.memory_space<vmem>>, vector<4x8x1xf32>
    tpu.vector_store %arg20[%c0_22, %c0_23, %c0_24], %31 {strides = array<i32>} : memref<4x8x1xf32, #tpu.memory_space<vmem>>, vector<4x8x1xf32>,
    %c0_25 = arith.constant 0 : index
    %c0_26 = arith.constant 0 : index
    %c0_27 = arith.constant 0 : index
    %33 = vector.load %arg21[%c0_25, %c0_26, %c0_27] : memref<4x8x8xf32, #tpu.memory_space<vmem>>, vector<4x8x8xf32>
    %34 = vector.broadcast %23 : vector<4x8x1xf32> to vector<4x8x8xf32>
    %35 = arith.mulf %34, %33 : vector<4x8x8xf32>
    %36 = arith.truncf %26 : vector<4x8x8xf32> to vector<4x8x8xbf16>
    %c0_28 = arith.constant 0 : index
    %c0_29 = arith.constant 0 : index
    %c0_30 = arith.constant 0 : index
    %c0_31 = arith.constant 0 : index
    %37 = vector.load %arg5[%c0_28, %c0_29, %c0_30, %c0_31] : memref<1x4x8x8xbf16, #tpu.memory_space<vmem>>, vector<1x4x8x8xbf16>
    %38 = vector.shape_cast %37 : vector<1x4x8x8xbf16> to vector<4x8x8xbf16>
    "tpu.trace_start"() <{level = 10 : i32, message = "hqk,hkd->hqd"}> : () -> ()
    %cst_32 = arith.constant dense<0.000000e+00> : vector<4x8x8xf32>
    %39 = tpu.matmul %36, %38, %cst_32 {dimension_numbers = #tpu.dot_dimension_numbers<[2], [1], [1], [2], [0, 0, 0, 1, 1, 2], [0], [0]>} : vector<4x8x8xbf16>, vector<4x8x8xbf16>, vector<4x8x8xf32> -> vector<4x8x8xf32>
    "tpu.trace_stop"() : () -> ()
    %40 = arith.addf %35, %39 : vector<4x8x8xf32>
    %c0_33 = arith.constant 0 : index
    %c0_34 = arith.constant 0 : index
    %c0_35 = arith.constant 0 : index
    %41 = vector.load %arg21[%c0_33, %c0_34, %c0_35] : memref<4x8x8xf32, #tpu.memory_space<vmem>>, vector<4x8x8xf32>
    tpu.vector_store %arg21[%c0_33, %c0_34, %c0_35], %40 {strides = array<i32>} : memref<4x8x8xf32, #tpu.memory_space<vmem>>, vector<4x8x8xf32>,
    %c0_36 = arith.constant 0 : index
    %c0_37 = arith.constant 0 : index
    %c0_38 = arith.constant 0 : index
    %42 = vector.load %arg19[%c0_36, %c0_37, %c0_38] : memref<4x8x1xf32, #tpu.memory_space<vmem>>, vector<4x8x1xf32>
    tpu.vector_store %arg19[%c0_36, %c0_37, %c0_38], %21 {strides = array<i32>} : memref<4x8x1xf32, #tpu.memory_space<vmem>>, vector<4x8x1xf32>,
    %c0_i32_39 = arith.constant 0 : i32
    %43 = arith.cmpi eq, %arg2, %c0_i32_39 : i32
    %44 = arith.extui %43 : i1 to i32
    %c0_i32_40 = arith.constant 0 : i32
    %45 = arith.cmpi ne, %44, %c0_i32_40 : i32
    scf.if %45 {
      %c0_41 = arith.constant 0 : index
      %c0_42 = arith.constant 0 : index
      %c0_43 = arith.constant 0 : index
      %46 = vector.load %arg21[%c0_41, %c0_42, %c0_43] : memref<4x8x8xf32, #tpu.memory_space<vmem>>, vector<4x8x8xf32>
      %c0_44 = arith.constant 0 : index
      %c0_45 = arith.constant 0 : index
      %c0_46 = arith.constant 0 : index
      %47 = vector.load %arg20[%c0_44, %c0_45, %c0_46] : memref<4x8x1xf32, #tpu.memory_space<vmem>>, vector<4x8x1xf32>
      %48 = tpu.reciprocal %47 {approx = true} : vector<4x8x1xf32> -> vector<4x8x1xf32>
      %49 = vector.broadcast %48 : vector<4x8x1xf32> to vector<4x8x8xf32>
      %50 = arith.mulf %46, %49 : vector<4x8x8xf32>
      %51 = tpu.transpose %50, [0, 2, 1] : vector<4x8x8xf32> -> vector<4x8x8xf32>
      %52 = vector.shape_cast %51 : vector<4x8x8xf32> to vector<32x8xf32>
      %53 = tpu.transpose %52, [1, 0] : vector<32x8xf32> -> vector<8x32xf32>
      %54 = arith.truncf %53 : vector<8x32xf32> to vector<8x32xbf16>
      %c0_47 = arith.constant 0 : index
      %c0_48 = arith.constant 0 : index
      %55 = vector.load %arg8[%c0_47, %c0_48] : memref<32x32xbf16, #tpu.memory_space<vmem>>, vector<32x32xbf16>
      %cst_49 = arith.constant dense<0.000000e+00> : vector<8x32xf32>
      %56 = tpu.matmul %54, %55, %cst_49 {dimension_numbers = #tpu.dot_dimension_numbers<[1], [0], [0], [1], [0, 0, 1, 1], [], []>} : vector<8x32xbf16>, vector<32x32xbf16>, vector<8x32xf32> -> vector<8x32xf32>
      %c0_50 = arith.constant 0 : index
      %c0_51 = arith.constant 0 : index
      %57 = vector.load %arg9[%c0_50, %c0_51] : memref<1x32xf32, #tpu.memory_space<vmem>>, vector<1x32xf32>
      %58 = vector.broadcast %57 : vector<1x32xf32> to vector<8x32xf32>
      %59 = arith.addf %56, %58 : vector<8x32xf32>
      %c0_52 = arith.constant 0 : index
      %c0_53 = arith.constant 0 : index
      %c0_54 = arith.constant 0 : index
      %60 = vector.load %arg6[%c0_52, %c0_53, %c0_54] : memref<1x8x32xf32, #tpu.memory_space<vmem>>, vector<1x8x32xf32>
      %61 = vector.shape_cast %60 : vector<1x8x32xf32> to vector<8x32xf32>
      %62 = arith.addf %59, %61 : vector<8x32xf32>
      %c0_55 = arith.constant 0 : index
      %c0_56 = arith.constant 0 : index
      %63 = vector.load %arg10[%c0_55, %c0_56] : memref<1x32xf32, #tpu.memory_space<vmem>>, vector<1x32xf32>
      %c0_57 = arith.constant 0 : index
      %c0_58 = arith.constant 0 : index
      %64 = vector.load %arg11[%c0_57, %c0_58] : memref<1x32xf32, #tpu.memory_space<vmem>>, vector<1x32xf32>
      %cst_59 = arith.constant dense<0.000000e+00> : vector<8xf32>
      %65 = vector.multi_reduction <add>, %62, %cst_59 [1] : vector<8x32xf32> to vector<8xf32>
      %66 = vector.shape_cast %65 : vector<8xf32> to vector<8x1xf32>
      %cst_60 = arith.constant 3.200000e+01 : f32
      %67 = vector.broadcast %cst_60 : f32 to vector<8x1xf32>
      %68 = arith.divf %66, %67 : vector<8x1xf32>
      %69 = vector.broadcast %68 : vector<8x1xf32> to vector<8x32xf32>
      %70 = arith.subf %62, %69 : vector<8x32xf32>
      %71 = arith.mulf %70, %70 : vector<8x32xf32>
      %cst_61 = arith.constant dense<0.000000e+00> : vector<8xf32>
      %72 = vector.multi_reduction <add>, %71, %cst_61 [1] : vector<8x32xf32> to vector<8xf32>
      %73 = vector.shape_cast %72 : vector<8xf32> to vector<8x1xf32>
      %cst_62 = arith.constant 3.200000e+01 : f32
      %74 = vector.broadcast %cst_62 : f32 to vector<8x1xf32>
      %75 = arith.divf %73, %74 : vector<8x1xf32>
      %76 = vector.broadcast %68 : vector<8x1xf32> to vector<8x32xf32>
      %77 = arith.subf %62, %76 : vector<8x32xf32>
      %cst_63 = arith.constant 9.99999974E-6 : f32
      %78 = vector.broadcast %cst_63 : f32 to vector<8x1xf32>
      %79 = arith.addf %75, %78 : vector<8x1xf32>
      %80 = math.rsqrt %79 : vector<8x1xf32>
      %81 = vector.broadcast %80 : vector<8x1xf32> to vector<8x32xf32>
      %82 = arith.mulf %77, %81 : vector<8x32xf32>
      %83 = vector.broadcast %63 : vector<1x32xf32> to vector<8x32xf32>
      %84 = arith.mulf %82, %83 : vector<8x32xf32>
      %85 = vector.broadcast %64 : vector<1x32xf32> to vector<8x32xf32>
      %86 = arith.addf %84, %85 : vector<8x32xf32>
      %87 = arith.truncf %86 : vector<8x32xf32> to vector<8x32xbf16>
      %c0_64 = arith.constant 0 : index
      %c0_65 = arith.constant 0 : index
      %88 = vector.load %arg14[%c0_64, %c0_65] : memref<32x64xbf16, #tpu.memory_space<vmem>>, vector<32x64xbf16>
      %cst_66 = arith.constant dense<0.000000e+00> : vector<8x64xf32>
      %89 = tpu.matmul %87, %88, %cst_66 {dimension_numbers = #tpu.dot_dimension_numbers<[1], [0], [0], [1], [0, 0, 1, 1], [], []>} : vector<8x32xbf16>, vector<32x64xbf16>, vector<8x64xf32> -> vector<8x64xf32>
      %c0_67 = arith.constant 0 : index
      %c0_68 = arith.constant 0 : index
      %90 = vector.load %arg15[%c0_67, %c0_68] : memref<1x64xf32, #tpu.memory_space<vmem>>, vector<1x64xf32>
      %91 = vector.broadcast %90 : vector<1x64xf32> to vector<8x64xf32>
      %92 = arith.addf %89, %91 : vector<8x64xf32>
      %cst_69 = arith.constant 0.000000e+00 : f32
      %93 = vector.broadcast %cst_69 : f32 to vector<8x64xf32>
      %94 = arith.maximumf %92, %93 : vector<8x64xf32>
      %95 = arith.truncf %94 : vector<8x64xf32> to vector<8x64xbf16>
      %c0_70 = arith.constant 0 : index
      %c0_71 = arith.constant 0 : index
      %96 = vector.load %arg16[%c0_70, %c0_71] : memref<64x32xbf16, #tpu.memory_space<vmem>>, vector<64x32xbf16>
      %cst_72 = arith.constant dense<0.000000e+00> : vector<8x32xf32>
      %97 = tpu.matmul %95, %96, %cst_72 {dimension_numbers = #tpu.dot_dimension_numbers<[1], [0], [0], [1], [0, 0, 1, 1], [], []>} : vector<8x64xbf16>, vector<64x32xbf16>, vector<8x32xf32> -> vector<8x32xf32>
      %c0_73 = arith.constant 0 : index
      %c0_74 = arith.constant 0 : index
      %98 = vector.load %arg17[%c0_73, %c0_74] : memref<1x32xf32, #tpu.memory_space<vmem>>, vector<1x32xf32>
      %99 = vector.broadcast %98 : vector<1x32xf32> to vector<8x32xf32>
      %100 = arith.addf %97, %99 : vector<8x32xf32>
      %101 = arith.addf %100, %86 : vector<8x32xf32>
      %c0_75 = arith.constant 0 : index
      %c0_76 = arith.constant 0 : index
      %102 = vector.load %arg12[%c0_75, %c0_76] : memref<1x32xf32, #tpu.memory_space<vmem>>, vector<1x32xf32>
      %c0_77 = arith.constant 0 : index
      %c0_78 = arith.constant 0 : index
      %103 = vector.load %arg13[%c0_77, %c0_78] : memref<1x32xf32, #tpu.memory_space<vmem>>, vector<1x32xf32>
      %cst_79 = arith.constant dense<0.000000e+00> : vector<8xf32>
      %104 = vector.multi_reduction <add>, %101, %cst_79 [1] : vector<8x32xf32> to vector<8xf32>
      %105 = vector.shape_cast %104 : vector<8xf32> to vector<8x1xf32>
      %cst_80 = arith.constant 3.200000e+01 : f32
      %106 = vector.broadcast %cst_80 : f32 to vector<8x1xf32>
      %107 = arith.divf %105, %106 : vector<8x1xf32>
      %108 = vector.broadcast %107 : vector<8x1xf32> to vector<8x32xf32>
      %109 = arith.subf %101, %108 : vector<8x32xf32>
      %110 = arith.mulf %109, %109 : vector<8x32xf32>
      %cst_81 = arith.constant dense<0.000000e+00> : vector<8xf32>
      %111 = vector.multi_reduction <add>, %110, %cst_81 [1] : vector<8x32xf32> to vector<8xf32>
      %112 = vector.shape_cast %111 : vector<8xf32> to vector<8x1xf32>
      %cst_82 = arith.constant 3.200000e+01 : f32
      %113 = vector.broadcast %cst_82 : f32 to vector<8x1xf32>
      %114 = arith.divf %112, %113 : vector<8x1xf32>
      %115 = vector.broadcast %107 : vector<8x1xf32> to vector<8x32xf32>
      %116 = arith.subf %101, %115 : vector<8x32xf32>
      %cst_83 = arith.constant 9.99999974E-6 : f32
      %117 = vector.broadcast %cst_83 : f32 to vector<8x1xf32>
      %118 = arith.addf %114, %117 : vector<8x1xf32>
      %119 = math.rsqrt %118 : vector<8x1xf32>
      %120 = vector.broadcast %119 : vector<8x1xf32> to vector<8x32xf32>
      %121 = arith.mulf %116, %120 : vector<8x32xf32>
      %122 = vector.broadcast %102 : vector<1x32xf32> to vector<8x32xf32>
      %123 = arith.mulf %121, %122 : vector<8x32xf32>
      %124 = vector.broadcast %103 : vector<1x32xf32> to vector<8x32xf32>
      %125 = arith.addf %123, %124 : vector<8x32xf32>
      %c0_84 = arith.constant 0 : index
      %c0_85 = arith.constant 0 : index
      %c0_86 = arith.constant 0 : index
      %126 = vector.load %arg18[%c0_84, %c0_85, %c0_86] : memref<1x8x32xf32, #tpu.memory_space<vmem>>, vector<1x8x32xf32>
      %127 = vector.shape_cast %126 : vector<1x8x32xf32> to vector<8x32xf32>
      %128 = vector.shape_cast %125 : vector<8x32xf32> to vector<1x8x32xf32>
      tpu.vector_store %arg18[%c0_84, %c0_85, %c0_86], %128 {strides = array<i32>} : memref<1x8x32xf32, #tpu.memory_space<vmem>>, vector<1x8x32xf32>,
    } else {
    }
    return
  }
  func.func @transform_0(%arg0: i32, %arg1: i32, %arg2: i32) -> (i32, i32, i32, i32) {
    %c0_i32 = arith.constant 0 : i32
    %c0_i32_0 = arith.constant 0 : i32
    %c0_i32_1 = arith.constant 0 : i32
    return %arg0, %c0_i32, %arg1, %c0_i32_0 : i32, i32, i32, i32
  }
  func.func @transform_1(%arg0: i32, %arg1: i32, %arg2: i32) -> (i32, i32, i32, i32) {
    %c0_i32 = arith.constant 0 : i32
    %c0_i32_0 = arith.constant 0 : i32
    %c0_i32_1 = arith.constant 0 : i32
    return %arg0, %c0_i32, %arg2, %c0_i32_0 : i32, i32, i32, i32
  }
  func.func @transform_2(%arg0: i32, %arg1: i32, %arg2: i32) -> (i32, i32, i32, i32) {
    %c0_i32 = arith.constant 0 : i32
    %c0_i32_0 = arith.constant 0 : i32
    %c0_i32_1 = arith.constant 0 : i32
    return %arg0, %c0_i32, %arg2, %c0_i32_0 : i32, i32, i32, i32
  }
  func.func @transform_3(%arg0: i32, %arg1: i32, %arg2: i32) -> (i32, i32, i32) {
    %c0_i32 = arith.constant 0 : i32
    %c0_i32_0 = arith.constant 0 : i32
    return %arg0, %arg1, %c0_i32 : i32, i32, i32
  }
  func.func @transform_4(%arg0: i32, %arg1: i32, %arg2: i32) -> (i32, i32, i32) {
    %c0_i32 = arith.constant 0 : i32
    %c0_i32_0 = arith.constant 0 : i32
    return %c0_i32, %arg1, %arg2 : i32, i32, i32
  }
  func.func @transform_5(%arg0: i32, %arg1: i32, %arg2: i32) -> (i32, i32) {
    %c0_i32 = arith.constant 0 : i32
    %c0_i32_0 = arith.constant 0 : i32
    %c0_i32_1 = arith.constant 0 : i32
    return %c0_i32, %c0_i32_0 : i32, i32
  }
  func.func @transform_6(%arg0: i32, %arg1: i32, %arg2: i32) -> (i32, i32) {
    %c0_i32 = arith.constant 0 : i32
    %c0_i32_0 = arith.constant 0 : i32
    %c0_i32_1 = arith.constant 0 : i32
    return %c0_i32, %c0_i32_0 : i32, i32
  }
  func.func @transform_7(%arg0: i32, %arg1: i32, %arg2: i32) -> (i32, i32) {
    %c0_i32 = arith.constant 0 : i32
    %c0_i32_0 = arith.constant 0 : i32
    %c0_i32_1 = arith.constant 0 : i32
    return %c0_i32, %c0_i32_0 : i32, i32
  }
  func.func @transform_8(%arg0: i32, %arg1: i32, %arg2: i32) -> (i32, i32) {
    %c0_i32 = arith.constant 0 : i32
    %c0_i32_0 = arith.constant 0 : i32
    %c0_i32_1 = arith.constant 0 : i32
    return %c0_i32, %c0_i32_0 : i32, i32
  }
  func.func @transform_9(%arg0: i32, %arg1: i32, %arg2: i32) -> (i32, i32) {
    %c0_i32 = arith.constant 0 : i32
    %c0_i32_0 = arith.constant 0 : i32
    %c0_i32_1 = arith.constant 0 : i32
    return %c0_i32, %c0_i32_0 : i32, i32
  }
  func.func @transform_10(%arg0: i32, %arg1: i32, %arg2: i32) -> (i32, i32) {
    %c0_i32 = arith.constant 0 : i32
    %c0_i32_0 = arith.constant 0 : i32
    %c0_i32_1 = arith.constant 0 : i32
    return %c0_i32, %c0_i32_0 : i32, i32
  }
  func.func @transform_11(%arg0: i32, %arg1: i32, %arg2: i32) -> (i32, i32) {
    %c0_i32 = arith.constant 0 : i32
    %c0_i32_0 = arith.constant 0 : i32
    %c0_i32_1 = arith.constant 0 : i32
    return %c0_i32, %c0_i32_0 : i32, i32
  }
  func.func @transform_12(%arg0: i32, %arg1: i32, %arg2: i32) -> (i32, i32) {
    %c0_i32 = arith.constant 0 : i32
    %c0_i32_0 = arith.constant 0 : i32
    %c0_i32_1 = arith.constant 0 : i32
    return %c0_i32, %c0_i32_0 : i32, i32
  }
  func.func @transform_13(%arg0: i32, %arg1: i32, %arg2: i32) -> (i32, i32) {
    %c0_i32 = arith.constant 0 : i32
    %c0_i32_0 = arith.constant 0 : i32
    %c0_i32_1 = arith.constant 0 : i32
    return %c0_i32, %c0_i32_0 : i32, i32
  }
  func.func @transform_14(%arg0: i32, %arg1: i32, %arg2: i32) -> (i32, i32) {
    %c0_i32 = arith.constant 0 : i32
    %c0_i32_0 = arith.constant 0 : i32
    %c0_i32_1 = arith.constant 0 : i32
    return %c0_i32, %c0_i32_0 : i32, i32
  }
  func.func @transform_15(%arg0: i32, %arg1: i32, %arg2: i32) -> (i32, i32, i32) {
    %c0_i32 = arith.constant 0 : i32
    %c0_i32_0 = arith.constant 0 : i32
    return %arg0, %arg1, %c0_i32 : i32, i32, i32
  }
}

module attributes {stable_mosaic.version = 11 : i64} {
  func.func @_transformer_block_kernel(%arg0: i32, %arg1: i32, %arg2: i32, %arg3: memref<1x4x8x8xbf16, #tpu.memory_space<vmem>>, %arg4: memref<1x4x8x8xbf16, #tpu.memory_space<vmem>>, %arg5: memref<1x4x8x8xbf16, #tpu.memory_space<vmem>>, %arg6: memref<1x8x32xf32, #tpu.memory_space<vmem>>, %arg7: memref<1x8x8xf32, #tpu.memory_space<vmem>>, %arg8: memref<32x32xbf16, #tpu.memory_space<vmem>>, %arg9: memref<1x32xf32, #tpu.memory_space<vmem>>, %arg10: memref<1x32xf32, #tpu.memory_space<vmem>>, %arg11: memref<1x32xf32, #tpu.memory_space<vmem>>, %arg12: memref<1x32xf32, #tpu.memory_space<vmem>>, %arg13: memref<1x32xf32, #tpu.memory_space<vmem>>, %arg14: memref<32x64xbf16, #tpu.memory_space<vmem>>, %arg15: memref<1x64xf32, #tpu.memory_space<vmem>>, %arg16: memref<64x32xbf16, #tpu.memory_space<vmem>>, %arg17: memref<1x32xf32, #tpu.memory_space<vmem>>, %arg18: memref<1x8x32xf32, #tpu.memory_space<vmem>>, %arg19: memref<4x8x1xf32, #tpu.memory_space<vmem>>, %arg20: memref<4x8x1xf32, #tpu.memory_space<vmem>>, %arg21: memref<4x8x8xf32, #tpu.memory_space<vmem>>) attributes {dimension_semantics = [#tpu.dimension_semantics<parallel>, #tpu.dimension_semantics<parallel>, #tpu.dimension_semantics<arbitrary>], iteration_bounds = array<i64: 2, 1, 1>, scalar_prefetch = 0 : i64, scratch_operands = 3 : i64, tpu.core_type = #tpu.core_type<tc>, window_params = [{transform_indices = @transform_0, window_bounds = array<i64: 1, 4, 8, 8>}, {transform_indices = @transform_1, window_bounds = array<i64: 1, 4, 8, 8>}, {transform_indices = @transform_2, window_bounds = array<i64: 1, 4, 8, 8>}, {transform_indices = @transform_3, window_bounds = array<i64: 1, 8, 32>}, {transform_indices = @transform_4, window_bounds = array<i64: 1, 8, 8>}, {pipeline_mode = #tpu.pipeline_mode<synchronous>, transform_indices = @transform_5, window_bounds = array<i64: 32, 32>}, {pipeline_mode = #tpu.pipeline_mode<synchronous>, transform_indices = @transform_6, window_bounds = array<i64: 1, 32>}, {pipeline_mode = #tpu.pipeline_mode<synchronous>, transform_indices = @transform_7, window_bounds = array<i64: 1, 32>}, {pipeline_mode = #tpu.pipeline_mode<synchronous>, transform_indices = @transform_8, window_bounds = array<i64: 1, 32>}, {pipeline_mode = #tpu.pipeline_mode<synchronous>, transform_indices = @transform_9, window_bounds = array<i64: 1, 32>}, {pipeline_mode = #tpu.pipeline_mode<synchronous>, transform_indices = @transform_10, window_bounds = array<i64: 1, 32>}, {pipeline_mode = #tpu.pipeline_mode<synchronous>, transform_indices = @transform_11, window_bounds = array<i64: 32, 64>}, {pipeline_mode = #tpu.pipeline_mode<synchronous>, transform_indices = @transform_12, window_bounds = array<i64: 1, 64>}, {pipeline_mode = #tpu.pipeline_mode<synchronous>, transform_indices = @transform_13, window_bounds = array<i64: 64, 32>}, {pipeline_mode = #tpu.pipeline_mode<synchronous>, transform_indices = @transform_14, window_bounds = array<i64: 1, 32>}, {transform_indices = @transform_15, window_bounds = array<i64: 1, 8, 32>}]} {
    %c0_i32 = arith.constant 0 : i32
    %0 = arith.cmpi eq, %arg2, %c0_i32 : i32
    %1 = arith.extui %0 : i1 to i32
    %c0_i32_0 = arith.constant 0 : i32
    %2 = arith.cmpi ne, %1, %c0_i32_0 : i32
    scf.if %2 {
      %cst_41 = arith.constant -1.000000e+30 : f32
      %46 = vector.broadcast %cst_41 : f32 to vector<4x8x1xf32>
      %c0_42 = arith.constant 0 : index
      %c0_43 = arith.constant 0 : index
      %c0_44 = arith.constant 0 : index
      %47 = vector.load %arg19[%c0_42, %c0_43, %c0_44] : memref<4x8x1xf32, #tpu.memory_space<vmem>>, vector<4x8x1xf32>
      tpu.vector_store %arg19[%c0_42, %c0_43, %c0_44], %46 {strides = array<i32>} : memref<4x8x1xf32, #tpu.memory_space<vmem>>, vector<4x8x1xf32>,
      %cst_45 = arith.constant 0.000000e+00 : f32
      %48 = vector.broadcast %cst_45 : f32 to vector<4x8x1xf32>
      %c0_46 = arith.constant 0 : index
      %c0_47 = arith.constant 0 : index
      %c0_48 = arith.constant 0 : index
      %49 = vector.load %arg20[%c0_46, %c0_47, %c0_48] : memref<4x8x1xf32, #tpu.memory_space<vmem>>, vector<4x8x1xf32>
      tpu.vector_store %arg20[%c0_46, %c0_47, %c0_48], %48 {strides = array<i32>} : memref<4x8x1xf32, #tpu.memory_space<vmem>>, vector<4x8x1xf32>,
      %cst_49 = arith.constant 0.000000e+00 : f32
      %50 = vector.broadcast %cst_49 : f32 to vector<4x8x8xf32>
      %c0_50 = arith.constant 0 : index
      %c0_51 = arith.constant 0 : index
      %c0_52 = arith.constant 0 : index
      %51 = vector.load %arg21[%c0_50, %c0_51, %c0_52] : memref<4x8x8xf32, #tpu.memory_space<vmem>>, vector<4x8x8xf32>
      tpu.vector_store %arg21[%c0_50, %c0_51, %c0_52], %50 {strides = array<i32>} : memref<4x8x8xf32, #tpu.memory_space<vmem>>, vector<4x8x8xf32>,
    } else {
    }
    %c0 = arith.constant 0 : index
    %c0_1 = arith.constant 0 : index
    %c0_2 = arith.constant 0 : index
    %3 = vector.load %arg7[%c0, %c0_1, %c0_2] : memref<1x8x8xf32, #tpu.memory_space<vmem>>, vector<1x8x8xf32>
    %4 = vector.shape_cast %3 : vector<1x8x8xf32> to vector<8x8xf32>
    %cst = arith.constant 0.000000e+00 : f32
    %5 = vector.broadcast %cst : f32 to vector<8x8xf32>
    %6 = arith.cmpf oeq, %4, %5 : vector<8x8xf32>
    %cst_3 = arith.constant -1.000000e+20 : f32
    %cst_4 = arith.constant 0.000000e+00 : f32
    %7 = vector.broadcast %cst_3 : f32 to vector<8x8xf32>
    %8 = vector.broadcast %cst_4 : f32 to vector<8x8xf32>
    %9 = arith.select %6, %7, %8 : vector<8x8xi1>, vector<8x8xf32>
    %c0_5 = arith.constant 0 : index
    %c0_6 = arith.constant 0 : index
    %c0_7 = arith.constant 0 : index
    %c0_8 = arith.constant 0 : index
    %10 = vector.load %arg3[%c0_5, %c0_6, %c0_7, %c0_8] : memref<1x4x8x8xbf16, #tpu.memory_space<vmem>>, vector<1x4x8x8xbf16>
    %11 = vector.shape_cast %10 : vector<1x4x8x8xbf16> to vector<4x8x8xbf16>
    %c0_9 = arith.constant 0 : index
    %c0_10 = arith.constant 0 : index
    %c0_11 = arith.constant 0 : index
    %c0_12 = arith.constant 0 : index
    %12 = vector.load %arg4[%c0_9, %c0_10, %c0_11, %c0_12] : memref<1x4x8x8xbf16, #tpu.memory_space<vmem>>, vector<1x4x8x8xbf16>
    %13 = vector.shape_cast %12 : vector<1x4x8x8xbf16> to vector<4x8x8xbf16>
    "tpu.trace_start"() <{level = 10 : i32, message = "hqd,hkd->hqk"}> : () -> ()
    %cst_13 = arith.constant dense<0.000000e+00> : vector<4x8x8xf32>
    %14 = tpu.matmul %11, %13, %cst_13 {dimension_numbers = #tpu.dot_dimension_numbers<[2], [2], [1], [1], [0, 0, 0, 1, 1, 1], [0], [0]>} : vector<4x8x8xbf16>, vector<4x8x8xbf16>, vector<4x8x8xf32> -> vector<4x8x8xf32>
    "tpu.trace_stop"() : () -> ()
    %15 = vector.shape_cast %9 : vector<8x8xf32> to vector<1x8x8xf32>
    %16 = vector.broadcast %15 : vector<1x8x8xf32> to vector<4x8x8xf32>
    %17 = arith.addf %14, %16 : vector<4x8x8xf32>
    %c0_14 = arith.constant 0 : index
    %c0_15 = arith.constant 0 : index
    %c0_16 = arith.constant 0 : index
    %18 = vector.load %arg19[%c0_14, %c0_15, %c0_16] : memref<4x8x1xf32, #tpu.memory_space<vmem>>, vector<4x8x1xf32>
    %cst_17 = arith.constant dense<0xFF800000> : vector<4x8xf32>
    %19 = vector.multi_reduction <maximumf>, %17, %cst_17 [2] : vector<4x8x8xf32> to vector<4x8xf32>
    %20 = vector.shape_cast %19 : vector<4x8xf32> to vector<4x8x1xf32>
    %21 = arith.maximumf %18, %20 : vector<4x8x1xf32>
    %22 = arith.subf %18, %21 : vector<4x8x1xf32>
    %23 = math.exp %22 : vector<4x8x1xf32>
    %24 = vector.broadcast %21 : vector<4x8x1xf32> to vector<4x8x8xf32>
    %25 = arith.subf %17, %24 : vector<4x8x8xf32>
    %26 = math.exp %25 : vector<4x8x8xf32>
    %c0_18 = arith.constant 0 : index
    %c0_19 = arith.constant 0 : index
    %c0_20 = arith.constant 0 : index
    %27 = vector.load %arg20[%c0_18, %c0_19, %c0_20] : memref<4x8x1xf32, #tpu.memory_space<vmem>>, vector<4x8x1xf32>
    %28 = arith.mulf %23, %27 : vector<4x8x1xf32>
    %cst_21 = arith.constant dense<0.000000e+00> : vector<4x8xf32>
    %29 = vector.multi_reduction <add>, %26, %cst_21 [2] : vector<4x8x8xf32> to vector<4x8xf32>
    %30 = vector.shape_cast %29 : vector<4x8xf32> to vector<4x8x1xf32>
    %31 = arith.addf %28, %30 : vector<4x8x1xf32>
    %c0_22 = arith.constant 0 : index
    %c0_23 = arith.constant 0 : index
    %c0_24 = arith.constant 0 : index
    %32 = vector.load %arg20[%c0_22, %c0_23, %c0_24] : memref<4x8x1xf32, #tpu.memory_space<vmem>>, vector<4x8x1xf32>
    tpu.vector_store %arg20[%c0_22, %c0_23, %c0_24], %31 {strides = array<i32>} : memref<4x8x1xf32, #tpu.memory_space<vmem>>, vector<4x8x1xf32>,
    %c0_25 = arith.constant 0 : index
    %c0_26 = arith.constant 0 : index
    %c0_27 = arith.constant 0 : index
    %33 = vector.load %arg21[%c0_25, %c0_26, %c0_27] : memref<4x8x8xf32, #tpu.memory_space<vmem>>, vector<4x8x8xf32>
    %34 = vector.broadcast %23 : vector<4x8x1xf32> to vector<4x8x8xf32>
    %35 = arith.mulf %34, %33 : vector<4x8x8xf32>
    %36 = arith.truncf %26 : vector<4x8x8xf32> to vector<4x8x8xbf16>
    %c0_28 = arith.constant 0 : index
    %c0_29 = arith.constant 0 : index
    %c0_30 = arith.constant 0 : index
    %c0_31 = arith.constant 0 : index
    %37 = vector.load %arg5[%c0_28, %c0_29, %c0_30, %c0_31] : memref<1x4x8x8xbf16, #tpu.memory_space<vmem>>, vector<1x4x8x8xbf16>
    %38 = vector.shape_cast %37 : vector<1x4x8x8xbf16> to vector<4x8x8xbf16>
    "tpu.trace_start"() <{level = 10 : i32, message = "hqk,hkd->hqd"}> : () -> ()
    %cst_32 = arith.constant dense<0.000000e+00> : vector<4x8x8xf32>
    %39 = tpu.matmul %36, %38, %cst_32 {dimension_numbers = #tpu.dot_dimension_numbers<[2], [1], [1], [2], [0, 0, 0, 1, 1, 2], [0], [0]>} : vector<4x8x8xbf16>, vector<4x8x8xbf16>, vector<4x8x8xf32> -> vector<4x8x8xf32>
    "tpu.trace_stop"() : () -> ()
    %40 = arith.addf %35, %39 : vector<4x8x8xf32>
    %c0_33 = arith.constant 0 : index
    %c0_34 = arith.constant 0 : index
    %c0_35 = arith.constant 0 : index
    %41 = vector.load %arg21[%c0_33, %c0_34, %c0_35] : memref<4x8x8xf32, #tpu.memory_space<vmem>>, vector<4x8x8xf32>
    tpu.vector_store %arg21[%c0_33, %c0_34, %c0_35], %40 {strides = array<i32>} : memref<4x8x8xf32, #tpu.memory_space<vmem>>, vector<4x8x8xf32>,
    %c0_36 = arith.constant 0 : index
    %c0_37 = arith.constant 0 : index
    %c0_38 = arith.constant 0 : index
    %42 = vector.load %arg19[%c0_36, %c0_37, %c0_38] : memref<4x8x1xf32, #tpu.memory_space<vmem>>, vector<4x8x1xf32>
    tpu.vector_store %arg19[%c0_36, %c0_37, %c0_38], %21 {strides = array<i32>} : memref<4x8x1xf32, #tpu.memory_space<vmem>>, vector<4x8x1xf32>,
    %c0_i32_39 = arith.constant 0 : i32
    %43 = arith.cmpi eq, %arg2, %c0_i32_39 : i32
    %44 = arith.extui %43 : i1 to i32
    %c0_i32_40 = arith.constant 0 : i32
    %45 = arith.cmpi ne, %44, %c0_i32_40 : i32
    scf.if %45 {
      %c0_41 = arith.constant 0 : index
      %c0_42 = arith.constant 0 : index
      %c0_43 = arith.constant 0 : index
      %46 = vector.load %arg21[%c0_41, %c0_42, %c0_43] : memref<4x8x8xf32, #tpu.memory_space<vmem>>, vector<4x8x8xf32>
      %c0_44 = arith.constant 0 : index
      %c0_45 = arith.constant 0 : index
      %c0_46 = arith.constant 0 : index
      %47 = vector.load %arg20[%c0_44, %c0_45, %c0_46] : memref<4x8x1xf32, #tpu.memory_space<vmem>>, vector<4x8x1xf32>
      %48 = tpu.reciprocal %47 {approx = true} : vector<4x8x1xf32> -> vector<4x8x1xf32>
      %49 = vector.broadcast %48 : vector<4x8x1xf32> to vector<4x8x8xf32>
      %50 = arith.mulf %46, %49 : vector<4x8x8xf32>
      %51 = tpu.transpose %50, [0, 2, 1] : vector<4x8x8xf32> -> vector<4x8x8xf32>
      %52 = vector.shape_cast %51 : vector<4x8x8xf32> to vector<32x8xf32>
      %53 = tpu.transpose %52, [1, 0] : vector<32x8xf32> -> vector<8x32xf32>
      %54 = arith.truncf %53 : vector<8x32xf32> to vector<8x32xbf16>
      %c0_47 = arith.constant 0 : index
      %c0_48 = arith.constant 0 : index
      %55 = vector.load %arg8[%c0_47, %c0_48] : memref<32x32xbf16, #tpu.memory_space<vmem>>, vector<32x32xbf16>
      %cst_49 = arith.constant dense<0.000000e+00> : vector<8x32xf32>
      %56 = tpu.matmul %54, %55, %cst_49 {dimension_numbers = #tpu.dot_dimension_numbers<[1], [0], [0], [1], [0, 0, 1, 1], [], []>} : vector<8x32xbf16>, vector<32x32xbf16>, vector<8x32xf32> -> vector<8x32xf32>
      %c0_50 = arith.constant 0 : index
      %c0_51 = arith.constant 0 : index
      %57 = vector.load %arg9[%c0_50, %c0_51] : memref<1x32xf32, #tpu.memory_space<vmem>>, vector<1x32xf32>
      %58 = vector.broadcast %57 : vector<1x32xf32> to vector<8x32xf32>
      %59 = arith.addf %56, %58 : vector<8x32xf32>
      %c0_52 = arith.constant 0 : index
      %c0_53 = arith.constant 0 : index
      %c0_54 = arith.constant 0 : index
      %60 = vector.load %arg6[%c0_52, %c0_53, %c0_54] : memref<1x8x32xf32, #tpu.memory_space<vmem>>, vector<1x8x32xf32>
      %61 = vector.shape_cast %60 : vector<1x8x32xf32> to vector<8x32xf32>
      %62 = arith.addf %59, %61 : vector<8x32xf32>
      %c0_55 = arith.constant 0 : index
      %c0_56 = arith.constant 0 : index
      %63 = vector.load %arg10[%c0_55, %c0_56] : memref<1x32xf32, #tpu.memory_space<vmem>>, vector<1x32xf32>
      %c0_57 = arith.constant 0 : index
      %c0_58 = arith.constant 0 : index
      %64 = vector.load %arg11[%c0_57, %c0_58] : memref<1x32xf32, #tpu.memory_space<vmem>>, vector<1x32xf32>
      %cst_59 = arith.constant dense<0.000000e+00> : vector<8xf32>
      %65 = vector.multi_reduction <add>, %62, %cst_59 [1] : vector<8x32xf32> to vector<8xf32>
      %66 = vector.shape_cast %65 : vector<8xf32> to vector<8x1xf32>
      %cst_60 = arith.constant 3.200000e+01 : f32
      %67 = vector.broadcast %cst_60 : f32 to vector<8x1xf32>
      %68 = arith.divf %66, %67 : vector<8x1xf32>
      %69 = vector.broadcast %68 : vector<8x1xf32> to vector<8x32xf32>
      %70 = arith.subf %62, %69 : vector<8x32xf32>
      %71 = arith.mulf %70, %70 : vector<8x32xf32>
      %cst_61 = arith.constant dense<0.000000e+00> : vector<8xf32>
      %72 = vector.multi_reduction <add>, %71, %cst_61 [1] : vector<8x32xf32> to vector<8xf32>
      %73 = vector.shape_cast %72 : vector<8xf32> to vector<8x1xf32>
      %cst_62 = arith.constant 3.200000e+01 : f32
      %74 = vector.broadcast %cst_62 : f32 to vector<8x1xf32>
      %75 = arith.divf %73, %74 : vector<8x1xf32>
      %76 = vector.broadcast %68 : vector<8x1xf32> to vector<8x32xf32>
      %77 = arith.subf %62, %76 : vector<8x32xf32>
      %cst_63 = arith.constant 9.99999974E-6 : f32
      %78 = vector.broadcast %cst_63 : f32 to vector<8x1xf32>
      %79 = arith.addf %75, %78 : vector<8x1xf32>
      %80 = math.rsqrt %79 : vector<8x1xf32>
      %81 = vector.broadcast %80 : vector<8x1xf32> to vector<8x32xf32>
      %82 = arith.mulf %77, %81 : vector<8x32xf32>
      %83 = vector.broadcast %63 : vector<1x32xf32> to vector<8x32xf32>
      %84 = arith.mulf %82, %83 : vector<8x32xf32>
      %85 = vector.broadcast %64 : vector<1x32xf32> to vector<8x32xf32>
      %86 = arith.addf %84, %85 : vector<8x32xf32>
      %87 = arith.truncf %86 : vector<8x32xf32> to vector<8x32xbf16>
      %c0_64 = arith.constant 0 : index
      %c0_65 = arith.constant 0 : index
      %88 = vector.load %arg14[%c0_64, %c0_65] : memref<32x64xbf16, #tpu.memory_space<vmem>>, vector<32x64xbf16>
      %cst_66 = arith.constant dense<0.000000e+00> : vector<8x64xf32>
      %89 = tpu.matmul %87, %88, %cst_66 {dimension_numbers = #tpu.dot_dimension_numbers<[1], [0], [0], [1], [0, 0, 1, 1], [], []>} : vector<8x32xbf16>, vector<32x64xbf16>, vector<8x64xf32> -> vector<8x64xf32>
      %c0_67 = arith.constant 0 : index
      %c0_68 = arith.constant 0 : index
      %90 = vector.load %arg15[%c0_67, %c0_68] : memref<1x64xf32, #tpu.memory_space<vmem>>, vector<1x64xf32>
      %91 = vector.broadcast %90 : vector<1x64xf32> to vector<8x64xf32>
      %92 = arith.addf %89, %91 : vector<8x64xf32>
      %cst_69 = arith.constant 0.000000e+00 : f32
      %93 = vector.broadcast %cst_69 : f32 to vector<8x64xf32>
      %94 = arith.maximumf %92, %93 : vector<8x64xf32>
      %95 = arith.truncf %94 : vector<8x64xf32> to vector<8x64xbf16>
      %c0_70 = arith.constant 0 : index
      %c0_71 = arith.constant 0 : index
      %96 = vector.load %arg16[%c0_70, %c0_71] : memref<64x32xbf16, #tpu.memory_space<vmem>>, vector<64x32xbf16>
      %cst_72 = arith.constant dense<0.000000e+00> : vector<8x32xf32>
      %97 = tpu.matmul %95, %96, %cst_72 {dimension_numbers = #tpu.dot_dimension_numbers<[1], [0], [0], [1], [0, 0, 1, 1], [], []>} : vector<8x64xbf16>, vector<64x32xbf16>, vector<8x32xf32> -> vector<8x32xf32>
      %c0_73 = arith.constant 0 : index
      %c0_74 = arith.constant 0 : index
      %98 = vector.load %arg17[%c0_73, %c0_74] : memref<1x32xf32, #tpu.memory_space<vmem>>, vector<1x32xf32>
      %99 = vector.broadcast %98 : vector<1x32xf32> to vector<8x32xf32>
      %100 = arith.addf %97, %99 : vector<8x32xf32>
      %101 = arith.addf %100, %86 : vector<8x32xf32>
      %c0_75 = arith.constant 0 : index
      %c0_76 = arith.constant 0 : index
      %102 = vector.load %arg12[%c0_75, %c0_76] : memref<1x32xf32, #tpu.memory_space<vmem>>, vector<1x32xf32>
      %c0_77 = arith.constant 0 : index
      %c0_78 = arith.constant 0 : index
      %103 = vector.load %arg13[%c0_77, %c0_78] : memref<1x32xf32, #tpu.memory_space<vmem>>, vector<1x32xf32>
      %cst_79 = arith.constant dense<0.000000e+00> : vector<8xf32>
      %104 = vector.multi_reduction <add>, %101, %cst_79 [1] : vector<8x32xf32> to vector<8xf32>
      %105 = vector.shape_cast %104 : vector<8xf32> to vector<8x1xf32>
      %cst_80 = arith.constant 3.200000e+01 : f32
      %106 = vector.broadcast %cst_80 : f32 to vector<8x1xf32>
      %107 = arith.divf %105, %106 : vector<8x1xf32>
      %108 = vector.broadcast %107 : vector<8x1xf32> to vector<8x32xf32>
      %109 = arith.subf %101, %108 : vector<8x32xf32>
      %110 = arith.mulf %109, %109 : vector<8x32xf32>
      %cst_81 = arith.constant dense<0.000000e+00> : vector<8xf32>
      %111 = vector.multi_reduction <add>, %110, %cst_81 [1] : vector<8x32xf32> to vector<8xf32>
      %112 = vector.shape_cast %111 : vector<8xf32> to vector<8x1xf32>
      %cst_82 = arith.constant 3.200000e+01 : f32
      %113 = vector.broadcast %cst_82 : f32 to vector<8x1xf32>
      %114 = arith.divf %112, %113 : vector<8x1xf32>
      %115 = vector.broadcast %107 : vector<8x1xf32> to vector<8x32xf32>
      %116 = arith.subf %101, %115 : vector<8x32xf32>
      %cst_83 = arith.constant 9.99999974E-6 : f32
      %117 = vector.broadcast %cst_83 : f32 to vector<8x1xf32>
      %118 = arith.addf %114, %117 : vector<8x1xf32>
      %119 = math.rsqrt %118 : vector<8x1xf32>
      %120 = vector.broadcast %119 : vector<8x1xf32> to vector<8x32xf32>
      %121 = arith.mulf %116, %120 : vector<8x32xf32>
      %122 = vector.broadcast %102 : vector<1x32xf32> to vector<8x32xf32>
      %123 = arith.mulf %121, %122 : vector<8x32xf32>
      %124 = vector.broadcast %103 : vector<1x32xf32> to vector<8x32xf32>
      %125 = arith.addf %123, %124 : vector<8x32xf32>
      %c0_84 = arith.constant 0 : index
      %c0_85 = arith.constant 0 : index
      %c0_86 = arith.constant 0 : index
      %126 = vector.load %arg18[%c0_84, %c0_85, %c0_86] : memref<1x8x32xf32, #tpu.memory_space<vmem>>, vector<1x8x32xf32>
      %127 = vector.shape_cast %126 : vector<1x8x32xf32> to vector<8x32xf32>
      %128 = vector.shape_cast %125 : vector<8x32xf32> to vector<1x8x32xf32>
      tpu.vector_store %arg18[%c0_84, %c0_85, %c0_86], %128 {strides = array<i32>} : memref<1x8x32xf32, #tpu.memory_space<vmem>>, vector<1x8x32xf32>,
    } else {
    }
    return
  }
  func.func @transform_0(%arg0: i32, %arg1: i32, %arg2: i32) -> (i32, i32, i32, i32) {
    %c0_i32 = arith.constant 0 : i32
    %c0_i32_0 = arith.constant 0 : i32
    %c0_i32_1 = arith.constant 0 : i32
    return %arg0, %c0_i32, %arg1, %c0_i32_0 : i32, i32, i32, i32
  }
  func.func @transform_1(%arg0: i32, %arg1: i32, %arg2: i32) -> (i32, i32, i32, i32) {
    %c0_i32 = arith.constant 0 : i32
    %c0_i32_0 = arith.constant 0 : i32
    %c0_i32_1 = arith.constant 0 : i32
    return %arg0, %c0_i32, %arg2, %c0_i32_0 : i32, i32, i32, i32
  }
  func.func @transform_2(%arg0: i32, %arg1: i32, %arg2: i32) -> (i32, i32, i32, i32) {
    %c0_i32 = arith.constant 0 : i32
    %c0_i32_0 = arith.constant 0 : i32
    %c0_i32_1 = arith.constant 0 : i32
    return %arg0, %c0_i32, %arg2, %c0_i32_0 : i32, i32, i32, i32
  }
  func.func @transform_3(%arg0: i32, %arg1: i32, %arg2: i32) -> (i32, i32, i32) {
    %c0_i32 = arith.constant 0 : i32
    %c0_i32_0 = arith.constant 0 : i32
    return %arg0, %arg1, %c0_i32 : i32, i32, i32
  }
  func.func @transform_4(%arg0: i32, %arg1: i32, %arg2: i32) -> (i32, i32, i32) {
    %c0_i32 = arith.constant 0 : i32
    %c0_i32_0 = arith.constant 0 : i32
    return %c0_i32, %arg1, %arg2 : i32, i32, i32
  }
  func.func @transform_5(%arg0: i32, %arg1: i32, %arg2: i32) -> (i32, i32) {
    %c0_i32 = arith.constant 0 : i32
    %c0_i32_0 = arith.constant 0 : i32
    %c0_i32_1 = arith.constant 0 : i32
    return %c0_i32, %c0_i32_0 : i32, i32
  }
  func.func @transform_6(%arg0: i32, %arg1: i32, %arg2: i32) -> (i32, i32) {
    %c0_i32 = arith.constant 0 : i32
    %c0_i32_0 = arith.constant 0 : i32
    %c0_i32_1 = arith.constant 0 : i32
    return %c0_i32, %c0_i32_0 : i32, i32
  }
  func.func @transform_7(%arg0: i32, %arg1: i32, %arg2: i32) -> (i32, i32) {
    %c0_i32 = arith.constant 0 : i32
    %c0_i32_0 = arith.constant 0 : i32
    %c0_i32_1 = arith.constant 0 : i32
    return %c0_i32, %c0_i32_0 : i32, i32
  }
  func.func @transform_8(%arg0: i32, %arg1: i32, %arg2: i32) -> (i32, i32) {
    %c0_i32 = arith.constant 0 : i32
    %c0_i32_0 = arith.constant 0 : i32
    %c0_i32_1 = arith.constant 0 : i32
    return %c0_i32, %c0_i32_0 : i32, i32
  }
  func.func @transform_9(%arg0: i32, %arg1: i32, %arg2: i32) -> (i32, i32) {
    %c0_i32 = arith.constant 0 : i32
    %c0_i32_0 = arith.constant 0 : i32
    %c0_i32_1 = arith.constant 0 : i32
    return %c0_i32, %c0_i32_0 : i32, i32
  }
  func.func @transform_10(%arg0: i32, %arg1: i32, %arg2: i32) -> (i32, i32) {
    %c0_i32 = arith.constant 0 : i32
    %c0_i32_0 = arith.constant 0 : i32
    %c0_i32_1 = arith.constant 0 : i32
    return %c0_i32, %c0_i32_0 : i32, i32
  }
  func.func @transform_11(%arg0: i32, %arg1: i32, %arg2: i32) -> (i32, i32) {
    %c0_i32 = arith.constant 0 : i32
    %c0_i32_0 = arith.constant 0 : i32
    %c0_i32_1 = arith.constant 0 : i32
    return %c0_i32, %c0_i32_0 : i32, i32
  }
  func.func @transform_12(%arg0: i32, %arg1: i32, %arg2: i32) -> (i32, i32) {
    %c0_i32 = arith.constant 0 : i32
    %c0_i32_0 = arith.constant 0 : i32
    %c0_i32_1 = arith.constant 0 : i32
    return %c0_i32, %c0_i32_0 : i32, i32
  }
  func.func @transform_13(%arg0: i32, %arg1: i32, %arg2: i32) -> (i32, i32) {
    %c0_i32 = arith.constant 0 : i32
    %c0_i32_0 = arith.constant 0 : i32
    %c0_i32_1 = arith.constant 0 : i32
    return %c0_i32, %c0_i32_0 : i32, i32
  }
  func.func @transform_14(%arg0: i32, %arg1: i32, %arg2: i32) -> (i32, i32) {
    %c0_i32 = arith.constant 0 : i32
    %c0_i32_0 = arith.constant 0 : i32
    %c0_i32_1 = arith.constant 0 : i32
    return %c0_i32, %c0_i32_0 : i32, i32
  }
  func.func @transform_15(%arg0: i32, %arg1: i32, %arg2: i32) -> (i32, i32, i32) {
    %c0_i32 = arith.constant 0 : i32
    %c0_i32_0 = arith.constant 0 : i32
    return %arg0, %arg1, %c0_i32 : i32, i32, i32
  }
}

module attributes {stable_mosaic.version = 11 : i64} {
  func.func @_transformer_block_kernel(%arg0: i32, %arg1: i32, %arg2: i32, %arg3: memref<1x4x8x8xbf16, #tpu.memory_space<vmem>>, %arg4: memref<1x4x8x8xbf16, #tpu.memory_space<vmem>>, %arg5: memref<1x4x8x8xbf16, #tpu.memory_space<vmem>>, %arg6: memref<1x8x32xf32, #tpu.memory_space<vmem>>, %arg7: memref<1x8x8xf32, #tpu.memory_space<vmem>>, %arg8: memref<32x32xbf16, #tpu.memory_space<vmem>>, %arg9: memref<1x32xf32, #tpu.memory_space<vmem>>, %arg10: memref<1x32xf32, #tpu.memory_space<vmem>>, %arg11: memref<1x32xf32, #tpu.memory_space<vmem>>, %arg12: memref<1x32xf32, #tpu.memory_space<vmem>>, %arg13: memref<1x32xf32, #tpu.memory_space<vmem>>, %arg14: memref<32x64xbf16, #tpu.memory_space<vmem>>, %arg15: memref<1x64xf32, #tpu.memory_space<vmem>>, %arg16: memref<64x32xbf16, #tpu.memory_space<vmem>>, %arg17: memref<1x32xf32, #tpu.memory_space<vmem>>, %arg18: memref<1x8x32xf32, #tpu.memory_space<vmem>>, %arg19: memref<4x8x1xf32, #tpu.memory_space<vmem>>, %arg20: memref<4x8x1xf32, #tpu.memory_space<vmem>>, %arg21: memref<4x8x8xf32, #tpu.memory_space<vmem>>) attributes {dimension_semantics = [#tpu.dimension_semantics<parallel>, #tpu.dimension_semantics<parallel>, #tpu.dimension_semantics<arbitrary>], iteration_bounds = array<i64: 2, 1, 1>, scalar_prefetch = 0 : i64, scratch_operands = 3 : i64, tpu.core_type = #tpu.core_type<tc>, window_params = [{transform_indices = @transform_0, window_bounds = array<i64: 1, 4, 8, 8>}, {transform_indices = @transform_1, window_bounds = array<i64: 1, 4, 8, 8>}, {transform_indices = @transform_2, window_bounds = array<i64: 1, 4, 8, 8>}, {transform_indices = @transform_3, window_bounds = array<i64: 1, 8, 32>}, {transform_indices = @transform_4, window_bounds = array<i64: 1, 8, 8>}, {pipeline_mode = #tpu.pipeline_mode<synchronous>, transform_indices = @transform_5, window_bounds = array<i64: 32, 32>}, {pipeline_mode = #tpu.pipeline_mode<synchronous>, transform_indices = @transform_6, window_bounds = array<i64: 1, 32>}, {pipeline_mode = #tpu.pipeline_mode<synchronous>, transform_indices = @transform_7, window_bounds = array<i64: 1, 32>}, {pipeline_mode = #tpu.pipeline_mode<synchronous>, transform_indices = @transform_8, window_bounds = array<i64: 1, 32>}, {pipeline_mode = #tpu.pipeline_mode<synchronous>, transform_indices = @transform_9, window_bounds = array<i64: 1, 32>}, {pipeline_mode = #tpu.pipeline_mode<synchronous>, transform_indices = @transform_10, window_bounds = array<i64: 1, 32>}, {pipeline_mode = #tpu.pipeline_mode<synchronous>, transform_indices = @transform_11, window_bounds = array<i64: 32, 64>}, {pipeline_mode = #tpu.pipeline_mode<synchronous>, transform_indices = @transform_12, window_bounds = array<i64: 1, 64>}, {pipeline_mode = #tpu.pipeline_mode<synchronous>, transform_indices = @transform_13, window_bounds = array<i64: 64, 32>}, {pipeline_mode = #tpu.pipeline_mode<synchronous>, transform_indices = @transform_14, window_bounds = array<i64: 1, 32>}, {transform_indices = @transform_15, window_bounds = array<i64: 1, 8, 32>}]} {
    %c0_i32 = arith.constant 0 : i32
    %0 = arith.cmpi eq, %arg2, %c0_i32 : i32
    %1 = arith.extui %0 : i1 to i32
    %c0_i32_0 = arith.constant 0 : i32
    %2 = arith.cmpi ne, %1, %c0_i32_0 : i32
    scf.if %2 {
      %cst_41 = arith.constant -1.000000e+30 : f32
      %46 = vector.broadcast %cst_41 : f32 to vector<4x8x1xf32>
      %c0_42 = arith.constant 0 : index
      %c0_43 = arith.constant 0 : index
      %c0_44 = arith.constant 0 : index
      %47 = vector.load %arg19[%c0_42, %c0_43, %c0_44] : memref<4x8x1xf32, #tpu.memory_space<vmem>>, vector<4x8x1xf32>
      tpu.vector_store %arg19[%c0_42, %c0_43, %c0_44], %46 {strides = array<i32>} : memref<4x8x1xf32, #tpu.memory_space<vmem>>, vector<4x8x1xf32>,
      %cst_45 = arith.constant 0.000000e+00 : f32
      %48 = vector.broadcast %cst_45 : f32 to vector<4x8x1xf32>
      %c0_46 = arith.constant 0 : index
      %c0_47 = arith.constant 0 : index
      %c0_48 = arith.constant 0 : index
      %49 = vector.load %arg20[%c0_46, %c0_47, %c0_48] : memref<4x8x1xf32, #tpu.memory_space<vmem>>, vector<4x8x1xf32>
      tpu.vector_store %arg20[%c0_46, %c0_47, %c0_48], %48 {strides = array<i32>} : memref<4x8x1xf32, #tpu.memory_space<vmem>>, vector<4x8x1xf32>,
      %cst_49 = arith.constant 0.000000e+00 : f32
      %50 = vector.broadcast %cst_49 : f32 to vector<4x8x8xf32>
      %c0_50 = arith.constant 0 : index
      %c0_51 = arith.constant 0 : index
      %c0_52 = arith.constant 0 : index
      %51 = vector.load %arg21[%c0_50, %c0_51, %c0_52] : memref<4x8x8xf32, #tpu.memory_space<vmem>>, vector<4x8x8xf32>
      tpu.vector_store %arg21[%c0_50, %c0_51, %c0_52], %50 {strides = array<i32>} : memref<4x8x8xf32, #tpu.memory_space<vmem>>, vector<4x8x8xf32>,
    } else {
    }
    %c0 = arith.constant 0 : index
    %c0_1 = arith.constant 0 : index
    %c0_2 = arith.constant 0 : index
    %3 = vector.load %arg7[%c0, %c0_1, %c0_2] : memref<1x8x8xf32, #tpu.memory_space<vmem>>, vector<1x8x8xf32>
    %4 = vector.shape_cast %3 : vector<1x8x8xf32> to vector<8x8xf32>
    %cst = arith.constant 0.000000e+00 : f32
    %5 = vector.broadcast %cst : f32 to vector<8x8xf32>
    %6 = arith.cmpf oeq, %4, %5 : vector<8x8xf32>
    %cst_3 = arith.constant -1.000000e+20 : f32
    %cst_4 = arith.constant 0.000000e+00 : f32
    %7 = vector.broadcast %cst_3 : f32 to vector<8x8xf32>
    %8 = vector.broadcast %cst_4 : f32 to vector<8x8xf32>
    %9 = arith.select %6, %7, %8 : vector<8x8xi1>, vector<8x8xf32>
    %c0_5 = arith.constant 0 : index
    %c0_6 = arith.constant 0 : index
    %c0_7 = arith.constant 0 : index
    %c0_8 = arith.constant 0 : index
    %10 = vector.load %arg3[%c0_5, %c0_6, %c0_7, %c0_8] : memref<1x4x8x8xbf16, #tpu.memory_space<vmem>>, vector<1x4x8x8xbf16>
    %11 = vector.shape_cast %10 : vector<1x4x8x8xbf16> to vector<4x8x8xbf16>
    %c0_9 = arith.constant 0 : index
    %c0_10 = arith.constant 0 : index
    %c0_11 = arith.constant 0 : index
    %c0_12 = arith.constant 0 : index
    %12 = vector.load %arg4[%c0_9, %c0_10, %c0_11, %c0_12] : memref<1x4x8x8xbf16, #tpu.memory_space<vmem>>, vector<1x4x8x8xbf16>
    %13 = vector.shape_cast %12 : vector<1x4x8x8xbf16> to vector<4x8x8xbf16>
    "tpu.trace_start"() <{level = 10 : i32, message = "hqd,hkd->hqk"}> : () -> ()
    %cst_13 = arith.constant dense<0.000000e+00> : vector<4x8x8xf32>
    %14 = tpu.matmul %11, %13, %cst_13 {dimension_numbers = #tpu.dot_dimension_numbers<[2], [2], [1], [1], [0, 0, 0, 1, 1, 1], [0], [0]>} : vector<4x8x8xbf16>, vector<4x8x8xbf16>, vector<4x8x8xf32> -> vector<4x8x8xf32>
    "tpu.trace_stop"() : () -> ()
    %15 = vector.shape_cast %9 : vector<8x8xf32> to vector<1x8x8xf32>
    %16 = vector.broadcast %15 : vector<1x8x8xf32> to vector<4x8x8xf32>
    %17 = arith.addf %14, %16 : vector<4x8x8xf32>
    %c0_14 = arith.constant 0 : index
    %c0_15 = arith.constant 0 : index
    %c0_16 = arith.constant 0 : index
    %18 = vector.load %arg19[%c0_14, %c0_15, %c0_16] : memref<4x8x1xf32, #tpu.memory_space<vmem>>, vector<4x8x1xf32>
    %cst_17 = arith.constant dense<0xFF800000> : vector<4x8xf32>
    %19 = vector.multi_reduction <maximumf>, %17, %cst_17 [2] : vector<4x8x8xf32> to vector<4x8xf32>
    %20 = vector.shape_cast %19 : vector<4x8xf32> to vector<4x8x1xf32>
    %21 = arith.maximumf %18, %20 : vector<4x8x1xf32>
    %22 = arith.subf %18, %21 : vector<4x8x1xf32>
    %23 = math.exp %22 : vector<4x8x1xf32>
    %24 = vector.broadcast %21 : vector<4x8x1xf32> to vector<4x8x8xf32>
    %25 = arith.subf %17, %24 : vector<4x8x8xf32>
    %26 = math.exp %25 : vector<4x8x8xf32>
    %c0_18 = arith.constant 0 : index
    %c0_19 = arith.constant 0 : index
    %c0_20 = arith.constant 0 : index
    %27 = vector.load %arg20[%c0_18, %c0_19, %c0_20] : memref<4x8x1xf32, #tpu.memory_space<vmem>>, vector<4x8x1xf32>
    %28 = arith.mulf %23, %27 : vector<4x8x1xf32>
    %cst_21 = arith.constant dense<0.000000e+00> : vector<4x8xf32>
    %29 = vector.multi_reduction <add>, %26, %cst_21 [2] : vector<4x8x8xf32> to vector<4x8xf32>
    %30 = vector.shape_cast %29 : vector<4x8xf32> to vector<4x8x1xf32>
    %31 = arith.addf %28, %30 : vector<4x8x1xf32>
    %c0_22 = arith.constant 0 : index
    %c0_23 = arith.constant 0 : index
    %c0_24 = arith.constant 0 : index
    %32 = vector.load %arg20[%c0_22, %c0_23, %c0_24] : memref<4x8x1xf32, #tpu.memory_space<vmem>>, vector<4x8x1xf32>
    tpu.vector_store %arg20[%c0_22, %c0_23, %c0_24], %31 {strides = array<i32>} : memref<4x8x1xf32, #tpu.memory_space<vmem>>, vector<4x8x1xf32>,
    %c0_25 = arith.constant 0 : index
    %c0_26 = arith.constant 0 : index
    %c0_27 = arith.constant 0 : index
    %33 = vector.load %arg21[%c0_25, %c0_26, %c0_27] : memref<4x8x8xf32, #tpu.memory_space<vmem>>, vector<4x8x8xf32>
    %34 = vector.broadcast %23 : vector<4x8x1xf32> to vector<4x8x8xf32>
    %35 = arith.mulf %34, %33 : vector<4x8x8xf32>
    %36 = arith.truncf %26 : vector<4x8x8xf32> to vector<4x8x8xbf16>
    %c0_28 = arith.constant 0 : index
    %c0_29 = arith.constant 0 : index
    %c0_30 = arith.constant 0 : index
    %c0_31 = arith.constant 0 : index
    %37 = vector.load %arg5[%c0_28, %c0_29, %c0_30, %c0_31] : memref<1x4x8x8xbf16, #tpu.memory_space<vmem>>, vector<1x4x8x8xbf16>
    %38 = vector.shape_cast %37 : vector<1x4x8x8xbf16> to vector<4x8x8xbf16>
    "tpu.trace_start"() <{level = 10 : i32, message = "hqk,hkd->hqd"}> : () -> ()
    %cst_32 = arith.constant dense<0.000000e+00> : vector<4x8x8xf32>
    %39 = tpu.matmul %36, %38, %cst_32 {dimension_numbers = #tpu.dot_dimension_numbers<[2], [1], [1], [2], [0, 0, 0, 1, 1, 2], [0], [0]>} : vector<4x8x8xbf16>, vector<4x8x8xbf16>, vector<4x8x8xf32> -> vector<4x8x8xf32>
    "tpu.trace_stop"() : () -> ()
    %40 = arith.addf %35, %39 : vector<4x8x8xf32>
    %c0_33 = arith.constant 0 : index
    %c0_34 = arith.constant 0 : index
    %c0_35 = arith.constant 0 : index
    %41 = vector.load %arg21[%c0_33, %c0_34, %c0_35] : memref<4x8x8xf32, #tpu.memory_space<vmem>>, vector<4x8x8xf32>
    tpu.vector_store %arg21[%c0_33, %c0_34, %c0_35], %40 {strides = array<i32>} : memref<4x8x8xf32, #tpu.memory_space<vmem>>, vector<4x8x8xf32>,
    %c0_36 = arith.constant 0 : index
    %c0_37 = arith.constant 0 : index
    %c0_38 = arith.constant 0 : index
    %42 = vector.load %arg19[%c0_36, %c0_37, %c0_38] : memref<4x8x1xf32, #tpu.memory_space<vmem>>, vector<4x8x1xf32>
    tpu.vector_store %arg19[%c0_36, %c0_37, %c0_38], %21 {strides = array<i32>} : memref<4x8x1xf32, #tpu.memory_space<vmem>>, vector<4x8x1xf32>,
    %c0_i32_39 = arith.constant 0 : i32
    %43 = arith.cmpi eq, %arg2, %c0_i32_39 : i32
    %44 = arith.extui %43 : i1 to i32
    %c0_i32_40 = arith.constant 0 : i32
    %45 = arith.cmpi ne, %44, %c0_i32_40 : i32
    scf.if %45 {
      %c0_41 = arith.constant 0 : index
      %c0_42 = arith.constant 0 : index
      %c0_43 = arith.constant 0 : index
      %46 = vector.load %arg21[%c0_41, %c0_42, %c0_43] : memref<4x8x8xf32, #tpu.memory_space<vmem>>, vector<4x8x8xf32>
      %c0_44 = arith.constant 0 : index
      %c0_45 = arith.constant 0 : index
      %c0_46 = arith.constant 0 : index
      %47 = vector.load %arg20[%c0_44, %c0_45, %c0_46] : memref<4x8x1xf32, #tpu.memory_space<vmem>>, vector<4x8x1xf32>
      %48 = tpu.reciprocal %47 {approx = true} : vector<4x8x1xf32> -> vector<4x8x1xf32>
      %49 = vector.broadcast %48 : vector<4x8x1xf32> to vector<4x8x8xf32>
      %50 = arith.mulf %46, %49 : vector<4x8x8xf32>
      %cst_47 = arith.constant 0.000000e+00 : f32
      %51 = vector.broadcast %cst_47 : f32 to vector<8x32xf32>
      %52 = vector.extract_strided_slice %50 {offsets = [0, 0, 0], sizes = [1, 8, 8], strides = [1, 1, 1]} : vector<4x8x8xf32> to vector<1x8x8xf32>
      %53 = vector.shape_cast %52 : vector<1x8x8xf32> to vector<8x8xf32>
      %54 = arith.truncf %53 : vector<8x8xf32> to vector<8x8xbf16>
      %c0_48 = arith.constant 0 : index
      %c0_49 = arith.constant 0 : index
      %55 = vector.load %arg8[%c0_48, %c0_49] : memref<32x32xbf16, #tpu.memory_space<vmem>>, vector<8x32xbf16>
      %cst_50 = arith.constant dense<0.000000e+00> : vector<8x32xf32>
      %56 = tpu.matmul %54, %55, %cst_50 {dimension_numbers = #tpu.dot_dimension_numbers<[1], [0], [0], [1], [0, 0, 1, 1], [], []>} : vector<8x8xbf16>, vector<8x32xbf16>, vector<8x32xf32> -> vector<8x32xf32>
      %57 = arith.addf %51, %56 : vector<8x32xf32>
      %58 = vector.extract_strided_slice %50 {offsets = [1, 0, 0], sizes = [1, 8, 8], strides = [1, 1, 1]} : vector<4x8x8xf32> to vector<1x8x8xf32>
      %59 = vector.shape_cast %58 : vector<1x8x8xf32> to vector<8x8xf32>
      %60 = arith.truncf %59 : vector<8x8xf32> to vector<8x8xbf16>
      %c8 = arith.constant 8 : index
      %c0_51 = arith.constant 0 : index
      %61 = vector.load %arg8[%c8, %c0_51] : memref<32x32xbf16, #tpu.memory_space<vmem>>, vector<8x32xbf16>
      %cst_52 = arith.constant dense<0.000000e+00> : vector<8x32xf32>
      %62 = tpu.matmul %60, %61, %cst_52 {dimension_numbers = #tpu.dot_dimension_numbers<[1], [0], [0], [1], [0, 0, 1, 1], [], []>} : vector<8x8xbf16>, vector<8x32xbf16>, vector<8x32xf32> -> vector<8x32xf32>
      %63 = arith.addf %57, %62 : vector<8x32xf32>
      %64 = vector.extract_strided_slice %50 {offsets = [2, 0, 0], sizes = [1, 8, 8], strides = [1, 1, 1]} : vector<4x8x8xf32> to vector<1x8x8xf32>
      %65 = vector.shape_cast %64 : vector<1x8x8xf32> to vector<8x8xf32>
      %66 = arith.truncf %65 : vector<8x8xf32> to vector<8x8xbf16>
      %c16 = arith.constant 16 : index
      %c0_53 = arith.constant 0 : index
      %67 = vector.load %arg8[%c16, %c0_53] : memref<32x32xbf16, #tpu.memory_space<vmem>>, vector<8x32xbf16>
      %cst_54 = arith.constant dense<0.000000e+00> : vector<8x32xf32>
      %68 = tpu.matmul %66, %67, %cst_54 {dimension_numbers = #tpu.dot_dimension_numbers<[1], [0], [0], [1], [0, 0, 1, 1], [], []>} : vector<8x8xbf16>, vector<8x32xbf16>, vector<8x32xf32> -> vector<8x32xf32>
      %69 = arith.addf %63, %68 : vector<8x32xf32>
      %70 = vector.extract_strided_slice %50 {offsets = [3, 0, 0], sizes = [1, 8, 8], strides = [1, 1, 1]} : vector<4x8x8xf32> to vector<1x8x8xf32>
      %71 = vector.shape_cast %70 : vector<1x8x8xf32> to vector<8x8xf32>
      %72 = arith.truncf %71 : vector<8x8xf32> to vector<8x8xbf16>
      %c24 = arith.constant 24 : index
      %c0_55 = arith.constant 0 : index
      %73 = vector.load %arg8[%c24, %c0_55] : memref<32x32xbf16, #tpu.memory_space<vmem>>, vector<8x32xbf16>
      %cst_56 = arith.constant dense<0.000000e+00> : vector<8x32xf32>
      %74 = tpu.matmul %72, %73, %cst_56 {dimension_numbers = #tpu.dot_dimension_numbers<[1], [0], [0], [1], [0, 0, 1, 1], [], []>} : vector<8x8xbf16>, vector<8x32xbf16>, vector<8x32xf32> -> vector<8x32xf32>
      %75 = arith.addf %69, %74 : vector<8x32xf32>
      %c0_57 = arith.constant 0 : index
      %c0_58 = arith.constant 0 : index
      %76 = vector.load %arg9[%c0_57, %c0_58] : memref<1x32xf32, #tpu.memory_space<vmem>>, vector<1x32xf32>
      %77 = vector.broadcast %76 : vector<1x32xf32> to vector<8x32xf32>
      %78 = arith.addf %75, %77 : vector<8x32xf32>
      %c0_59 = arith.constant 0 : index
      %c0_60 = arith.constant 0 : index
      %c0_61 = arith.constant 0 : index
      %79 = vector.load %arg6[%c0_59, %c0_60, %c0_61] : memref<1x8x32xf32, #tpu.memory_space<vmem>>, vector<1x8x32xf32>
      %80 = vector.shape_cast %79 : vector<1x8x32xf32> to vector<8x32xf32>
      %81 = arith.addf %78, %80 : vector<8x32xf32>
      %c0_62 = arith.constant 0 : index
      %c0_63 = arith.constant 0 : index
      %82 = vector.load %arg10[%c0_62, %c0_63] : memref<1x32xf32, #tpu.memory_space<vmem>>, vector<1x32xf32>
      %c0_64 = arith.constant 0 : index
      %c0_65 = arith.constant 0 : index
      %83 = vector.load %arg11[%c0_64, %c0_65] : memref<1x32xf32, #tpu.memory_space<vmem>>, vector<1x32xf32>
      %cst_66 = arith.constant dense<0.000000e+00> : vector<8xf32>
      %84 = vector.multi_reduction <add>, %81, %cst_66 [1] : vector<8x32xf32> to vector<8xf32>
      %85 = vector.shape_cast %84 : vector<8xf32> to vector<8x1xf32>
      %cst_67 = arith.constant 3.200000e+01 : f32
      %86 = vector.broadcast %cst_67 : f32 to vector<8x1xf32>
      %87 = arith.divf %85, %86 : vector<8x1xf32>
      %88 = vector.broadcast %87 : vector<8x1xf32> to vector<8x32xf32>
      %89 = arith.subf %81, %88 : vector<8x32xf32>
      %90 = arith.mulf %89, %89 : vector<8x32xf32>
      %cst_68 = arith.constant dense<0.000000e+00> : vector<8xf32>
      %91 = vector.multi_reduction <add>, %90, %cst_68 [1] : vector<8x32xf32> to vector<8xf32>
      %92 = vector.shape_cast %91 : vector<8xf32> to vector<8x1xf32>
      %cst_69 = arith.constant 3.200000e+01 : f32
      %93 = vector.broadcast %cst_69 : f32 to vector<8x1xf32>
      %94 = arith.divf %92, %93 : vector<8x1xf32>
      %95 = vector.broadcast %87 : vector<8x1xf32> to vector<8x32xf32>
      %96 = arith.subf %81, %95 : vector<8x32xf32>
      %cst_70 = arith.constant 9.99999974E-6 : f32
      %97 = vector.broadcast %cst_70 : f32 to vector<8x1xf32>
      %98 = arith.addf %94, %97 : vector<8x1xf32>
      %99 = math.rsqrt %98 : vector<8x1xf32>
      %100 = vector.broadcast %99 : vector<8x1xf32> to vector<8x32xf32>
      %101 = arith.mulf %96, %100 : vector<8x32xf32>
      %102 = vector.broadcast %82 : vector<1x32xf32> to vector<8x32xf32>
      %103 = arith.mulf %101, %102 : vector<8x32xf32>
      %104 = vector.broadcast %83 : vector<1x32xf32> to vector<8x32xf32>
      %105 = arith.addf %103, %104 : vector<8x32xf32>
      %106 = arith.truncf %105 : vector<8x32xf32> to vector<8x32xbf16>
      %c0_71 = arith.constant 0 : index
      %c0_72 = arith.constant 0 : index
      %107 = vector.load %arg14[%c0_71, %c0_72] : memref<32x64xbf16, #tpu.memory_space<vmem>>, vector<32x64xbf16>
      %cst_73 = arith.constant dense<0.000000e+00> : vector<8x64xf32>
      %108 = tpu.matmul %106, %107, %cst_73 {dimension_numbers = #tpu.dot_dimension_numbers<[1], [0], [0], [1], [0, 0, 1, 1], [], []>} : vector<8x32xbf16>, vector<32x64xbf16>, vector<8x64xf32> -> vector<8x64xf32>
      %c0_74 = arith.constant 0 : index
      %c0_75 = arith.constant 0 : index
      %109 = vector.load %arg15[%c0_74, %c0_75] : memref<1x64xf32, #tpu.memory_space<vmem>>, vector<1x64xf32>
      %110 = vector.broadcast %109 : vector<1x64xf32> to vector<8x64xf32>
      %111 = arith.addf %108, %110 : vector<8x64xf32>
      %cst_76 = arith.constant 0.000000e+00 : f32
      %112 = vector.broadcast %cst_76 : f32 to vector<8x64xf32>
      %113 = arith.maximumf %111, %112 : vector<8x64xf32>
      %114 = arith.truncf %113 : vector<8x64xf32> to vector<8x64xbf16>
      %c0_77 = arith.constant 0 : index
      %c0_78 = arith.constant 0 : index
      %115 = vector.load %arg16[%c0_77, %c0_78] : memref<64x32xbf16, #tpu.memory_space<vmem>>, vector<64x32xbf16>
      %cst_79 = arith.constant dense<0.000000e+00> : vector<8x32xf32>
      %116 = tpu.matmul %114, %115, %cst_79 {dimension_numbers = #tpu.dot_dimension_numbers<[1], [0], [0], [1], [0, 0, 1, 1], [], []>} : vector<8x64xbf16>, vector<64x32xbf16>, vector<8x32xf32> -> vector<8x32xf32>
      %c0_80 = arith.constant 0 : index
      %c0_81 = arith.constant 0 : index
      %117 = vector.load %arg17[%c0_80, %c0_81] : memref<1x32xf32, #tpu.memory_space<vmem>>, vector<1x32xf32>
      %118 = vector.broadcast %117 : vector<1x32xf32> to vector<8x32xf32>
      %119 = arith.addf %116, %118 : vector<8x32xf32>
      %120 = arith.addf %119, %105 : vector<8x32xf32>
      %c0_82 = arith.constant 0 : index
      %c0_83 = arith.constant 0 : index
      %121 = vector.load %arg12[%c0_82, %c0_83] : memref<1x32xf32, #tpu.memory_space<vmem>>, vector<1x32xf32>
      %c0_84 = arith.constant 0 : index
      %c0_85 = arith.constant 0 : index
      %122 = vector.load %arg13[%c0_84, %c0_85] : memref<1x32xf32, #tpu.memory_space<vmem>>, vector<1x32xf32>
      %cst_86 = arith.constant dense<0.000000e+00> : vector<8xf32>
      %123 = vector.multi_reduction <add>, %120, %cst_86 [1] : vector<8x32xf32> to vector<8xf32>
      %124 = vector.shape_cast %123 : vector<8xf32> to vector<8x1xf32>
      %cst_87 = arith.constant 3.200000e+01 : f32
      %125 = vector.broadcast %cst_87 : f32 to vector<8x1xf32>
      %126 = arith.divf %124, %125 : vector<8x1xf32>
      %127 = vector.broadcast %126 : vector<8x1xf32> to vector<8x32xf32>
      %128 = arith.subf %120, %127 : vector<8x32xf32>
      %129 = arith.mulf %128, %128 : vector<8x32xf32>
      %cst_88 = arith.constant dense<0.000000e+00> : vector<8xf32>
      %130 = vector.multi_reduction <add>, %129, %cst_88 [1] : vector<8x32xf32> to vector<8xf32>
      %131 = vector.shape_cast %130 : vector<8xf32> to vector<8x1xf32>
      %cst_89 = arith.constant 3.200000e+01 : f32
      %132 = vector.broadcast %cst_89 : f32 to vector<8x1xf32>
      %133 = arith.divf %131, %132 : vector<8x1xf32>
      %134 = vector.broadcast %126 : vector<8x1xf32> to vector<8x32xf32>
      %135 = arith.subf %120, %134 : vector<8x32xf32>
      %cst_90 = arith.constant 9.99999974E-6 : f32
      %136 = vector.broadcast %cst_90 : f32 to vector<8x1xf32>
      %137 = arith.addf %133, %136 : vector<8x1xf32>
      %138 = math.rsqrt %137 : vector<8x1xf32>
      %139 = vector.broadcast %138 : vector<8x1xf32> to vector<8x32xf32>
      %140 = arith.mulf %135, %139 : vector<8x32xf32>
      %141 = vector.broadcast %121 : vector<1x32xf32> to vector<8x32xf32>
      %142 = arith.mulf %140, %141 : vector<8x32xf32>
      %143 = vector.broadcast %122 : vector<1x32xf32> to vector<8x32xf32>
      %144 = arith.addf %142, %143 : vector<8x32xf32>
      %c0_91 = arith.constant 0 : index
      %c0_92 = arith.constant 0 : index
      %c0_93 = arith.constant 0 : index
      %145 = vector.load %arg18[%c0_91, %c0_92, %c0_93] : memref<1x8x32xf32, #tpu.memory_space<vmem>>, vector<1x8x32xf32>
      %146 = vector.shape_cast %145 : vector<1x8x32xf32> to vector<8x32xf32>
      %147 = vector.shape_cast %144 : vector<8x32xf32> to vector<1x8x32xf32>
      tpu.vector_store %arg18[%c0_91, %c0_92, %c0_93], %147 {strides = array<i32>} : memref<1x8x32xf32, #tpu.memory_space<vmem>>, vector<1x8x32xf32>,
    } else {
    }
    return
  }
  func.func @transform_0(%arg0: i32, %arg1: i32, %arg2: i32) -> (i32, i32, i32, i32) {
    %c0_i32 = arith.constant 0 : i32
    %c0_i32_0 = arith.constant 0 : i32
    %c0_i32_1 = arith.constant 0 : i32
    return %arg0, %c0_i32, %arg1, %c0_i32_0 : i32, i32, i32, i32
  }
  func.func @transform_1(%arg0: i32, %arg1: i32, %arg2: i32) -> (i32, i32, i32, i32) {
    %c0_i32 = arith.constant 0 : i32
    %c0_i32_0 = arith.constant 0 : i32
    %c0_i32_1 = arith.constant 0 : i32
    return %arg0, %c0_i32, %arg2, %c0_i32_0 : i32, i32, i32, i32
  }
  func.func @transform_2(%arg0: i32, %arg1: i32, %arg2: i32) -> (i32, i32, i32, i32) {
    %c0_i32 = arith.constant 0 : i32
    %c0_i32_0 = arith.constant 0 : i32
    %c0_i32_1 = arith.constant 0 : i32
    return %arg0, %c0_i32, %arg2, %c0_i32_0 : i32, i32, i32, i32
  }
  func.func @transform_3(%arg0: i32, %arg1: i32, %arg2: i32) -> (i32, i32, i32) {
    %c0_i32 = arith.constant 0 : i32
    %c0_i32_0 = arith.constant 0 : i32
    return %arg0, %arg1, %c0_i32 : i32, i32, i32
  }
  func.func @transform_4(%arg0: i32, %arg1: i32, %arg2: i32) -> (i32, i32, i32) {
    %c0_i32 = arith.constant 0 : i32
    %c0_i32_0 = arith.constant 0 : i32
    return %c0_i32, %arg1, %arg2 : i32, i32, i32
  }
  func.func @transform_5(%arg0: i32, %arg1: i32, %arg2: i32) -> (i32, i32) {
    %c0_i32 = arith.constant 0 : i32
    %c0_i32_0 = arith.constant 0 : i32
    %c0_i32_1 = arith.constant 0 : i32
    return %c0_i32, %c0_i32_0 : i32, i32
  }
  func.func @transform_6(%arg0: i32, %arg1: i32, %arg2: i32) -> (i32, i32) {
    %c0_i32 = arith.constant 0 : i32
    %c0_i32_0 = arith.constant 0 : i32
    %c0_i32_1 = arith.constant 0 : i32
    return %c0_i32, %c0_i32_0 : i32, i32
  }
  func.func @transform_7(%arg0: i32, %arg1: i32, %arg2: i32) -> (i32, i32) {
    %c0_i32 = arith.constant 0 : i32
    %c0_i32_0 = arith.constant 0 : i32
    %c0_i32_1 = arith.constant 0 : i32
    return %c0_i32, %c0_i32_0 : i32, i32
  }
  func.func @transform_8(%arg0: i32, %arg1: i32, %arg2: i32) -> (i32, i32) {
    %c0_i32 = arith.constant 0 : i32
    %c0_i32_0 = arith.constant 0 : i32
    %c0_i32_1 = arith.constant 0 : i32
    return %c0_i32, %c0_i32_0 : i32, i32
  }
  func.func @transform_9(%arg0: i32, %arg1: i32, %arg2: i32) -> (i32, i32) {
    %c0_i32 = arith.constant 0 : i32
    %c0_i32_0 = arith.constant 0 : i32
    %c0_i32_1 = arith.constant 0 : i32
    return %c0_i32, %c0_i32_0 : i32, i32
  }
  func.func @transform_10(%arg0: i32, %arg1: i32, %arg2: i32) -> (i32, i32) {
    %c0_i32 = arith.constant 0 : i32
    %c0_i32_0 = arith.constant 0 : i32
    %c0_i32_1 = arith.constant 0 : i32
    return %c0_i32, %c0_i32_0 : i32, i32
  }
  func.func @transform_11(%arg0: i32, %arg1: i32, %arg2: i32) -> (i32, i32) {
    %c0_i32 = arith.constant 0 : i32
    %c0_i32_0 = arith.constant 0 : i32
    %c0_i32_1 = arith.constant 0 : i32
    return %c0_i32, %c0_i32_0 : i32, i32
  }
  func.func @transform_12(%arg0: i32, %arg1: i32, %arg2: i32) -> (i32, i32) {
    %c0_i32 = arith.constant 0 : i32
    %c0_i32_0 = arith.constant 0 : i32
    %c0_i32_1 = arith.constant 0 : i32
    return %c0_i32, %c0_i32_0 : i32, i32
  }
  func.func @transform_13(%arg0: i32, %arg1: i32, %arg2: i32) -> (i32, i32) {
    %c0_i32 = arith.constant 0 : i32
    %c0_i32_0 = arith.constant 0 : i32
    %c0_i32_1 = arith.constant 0 : i32
    return %c0_i32, %c0_i32_0 : i32, i32
  }
  func.func @transform_14(%arg0: i32, %arg1: i32, %arg2: i32) -> (i32, i32) {
    %c0_i32 = arith.constant 0 : i32
    %c0_i32_0 = arith.constant 0 : i32
    %c0_i32_1 = arith.constant 0 : i32
    return %c0_i32, %c0_i32_0 : i32, i32
  }
  func.func @transform_15(%arg0: i32, %arg1: i32, %arg2: i32) -> (i32, i32, i32) {
    %c0_i32 = arith.constant 0 : i32
    %c0_i32_0 = arith.constant 0 : i32
    return %arg0, %arg1, %c0_i32 : i32, i32, i32
  }
}

module attributes {stable_mosaic.version = 11 : i64} {
  func.func @_transformer_block_kernel(%arg0: i32, %arg1: i32, %arg2: i32, %arg3: memref<1x4x8x8xbf16, #tpu.memory_space<vmem>>, %arg4: memref<1x4x8x8xbf16, #tpu.memory_space<vmem>>, %arg5: memref<1x4x8x8xbf16, #tpu.memory_space<vmem>>, %arg6: memref<1x8x32xf32, #tpu.memory_space<vmem>>, %arg7: memref<1x8x8xf32, #tpu.memory_space<vmem>>, %arg8: memref<32x32xbf16, #tpu.memory_space<vmem>>, %arg9: memref<1x32xf32, #tpu.memory_space<vmem>>, %arg10: memref<1x32xf32, #tpu.memory_space<vmem>>, %arg11: memref<1x32xf32, #tpu.memory_space<vmem>>, %arg12: memref<1x32xf32, #tpu.memory_space<vmem>>, %arg13: memref<1x32xf32, #tpu.memory_space<vmem>>, %arg14: memref<32x64xbf16, #tpu.memory_space<vmem>>, %arg15: memref<1x64xf32, #tpu.memory_space<vmem>>, %arg16: memref<64x32xbf16, #tpu.memory_space<vmem>>, %arg17: memref<1x32xf32, #tpu.memory_space<vmem>>, %arg18: memref<1x8x32xf32, #tpu.memory_space<vmem>>, %arg19: memref<4x8x1xf32, #tpu.memory_space<vmem>>, %arg20: memref<4x8x1xf32, #tpu.memory_space<vmem>>, %arg21: memref<4x8x8xf32, #tpu.memory_space<vmem>>) attributes {dimension_semantics = [#tpu.dimension_semantics<parallel>, #tpu.dimension_semantics<parallel>, #tpu.dimension_semantics<arbitrary>], iteration_bounds = array<i64: 2, 1, 1>, scalar_prefetch = 0 : i64, scratch_operands = 3 : i64, tpu.core_type = #tpu.core_type<tc>, window_params = [{transform_indices = @transform_0, window_bounds = array<i64: 1, 4, 8, 8>}, {transform_indices = @transform_1, window_bounds = array<i64: 1, 4, 8, 8>}, {transform_indices = @transform_2, window_bounds = array<i64: 1, 4, 8, 8>}, {transform_indices = @transform_3, window_bounds = array<i64: 1, 8, 32>}, {transform_indices = @transform_4, window_bounds = array<i64: 1, 8, 8>}, {pipeline_mode = #tpu.pipeline_mode<synchronous>, transform_indices = @transform_5, window_bounds = array<i64: 32, 32>}, {pipeline_mode = #tpu.pipeline_mode<synchronous>, transform_indices = @transform_6, window_bounds = array<i64: 1, 32>}, {pipeline_mode = #tpu.pipeline_mode<synchronous>, transform_indices = @transform_7, window_bounds = array<i64: 1, 32>}, {pipeline_mode = #tpu.pipeline_mode<synchronous>, transform_indices = @transform_8, window_bounds = array<i64: 1, 32>}, {pipeline_mode = #tpu.pipeline_mode<synchronous>, transform_indices = @transform_9, window_bounds = array<i64: 1, 32>}, {pipeline_mode = #tpu.pipeline_mode<synchronous>, transform_indices = @transform_10, window_bounds = array<i64: 1, 32>}, {pipeline_mode = #tpu.pipeline_mode<synchronous>, transform_indices = @transform_11, window_bounds = array<i64: 32, 64>}, {pipeline_mode = #tpu.pipeline_mode<synchronous>, transform_indices = @transform_12, window_bounds = array<i64: 1, 64>}, {pipeline_mode = #tpu.pipeline_mode<synchronous>, transform_indices = @transform_13, window_bounds = array<i64: 64, 32>}, {pipeline_mode = #tpu.pipeline_mode<synchronous>, transform_indices = @transform_14, window_bounds = array<i64: 1, 32>}, {transform_indices = @transform_15, window_bounds = array<i64: 1, 8, 32>}]} {
    %c0_i32 = arith.constant 0 : i32
    %0 = arith.cmpi eq, %arg2, %c0_i32 : i32
    %1 = arith.extui %0 : i1 to i32
    %c0_i32_0 = arith.constant 0 : i32
    %2 = arith.cmpi ne, %1, %c0_i32_0 : i32
    scf.if %2 {
      %cst_41 = arith.constant -1.000000e+30 : f32
      %46 = vector.broadcast %cst_41 : f32 to vector<4x8x1xf32>
      %c0_42 = arith.constant 0 : index
      %c0_43 = arith.constant 0 : index
      %c0_44 = arith.constant 0 : index
      %47 = vector.load %arg19[%c0_42, %c0_43, %c0_44] : memref<4x8x1xf32, #tpu.memory_space<vmem>>, vector<4x8x1xf32>
      tpu.vector_store %arg19[%c0_42, %c0_43, %c0_44], %46 {strides = array<i32>} : memref<4x8x1xf32, #tpu.memory_space<vmem>>, vector<4x8x1xf32>,
      %cst_45 = arith.constant 0.000000e+00 : f32
      %48 = vector.broadcast %cst_45 : f32 to vector<4x8x1xf32>
      %c0_46 = arith.constant 0 : index
      %c0_47 = arith.constant 0 : index
      %c0_48 = arith.constant 0 : index
      %49 = vector.load %arg20[%c0_46, %c0_47, %c0_48] : memref<4x8x1xf32, #tpu.memory_space<vmem>>, vector<4x8x1xf32>
      tpu.vector_store %arg20[%c0_46, %c0_47, %c0_48], %48 {strides = array<i32>} : memref<4x8x1xf32, #tpu.memory_space<vmem>>, vector<4x8x1xf32>,
      %cst_49 = arith.constant 0.000000e+00 : f32
      %50 = vector.broadcast %cst_49 : f32 to vector<4x8x8xf32>
      %c0_50 = arith.constant 0 : index
      %c0_51 = arith.constant 0 : index
      %c0_52 = arith.constant 0 : index
      %51 = vector.load %arg21[%c0_50, %c0_51, %c0_52] : memref<4x8x8xf32, #tpu.memory_space<vmem>>, vector<4x8x8xf32>
      tpu.vector_store %arg21[%c0_50, %c0_51, %c0_52], %50 {strides = array<i32>} : memref<4x8x8xf32, #tpu.memory_space<vmem>>, vector<4x8x8xf32>,
    } else {
    }
    %c0 = arith.constant 0 : index
    %c0_1 = arith.constant 0 : index
    %c0_2 = arith.constant 0 : index
    %3 = vector.load %arg7[%c0, %c0_1, %c0_2] : memref<1x8x8xf32, #tpu.memory_space<vmem>>, vector<1x8x8xf32>
    %4 = vector.shape_cast %3 : vector<1x8x8xf32> to vector<8x8xf32>
    %cst = arith.constant 0.000000e+00 : f32
    %5 = vector.broadcast %cst : f32 to vector<8x8xf32>
    %6 = arith.cmpf oeq, %4, %5 : vector<8x8xf32>
    %cst_3 = arith.constant -1.000000e+20 : f32
    %cst_4 = arith.constant 0.000000e+00 : f32
    %7 = vector.broadcast %cst_3 : f32 to vector<8x8xf32>
    %8 = vector.broadcast %cst_4 : f32 to vector<8x8xf32>
    %9 = arith.select %6, %7, %8 : vector<8x8xi1>, vector<8x8xf32>
    %c0_5 = arith.constant 0 : index
    %c0_6 = arith.constant 0 : index
    %c0_7 = arith.constant 0 : index
    %c0_8 = arith.constant 0 : index
    %10 = vector.load %arg3[%c0_5, %c0_6, %c0_7, %c0_8] : memref<1x4x8x8xbf16, #tpu.memory_space<vmem>>, vector<1x4x8x8xbf16>
    %11 = vector.shape_cast %10 : vector<1x4x8x8xbf16> to vector<4x8x8xbf16>
    %c0_9 = arith.constant 0 : index
    %c0_10 = arith.constant 0 : index
    %c0_11 = arith.constant 0 : index
    %c0_12 = arith.constant 0 : index
    %12 = vector.load %arg4[%c0_9, %c0_10, %c0_11, %c0_12] : memref<1x4x8x8xbf16, #tpu.memory_space<vmem>>, vector<1x4x8x8xbf16>
    %13 = vector.shape_cast %12 : vector<1x4x8x8xbf16> to vector<4x8x8xbf16>
    "tpu.trace_start"() <{level = 10 : i32, message = "hqd,hkd->hqk"}> : () -> ()
    %cst_13 = arith.constant dense<0.000000e+00> : vector<4x8x8xf32>
    %14 = tpu.matmul %11, %13, %cst_13 {dimension_numbers = #tpu.dot_dimension_numbers<[2], [2], [1], [1], [0, 0, 0, 1, 1, 1], [0], [0]>} : vector<4x8x8xbf16>, vector<4x8x8xbf16>, vector<4x8x8xf32> -> vector<4x8x8xf32>
    "tpu.trace_stop"() : () -> ()
    %15 = vector.shape_cast %9 : vector<8x8xf32> to vector<1x8x8xf32>
    %16 = vector.broadcast %15 : vector<1x8x8xf32> to vector<4x8x8xf32>
    %17 = arith.addf %14, %16 : vector<4x8x8xf32>
    %c0_14 = arith.constant 0 : index
    %c0_15 = arith.constant 0 : index
    %c0_16 = arith.constant 0 : index
    %18 = vector.load %arg19[%c0_14, %c0_15, %c0_16] : memref<4x8x1xf32, #tpu.memory_space<vmem>>, vector<4x8x1xf32>
    %cst_17 = arith.constant dense<0xFF800000> : vector<4x8xf32>
    %19 = vector.multi_reduction <maximumf>, %17, %cst_17 [2] : vector<4x8x8xf32> to vector<4x8xf32>
    %20 = vector.shape_cast %19 : vector<4x8xf32> to vector<4x8x1xf32>
    %21 = arith.maximumf %18, %20 : vector<4x8x1xf32>
    %22 = arith.subf %18, %21 : vector<4x8x1xf32>
    %23 = math.exp %22 : vector<4x8x1xf32>
    %24 = vector.broadcast %21 : vector<4x8x1xf32> to vector<4x8x8xf32>
    %25 = arith.subf %17, %24 : vector<4x8x8xf32>
    %26 = math.exp %25 : vector<4x8x8xf32>
    %c0_18 = arith.constant 0 : index
    %c0_19 = arith.constant 0 : index
    %c0_20 = arith.constant 0 : index
    %27 = vector.load %arg20[%c0_18, %c0_19, %c0_20] : memref<4x8x1xf32, #tpu.memory_space<vmem>>, vector<4x8x1xf32>
    %28 = arith.mulf %23, %27 : vector<4x8x1xf32>
    %cst_21 = arith.constant dense<0.000000e+00> : vector<4x8xf32>
    %29 = vector.multi_reduction <add>, %26, %cst_21 [2] : vector<4x8x8xf32> to vector<4x8xf32>
    %30 = vector.shape_cast %29 : vector<4x8xf32> to vector<4x8x1xf32>
    %31 = arith.addf %28, %30 : vector<4x8x1xf32>
    %c0_22 = arith.constant 0 : index
    %c0_23 = arith.constant 0 : index
    %c0_24 = arith.constant 0 : index
    %32 = vector.load %arg20[%c0_22, %c0_23, %c0_24] : memref<4x8x1xf32, #tpu.memory_space<vmem>>, vector<4x8x1xf32>
    tpu.vector_store %arg20[%c0_22, %c0_23, %c0_24], %31 {strides = array<i32>} : memref<4x8x1xf32, #tpu.memory_space<vmem>>, vector<4x8x1xf32>,
    %c0_25 = arith.constant 0 : index
    %c0_26 = arith.constant 0 : index
    %c0_27 = arith.constant 0 : index
    %33 = vector.load %arg21[%c0_25, %c0_26, %c0_27] : memref<4x8x8xf32, #tpu.memory_space<vmem>>, vector<4x8x8xf32>
    %34 = vector.broadcast %23 : vector<4x8x1xf32> to vector<4x8x8xf32>
    %35 = arith.mulf %34, %33 : vector<4x8x8xf32>
    %36 = arith.truncf %26 : vector<4x8x8xf32> to vector<4x8x8xbf16>
    %c0_28 = arith.constant 0 : index
    %c0_29 = arith.constant 0 : index
    %c0_30 = arith.constant 0 : index
    %c0_31 = arith.constant 0 : index
    %37 = vector.load %arg5[%c0_28, %c0_29, %c0_30, %c0_31] : memref<1x4x8x8xbf16, #tpu.memory_space<vmem>>, vector<1x4x8x8xbf16>
    %38 = vector.shape_cast %37 : vector<1x4x8x8xbf16> to vector<4x8x8xbf16>
    "tpu.trace_start"() <{level = 10 : i32, message = "hqk,hkd->hqd"}> : () -> ()
    %cst_32 = arith.constant dense<0.000000e+00> : vector<4x8x8xf32>
    %39 = tpu.matmul %36, %38, %cst_32 {dimension_numbers = #tpu.dot_dimension_numbers<[2], [1], [1], [2], [0, 0, 0, 1, 1, 2], [0], [0]>} : vector<4x8x8xbf16>, vector<4x8x8xbf16>, vector<4x8x8xf32> -> vector<4x8x8xf32>
    "tpu.trace_stop"() : () -> ()
    %40 = arith.addf %35, %39 : vector<4x8x8xf32>
    %c0_33 = arith.constant 0 : index
    %c0_34 = arith.constant 0 : index
    %c0_35 = arith.constant 0 : index
    %41 = vector.load %arg21[%c0_33, %c0_34, %c0_35] : memref<4x8x8xf32, #tpu.memory_space<vmem>>, vector<4x8x8xf32>
    tpu.vector_store %arg21[%c0_33, %c0_34, %c0_35], %40 {strides = array<i32>} : memref<4x8x8xf32, #tpu.memory_space<vmem>>, vector<4x8x8xf32>,
    %c0_36 = arith.constant 0 : index
    %c0_37 = arith.constant 0 : index
    %c0_38 = arith.constant 0 : index
    %42 = vector.load %arg19[%c0_36, %c0_37, %c0_38] : memref<4x8x1xf32, #tpu.memory_space<vmem>>, vector<4x8x1xf32>
    tpu.vector_store %arg19[%c0_36, %c0_37, %c0_38], %21 {strides = array<i32>} : memref<4x8x1xf32, #tpu.memory_space<vmem>>, vector<4x8x1xf32>,
    %c0_i32_39 = arith.constant 0 : i32
    %43 = arith.cmpi eq, %arg2, %c0_i32_39 : i32
    %44 = arith.extui %43 : i1 to i32
    %c0_i32_40 = arith.constant 0 : i32
    %45 = arith.cmpi ne, %44, %c0_i32_40 : i32
    scf.if %45 {
      %c0_41 = arith.constant 0 : index
      %c0_42 = arith.constant 0 : index
      %c0_43 = arith.constant 0 : index
      %46 = vector.load %arg21[%c0_41, %c0_42, %c0_43] : memref<4x8x8xf32, #tpu.memory_space<vmem>>, vector<4x8x8xf32>
      %c0_44 = arith.constant 0 : index
      %c0_45 = arith.constant 0 : index
      %c0_46 = arith.constant 0 : index
      %47 = vector.load %arg20[%c0_44, %c0_45, %c0_46] : memref<4x8x1xf32, #tpu.memory_space<vmem>>, vector<4x8x1xf32>
      %48 = tpu.reciprocal %47 {approx = true} : vector<4x8x1xf32> -> vector<4x8x1xf32>
      %49 = vector.broadcast %48 : vector<4x8x1xf32> to vector<4x8x8xf32>
      %50 = arith.mulf %46, %49 : vector<4x8x8xf32>
      %cst_47 = arith.constant 0.000000e+00 : f32
      %51 = vector.broadcast %cst_47 : f32 to vector<8x32xf32>
      %52 = vector.extract_strided_slice %50 {offsets = [0, 0, 0], sizes = [1, 8, 8], strides = [1, 1, 1]} : vector<4x8x8xf32> to vector<1x8x8xf32>
      %53 = vector.shape_cast %52 : vector<1x8x8xf32> to vector<8x8xf32>
      %54 = arith.truncf %53 : vector<8x8xf32> to vector<8x8xbf16>
      %c0_48 = arith.constant 0 : index
      %c0_49 = arith.constant 0 : index
      %55 = vector.load %arg8[%c0_48, %c0_49] : memref<32x32xbf16, #tpu.memory_space<vmem>>, vector<8x32xbf16>
      %cst_50 = arith.constant dense<0.000000e+00> : vector<8x32xf32>
      %56 = tpu.matmul %54, %55, %cst_50 {dimension_numbers = #tpu.dot_dimension_numbers<[1], [0], [0], [1], [0, 0, 1, 1], [], []>} : vector<8x8xbf16>, vector<8x32xbf16>, vector<8x32xf32> -> vector<8x32xf32>
      %57 = arith.addf %51, %56 : vector<8x32xf32>
      %58 = vector.extract_strided_slice %50 {offsets = [1, 0, 0], sizes = [1, 8, 8], strides = [1, 1, 1]} : vector<4x8x8xf32> to vector<1x8x8xf32>
      %59 = vector.shape_cast %58 : vector<1x8x8xf32> to vector<8x8xf32>
      %60 = arith.truncf %59 : vector<8x8xf32> to vector<8x8xbf16>
      %c8 = arith.constant 8 : index
      %c0_51 = arith.constant 0 : index
      %61 = vector.load %arg8[%c8, %c0_51] : memref<32x32xbf16, #tpu.memory_space<vmem>>, vector<8x32xbf16>
      %cst_52 = arith.constant dense<0.000000e+00> : vector<8x32xf32>
      %62 = tpu.matmul %60, %61, %cst_52 {dimension_numbers = #tpu.dot_dimension_numbers<[1], [0], [0], [1], [0, 0, 1, 1], [], []>} : vector<8x8xbf16>, vector<8x32xbf16>, vector<8x32xf32> -> vector<8x32xf32>
      %63 = arith.addf %57, %62 : vector<8x32xf32>
      %64 = vector.extract_strided_slice %50 {offsets = [2, 0, 0], sizes = [1, 8, 8], strides = [1, 1, 1]} : vector<4x8x8xf32> to vector<1x8x8xf32>
      %65 = vector.shape_cast %64 : vector<1x8x8xf32> to vector<8x8xf32>
      %66 = arith.truncf %65 : vector<8x8xf32> to vector<8x8xbf16>
      %c16 = arith.constant 16 : index
      %c0_53 = arith.constant 0 : index
      %67 = vector.load %arg8[%c16, %c0_53] : memref<32x32xbf16, #tpu.memory_space<vmem>>, vector<8x32xbf16>
      %cst_54 = arith.constant dense<0.000000e+00> : vector<8x32xf32>
      %68 = tpu.matmul %66, %67, %cst_54 {dimension_numbers = #tpu.dot_dimension_numbers<[1], [0], [0], [1], [0, 0, 1, 1], [], []>} : vector<8x8xbf16>, vector<8x32xbf16>, vector<8x32xf32> -> vector<8x32xf32>
      %69 = arith.addf %63, %68 : vector<8x32xf32>
      %70 = vector.extract_strided_slice %50 {offsets = [3, 0, 0], sizes = [1, 8, 8], strides = [1, 1, 1]} : vector<4x8x8xf32> to vector<1x8x8xf32>
      %71 = vector.shape_cast %70 : vector<1x8x8xf32> to vector<8x8xf32>
      %72 = arith.truncf %71 : vector<8x8xf32> to vector<8x8xbf16>
      %c24 = arith.constant 24 : index
      %c0_55 = arith.constant 0 : index
      %73 = vector.load %arg8[%c24, %c0_55] : memref<32x32xbf16, #tpu.memory_space<vmem>>, vector<8x32xbf16>
      %cst_56 = arith.constant dense<0.000000e+00> : vector<8x32xf32>
      %74 = tpu.matmul %72, %73, %cst_56 {dimension_numbers = #tpu.dot_dimension_numbers<[1], [0], [0], [1], [0, 0, 1, 1], [], []>} : vector<8x8xbf16>, vector<8x32xbf16>, vector<8x32xf32> -> vector<8x32xf32>
      %75 = arith.addf %69, %74 : vector<8x32xf32>
      %c0_57 = arith.constant 0 : index
      %c0_58 = arith.constant 0 : index
      %76 = vector.load %arg9[%c0_57, %c0_58] : memref<1x32xf32, #tpu.memory_space<vmem>>, vector<1x32xf32>
      %77 = vector.broadcast %76 : vector<1x32xf32> to vector<8x32xf32>
      %78 = arith.addf %75, %77 : vector<8x32xf32>
      %c0_59 = arith.constant 0 : index
      %c0_60 = arith.constant 0 : index
      %c0_61 = arith.constant 0 : index
      %79 = vector.load %arg6[%c0_59, %c0_60, %c0_61] : memref<1x8x32xf32, #tpu.memory_space<vmem>>, vector<1x8x32xf32>
      %80 = vector.shape_cast %79 : vector<1x8x32xf32> to vector<8x32xf32>
      %81 = arith.addf %78, %80 : vector<8x32xf32>
      %c0_62 = arith.constant 0 : index
      %c0_63 = arith.constant 0 : index
      %82 = vector.load %arg10[%c0_62, %c0_63] : memref<1x32xf32, #tpu.memory_space<vmem>>, vector<1x32xf32>
      %c0_64 = arith.constant 0 : index
      %c0_65 = arith.constant 0 : index
      %83 = vector.load %arg11[%c0_64, %c0_65] : memref<1x32xf32, #tpu.memory_space<vmem>>, vector<1x32xf32>
      %cst_66 = arith.constant dense<0.000000e+00> : vector<8xf32>
      %84 = vector.multi_reduction <add>, %81, %cst_66 [1] : vector<8x32xf32> to vector<8xf32>
      %85 = vector.shape_cast %84 : vector<8xf32> to vector<8x1xf32>
      %cst_67 = arith.constant 3.200000e+01 : f32
      %86 = vector.broadcast %cst_67 : f32 to vector<8x1xf32>
      %87 = arith.divf %85, %86 : vector<8x1xf32>
      %88 = vector.broadcast %87 : vector<8x1xf32> to vector<8x32xf32>
      %89 = arith.subf %81, %88 : vector<8x32xf32>
      %90 = arith.mulf %89, %89 : vector<8x32xf32>
      %cst_68 = arith.constant dense<0.000000e+00> : vector<8xf32>
      %91 = vector.multi_reduction <add>, %90, %cst_68 [1] : vector<8x32xf32> to vector<8xf32>
      %92 = vector.shape_cast %91 : vector<8xf32> to vector<8x1xf32>
      %cst_69 = arith.constant 3.200000e+01 : f32
      %93 = vector.broadcast %cst_69 : f32 to vector<8x1xf32>
      %94 = arith.divf %92, %93 : vector<8x1xf32>
      %95 = vector.broadcast %87 : vector<8x1xf32> to vector<8x32xf32>
      %96 = arith.subf %81, %95 : vector<8x32xf32>
      %cst_70 = arith.constant 9.99999974E-6 : f32
      %97 = vector.broadcast %cst_70 : f32 to vector<8x1xf32>
      %98 = arith.addf %94, %97 : vector<8x1xf32>
      %99 = math.rsqrt %98 : vector<8x1xf32>
      %100 = vector.broadcast %99 : vector<8x1xf32> to vector<8x32xf32>
      %101 = arith.mulf %96, %100 : vector<8x32xf32>
      %102 = vector.broadcast %82 : vector<1x32xf32> to vector<8x32xf32>
      %103 = arith.mulf %101, %102 : vector<8x32xf32>
      %104 = vector.broadcast %83 : vector<1x32xf32> to vector<8x32xf32>
      %105 = arith.addf %103, %104 : vector<8x32xf32>
      %106 = arith.truncf %105 : vector<8x32xf32> to vector<8x32xbf16>
      %c0_71 = arith.constant 0 : index
      %c0_72 = arith.constant 0 : index
      %107 = vector.load %arg14[%c0_71, %c0_72] : memref<32x64xbf16, #tpu.memory_space<vmem>>, vector<32x64xbf16>
      %cst_73 = arith.constant dense<0.000000e+00> : vector<8x64xf32>
      %108 = tpu.matmul %106, %107, %cst_73 {dimension_numbers = #tpu.dot_dimension_numbers<[1], [0], [0], [1], [0, 0, 1, 1], [], []>} : vector<8x32xbf16>, vector<32x64xbf16>, vector<8x64xf32> -> vector<8x64xf32>
      %c0_74 = arith.constant 0 : index
      %c0_75 = arith.constant 0 : index
      %109 = vector.load %arg15[%c0_74, %c0_75] : memref<1x64xf32, #tpu.memory_space<vmem>>, vector<1x64xf32>
      %110 = vector.broadcast %109 : vector<1x64xf32> to vector<8x64xf32>
      %111 = arith.addf %108, %110 : vector<8x64xf32>
      %cst_76 = arith.constant 0.000000e+00 : f32
      %112 = vector.broadcast %cst_76 : f32 to vector<8x64xf32>
      %113 = arith.maximumf %111, %112 : vector<8x64xf32>
      %114 = arith.truncf %113 : vector<8x64xf32> to vector<8x64xbf16>
      %c0_77 = arith.constant 0 : index
      %c0_78 = arith.constant 0 : index
      %115 = vector.load %arg16[%c0_77, %c0_78] : memref<64x32xbf16, #tpu.memory_space<vmem>>, vector<64x32xbf16>
      %cst_79 = arith.constant dense<0.000000e+00> : vector<8x32xf32>
      %116 = tpu.matmul %114, %115, %cst_79 {dimension_numbers = #tpu.dot_dimension_numbers<[1], [0], [0], [1], [0, 0, 1, 1], [], []>} : vector<8x64xbf16>, vector<64x32xbf16>, vector<8x32xf32> -> vector<8x32xf32>
      %c0_80 = arith.constant 0 : index
      %c0_81 = arith.constant 0 : index
      %117 = vector.load %arg17[%c0_80, %c0_81] : memref<1x32xf32, #tpu.memory_space<vmem>>, vector<1x32xf32>
      %118 = vector.broadcast %117 : vector<1x32xf32> to vector<8x32xf32>
      %119 = arith.addf %116, %118 : vector<8x32xf32>
      %120 = arith.addf %119, %105 : vector<8x32xf32>
      %c0_82 = arith.constant 0 : index
      %c0_83 = arith.constant 0 : index
      %121 = vector.load %arg12[%c0_82, %c0_83] : memref<1x32xf32, #tpu.memory_space<vmem>>, vector<1x32xf32>
      %c0_84 = arith.constant 0 : index
      %c0_85 = arith.constant 0 : index
      %122 = vector.load %arg13[%c0_84, %c0_85] : memref<1x32xf32, #tpu.memory_space<vmem>>, vector<1x32xf32>
      %cst_86 = arith.constant dense<0.000000e+00> : vector<8xf32>
      %123 = vector.multi_reduction <add>, %120, %cst_86 [1] : vector<8x32xf32> to vector<8xf32>
      %124 = vector.shape_cast %123 : vector<8xf32> to vector<8x1xf32>
      %cst_87 = arith.constant 3.200000e+01 : f32
      %125 = vector.broadcast %cst_87 : f32 to vector<8x1xf32>
      %126 = arith.divf %124, %125 : vector<8x1xf32>
      %127 = vector.broadcast %126 : vector<8x1xf32> to vector<8x32xf32>
      %128 = arith.subf %120, %127 : vector<8x32xf32>
      %129 = arith.mulf %128, %128 : vector<8x32xf32>
      %cst_88 = arith.constant dense<0.000000e+00> : vector<8xf32>
      %130 = vector.multi_reduction <add>, %129, %cst_88 [1] : vector<8x32xf32> to vector<8xf32>
      %131 = vector.shape_cast %130 : vector<8xf32> to vector<8x1xf32>
      %cst_89 = arith.constant 3.200000e+01 : f32
      %132 = vector.broadcast %cst_89 : f32 to vector<8x1xf32>
      %133 = arith.divf %131, %132 : vector<8x1xf32>
      %134 = vector.broadcast %126 : vector<8x1xf32> to vector<8x32xf32>
      %135 = arith.subf %120, %134 : vector<8x32xf32>
      %cst_90 = arith.constant 9.99999974E-6 : f32
      %136 = vector.broadcast %cst_90 : f32 to vector<8x1xf32>
      %137 = arith.addf %133, %136 : vector<8x1xf32>
      %138 = math.rsqrt %137 : vector<8x1xf32>
      %139 = vector.broadcast %138 : vector<8x1xf32> to vector<8x32xf32>
      %140 = arith.mulf %135, %139 : vector<8x32xf32>
      %141 = vector.broadcast %121 : vector<1x32xf32> to vector<8x32xf32>
      %142 = arith.mulf %140, %141 : vector<8x32xf32>
      %143 = vector.broadcast %122 : vector<1x32xf32> to vector<8x32xf32>
      %144 = arith.addf %142, %143 : vector<8x32xf32>
      %c0_91 = arith.constant 0 : index
      %c0_92 = arith.constant 0 : index
      %c0_93 = arith.constant 0 : index
      %145 = vector.load %arg18[%c0_91, %c0_92, %c0_93] : memref<1x8x32xf32, #tpu.memory_space<vmem>>, vector<1x8x32xf32>
      %146 = vector.shape_cast %145 : vector<1x8x32xf32> to vector<8x32xf32>
      %147 = vector.shape_cast %144 : vector<8x32xf32> to vector<1x8x32xf32>
      tpu.vector_store %arg18[%c0_91, %c0_92, %c0_93], %147 {strides = array<i32>} : memref<1x8x32xf32, #tpu.memory_space<vmem>>, vector<1x8x32xf32>,
    } else {
    }
    return
  }
  func.func @transform_0(%arg0: i32, %arg1: i32, %arg2: i32) -> (i32, i32, i32, i32) {
    %c0_i32 = arith.constant 0 : i32
    %c0_i32_0 = arith.constant 0 : i32
    %c0_i32_1 = arith.constant 0 : i32
    return %arg0, %c0_i32, %arg1, %c0_i32_0 : i32, i32, i32, i32
  }
  func.func @transform_1(%arg0: i32, %arg1: i32, %arg2: i32) -> (i32, i32, i32, i32) {
    %c0_i32 = arith.constant 0 : i32
    %c0_i32_0 = arith.constant 0 : i32
    %c0_i32_1 = arith.constant 0 : i32
    return %arg0, %c0_i32, %arg2, %c0_i32_0 : i32, i32, i32, i32
  }
  func.func @transform_2(%arg0: i32, %arg1: i32, %arg2: i32) -> (i32, i32, i32, i32) {
    %c0_i32 = arith.constant 0 : i32
    %c0_i32_0 = arith.constant 0 : i32
    %c0_i32_1 = arith.constant 0 : i32
    return %arg0, %c0_i32, %arg2, %c0_i32_0 : i32, i32, i32, i32
  }
  func.func @transform_3(%arg0: i32, %arg1: i32, %arg2: i32) -> (i32, i32, i32) {
    %c0_i32 = arith.constant 0 : i32
    %c0_i32_0 = arith.constant 0 : i32
    return %arg0, %arg1, %c0_i32 : i32, i32, i32
  }
  func.func @transform_4(%arg0: i32, %arg1: i32, %arg2: i32) -> (i32, i32, i32) {
    %c0_i32 = arith.constant 0 : i32
    %c0_i32_0 = arith.constant 0 : i32
    return %c0_i32, %arg1, %arg2 : i32, i32, i32
  }
  func.func @transform_5(%arg0: i32, %arg1: i32, %arg2: i32) -> (i32, i32) {
    %c0_i32 = arith.constant 0 : i32
    %c0_i32_0 = arith.constant 0 : i32
    %c0_i32_1 = arith.constant 0 : i32
    return %c0_i32, %c0_i32_0 : i32, i32
  }
  func.func @transform_6(%arg0: i32, %arg1: i32, %arg2: i32) -> (i32, i32) {
    %c0_i32 = arith.constant 0 : i32
    %c0_i32_0 = arith.constant 0 : i32
    %c0_i32_1 = arith.constant 0 : i32
    return %c0_i32, %c0_i32_0 : i32, i32
  }
  func.func @transform_7(%arg0: i32, %arg1: i32, %arg2: i32) -> (i32, i32) {
    %c0_i32 = arith.constant 0 : i32
    %c0_i32_0 = arith.constant 0 : i32
    %c0_i32_1 = arith.constant 0 : i32
    return %c0_i32, %c0_i32_0 : i32, i32
  }
  func.func @transform_8(%arg0: i32, %arg1: i32, %arg2: i32) -> (i32, i32) {
    %c0_i32 = arith.constant 0 : i32
    %c0_i32_0 = arith.constant 0 : i32
    %c0_i32_1 = arith.constant 0 : i32
    return %c0_i32, %c0_i32_0 : i32, i32
  }
  func.func @transform_9(%arg0: i32, %arg1: i32, %arg2: i32) -> (i32, i32) {
    %c0_i32 = arith.constant 0 : i32
    %c0_i32_0 = arith.constant 0 : i32
    %c0_i32_1 = arith.constant 0 : i32
    return %c0_i32, %c0_i32_0 : i32, i32
  }
  func.func @transform_10(%arg0: i32, %arg1: i32, %arg2: i32) -> (i32, i32) {
    %c0_i32 = arith.constant 0 : i32
    %c0_i32_0 = arith.constant 0 : i32
    %c0_i32_1 = arith.constant 0 : i32
    return %c0_i32, %c0_i32_0 : i32, i32
  }
  func.func @transform_11(%arg0: i32, %arg1: i32, %arg2: i32) -> (i32, i32) {
    %c0_i32 = arith.constant 0 : i32
    %c0_i32_0 = arith.constant 0 : i32
    %c0_i32_1 = arith.constant 0 : i32
    return %c0_i32, %c0_i32_0 : i32, i32
  }
  func.func @transform_12(%arg0: i32, %arg1: i32, %arg2: i32) -> (i32, i32) {
    %c0_i32 = arith.constant 0 : i32
    %c0_i32_0 = arith.constant 0 : i32
    %c0_i32_1 = arith.constant 0 : i32
    return %c0_i32, %c0_i32_0 : i32, i32
  }
  func.func @transform_13(%arg0: i32, %arg1: i32, %arg2: i32) -> (i32, i32) {
    %c0_i32 = arith.constant 0 : i32
    %c0_i32_0 = arith.constant 0 : i32
    %c0_i32_1 = arith.constant 0 : i32
    return %c0_i32, %c0_i32_0 : i32, i32
  }
  func.func @transform_14(%arg0: i32, %arg1: i32, %arg2: i32) -> (i32, i32) {
    %c0_i32 = arith.constant 0 : i32
    %c0_i32_0 = arith.constant 0 : i32
    %c0_i32_1 = arith.constant 0 : i32
    return %c0_i32, %c0_i32_0 : i32, i32
  }
  func.func @transform_15(%arg0: i32, %arg1: i32, %arg2: i32) -> (i32, i32, i32) {
    %c0_i32 = arith.constant 0 : i32
    %c0_i32_0 = arith.constant 0 : i32
    return %arg0, %arg1, %c0_i32 : i32, i32, i32
  }
}

</mosaic_0001>

<bundles_post_ra>
// kernel: tpu_custom_call.1
= control target key start
LH: loop header
LB: loop body
LE: loop exit
PB: predicated region body
PF: predicated region fallthrough
CT: control target
= control target key end

     0   :  { %s2937_s0 = inlined_call_operand.vmem [shape: bf16[2,4,8,8], index: 0, kind: input, shape index: {}]   ;;  %s2938_s1 = inlined_call_operand.hbm [shape: bf16[2,4,8,8], index: 1, kind: input, shape index: {}]   ;;  %s2939_s2 = inlined_call_operand.hbm [shape: bf16[2,4,8,8], index: 2, kind: input, shape index: {}]   ;;  %s2940_s3 = inlined_call_operand.vmem [shape: f32[2,8,32], index: 3, kind: input, shape index: {}]   ;;  %s2941_s4 = inlined_call_operand.hbm [shape: f32[1,8,8], index: 4, kind: input, shape index: {}]   ;;  %s2942_s5 = inlined_call_operand.hbm [shape: bf16[32,32], index: 5, kind: input, shape index: {}]   ;;  %s2943_s6 = inlined_call_operand.vmem [shape: f32[1,32], index: 6, kind: input, shape index: {}]   ;;  %s2944_s7 = inlined_call_operand.vmem [shape: f32[1,32], index: 7, kind: input, shape index: {}]   ;;  %s2945_s8 = inlined_call_operand.vmem [shape: f32[1,32], index: 8, kind: input, shape index: {}]   ;;  %s2946_s9 = inlined_call_operand.vmem [shape: f32[1,32], index: 9, kind: input, shape index: {}]   ;;  %s2947_s10 = inlined_call_operand.vmem [shape: f32[1,32], index: 10, kind: input, shape index: {}]   ;;  %s2948_s11 = inlined_call_operand.hbm [shape: bf16[32,64], index: 11, kind: input, shape index: {}]   ;;  %s2949_s12 = inlined_call_operand.vmem [shape: f32[1,64], index: 12, kind: input, shape index: {}]   ;;  %s2950_s13 = inlined_call_operand.vmem [shape: bf16[64,32], index: 13, kind: input, shape index: {}]   ;;  %s2951_s14 = inlined_call_operand.vmem [shape: f32[1,32], index: 14, kind: input, shape index: {}]   ;;  %s2952_s15 = inlined_call_operand.hbm [shape: f32[2,8,32], index: 15, kind: output, shape index: {}]  }
   0x1   :  { %2967 = sst [smem:[#allocation25_spill]] %s2938_s1 }
   0x2   :  { %2968 = sst [smem:[#allocation26_spill]] %s2941_s4 }
   0x3   :  { %2969 = sst [smem:[#allocation27_spill]] %s2942_s5 }
   0x4   :  { %2970 = sst [smem:[#allocation28_spill]] %s2946_s9 }
   0x5   :  { %2971 = sst [smem:[#allocation29_spill]] %s2947_s10 }
   0x6   :  { %2972 = sst [smem:[#allocation30_spill]] %s2948_s11 }
   0x7   :  { %2973 = sst [smem:[#allocation31_spill]] %s2949_s12 }
   0x8   :  { %2974 = sst [smem:[#allocation32_spill]] %s2951_s14 }
   0x9   :  { %2975 = sst [smem:[#allocation33_spill]] %s2952_s15 }
   0xa   :  { %20 = vsyncpa [#allocation6], 0 }
   0xb   :  { %22 = vsyncpa [#allocation6 + $0x1], 0 }
   0xc   :  { %23 = vsyncpa [#allocation9], 0 }
   0xd   :  { %25 = vsyncpa [#allocation9 + $0x1], 0 }
   0xe   :  { %26 = vsyncpa [#allocation12], 0 }
   0xf   :  { %27 = vsyncpa [#allocation7], 0 }
  0x10   :  { %29 = vsyncpa [#allocation7 + $0x1], 0  ;;  %s2522_s18 = smov 0   ;;  %s2524_s19 = smov 0  }
  0x11   :  { %s2526_s20 = smov 0   ;;  %s2528_s21 = smov 0  }
  0x12   :  { %s2530_s22 = smov 0   ;;  %s2532_s23 = smov 0  }
  0x13 LB: > { %2976 = sst [smem:[#allocation20_spill]] %s2408_s18  ;;  %s2553_s24 = sadd.s32 4294967295, %s2428_s23   ;;  %s2428_s23 = sphi %s2532_s23, %s35_s23   ;;  %s2424_s22 = sphi %s2530_s22, %s3011_s22   ;;  %s2420_s21 = sphi %s2528_s21, %s3010_s21   ;;  %s2416_s20 = sphi %s2526_s20, %s3014_s20   ;;  %s2412_s19 = sphi %s2524_s19, %s3013_s19   ;;  %s2408_s18 = sphi %s2522_s18, %s3012_s18  }
  0x14   : > { %2977 = sst [smem:[#allocation21_spill]] %s2424_s22  ;;  %s1902_s25 = sadd.s32 4294967294, %s2428_s23  }
  0x15   : > { %p104_p0 = scmp.ne.s32.totalorder %s2412_s19, %s2408_s18  ;;  %p2956_p1 = scmp.eq.s32.totalorder %s2553_s24, 0 }
  0x16   : > { %p430_p3 = scmp.eq.s32.totalorder %s1902_s25, 1  ;;  %p1903_p5 = scmp.ge.s32.totalorder %s2428_s23, 1 }
  0x17   : > { %p2562_p4 = por %p2956_p1, %p104_p0  ;;  %p437_p7 = scmp.lt.s32.totalorder %s2428_s23, 3 }
  0x18   : > { %p2567_p6 = por %p430_p3, %p104_p0  ;;  %s2430_s29 = smov [#allocation10]  }
  0x19   : > { %s2978_s26 = scalar_select %p2562_p4, 1, 0 }
  0x1a   : > { %s2979_s27 = scalar_select %p2567_p6, 1, 0 }
  0x1b   : > { %p2572_p8 = pnand %p1903_p5, %p437_p7  ;;  %s453_s30 = sshll.u32 %s2430_s29, 4  ;;  %s454_s30 = int_to_ptr.vmem [resolvable:$true] %s453_s30 }
  0x1c   : > { %2980 = sst [smem:[#allocation22_spill]] %s2979_s27  ;;  %s2431_s16 = smov [#allocation11]  }
  0x1d   : > { %s2981_s28 = scalar_select %p2572_p8, 1, 0 }
  0x1e   : > { %p2078_p10 = pneg %p2572_p8  ;;  %s463_s17 = sshll.u32 %s2431_s16, 4  ;;  %s464_s17 = int_to_ptr.vmem [resolvable:$true] %s463_s17 }
  0x1f   : > { %s2432_s27 = smov [#allocation13]   ;;  %s2213_s15 = scalar_lea.vmem %s454_s30, 128 }
  0x20   : > { %p2581_p11 = pnand %p2078_p10, %p2956_p1  ;;  %s491_s18 = sshll.u32 %s2432_s27, 4  ;;  %s492_s18 = int_to_ptr.vmem [resolvable:$true] %s491_s18 }
  0x21   : > { %p2214_p13 = scmp.ne.s32.totalorder %s454_s30, %s2213_s15  ;;  %p2221_p5 = scmp.lt.s32.totalorder %s454_s30, %s454_s30 }
  0x22   : > { %p2204_p12 = pneg %p2581_p11  ;;  %p2222_p7 = scmp.lt.s32.totalorder %s2213_s15, %s2213_s15 }
  0x24   : > { %p2216_p0 = pnand %p2214_p13, %p2204_p12  ;;  %p2223_p9 = por %p2222_p7, %p2221_p5 }
  0x26   : > { %p2217_p3 = pneg %p2216_p0 }
  0x28   : > { %p2224_p10 = pnand %p2223_p9, %p2217_p3 }
  0x2a   : > { %2227 = shalt.err (!%p2224_p10)
}
  0x2b   : > { %s2983_s4 = sld [smem:[#allocation26_spill]]  ;;  %s2239_s27 = scalar_lea.vmem %s464_s17, 256 }
  0x2c   : > { %p2240_p1 = scmp.ne.s32.totalorder %s464_s17, %s2239_s27  ;;  %p2247_p13 = scmp.lt.s32.totalorder %s464_s17, %s464_s17 }
  0x2d   : > { %p2248_p0 = scmp.lt.s32.totalorder %s2239_s27, %s2239_s27 }
  0x2e   : > { %p2242_p2 = pnand %p2240_p1, %p2204_p12 }
  0x2f   : > { %p2249_p4 = por %p2248_p0, %p2247_p13 }
  0x30   : > { %p2243_p6 = pneg %p2242_p2 }
  0x31   : > { %2081 = dma.hbm_to_vmem [thread:$0]  (!%p2581_p11), %s2983_s4, 128, %s454_s30, [#allocation9]  }
  0x32   : > { %p2250_p8 = pnand %p2249_p4, %p2243_p6 }
  0x34   : > { %2253 = shalt.err (!%p2250_p8)
}
  0x35   : > { %s2959_s15 = smov 64   ;;  %s2961_s10 = smov 4  }
  0x36   : > { %s2984_s5 = sld [smem:[#allocation27_spill]]  ;;  %s2265_s16 = scalar_lea.vmem %s492_s18, 256 }
  0x37   : > { %p2266_p1 = scmp.ne.s32.totalorder %s492_s18, %s2265_s16  ;;  %p2273_p6 = scmp.lt.s32.totalorder %s492_s18, %s492_s18 }
  0x38   : > { %p2274_p8 = scmp.lt.s32.totalorder %s2265_s16, %s2265_s16 }
  0x39   : > { %p2268_p2 = pnand %p2266_p1, %p2204_p12 }
  0x3a   : > { %p2275_p9 = por %p2274_p8, %p2273_p6 }
  0x3b   : > { %p2269_p4 = pneg %p2268_p2 }
  0x3c   : > { %2084 = dma.hbm_to_vmem [thread:$0]  (!%p2581_p11), %s2984_s5, 256, %s464_s17, [#allocation12], %s2959_s15, %s2959_s15, %s2961_s10  }
  0x3d   : > { %p2276_p3 = pnand %p2275_p9, %p2269_p4 }
  0x3f   : > { %2279 = shalt.err (!%p2276_p3)
}
  0x40   : > { %s2985_s11 = sld [smem:[#allocation30_spill]]  ;;  %s91_s17 = sadd.s32 1, %s2416_s20 }
  0x41   : > { %s54_s25 = sadd.s32 1, %s2424_s22  ;;  %p98_p12 = scmp.ne.s32.totalorder %s2416_s20, %s2412_s19 }
  0x42   : > { %p56_p5 = scmp.ge.s32.totalorder %s54_s25, 2  ;;  %p99_p7 = scmp.eq.s32.totalorder %s2428_s23, 0 }
  0x43   : > { %p2986_p10 = scmp.eq.s32.totalorder %s2553_s24, 1  ;;  %p2102_p0 = scmp.lt.s32.totalorder %s2428_s23, 2 }
  0x44   : > { %s3016_s25 = smov (%p56_p5, %s54_s25), 0  ;;  %p100_p1 = por %p99_p7, %p98_p12 }
  0x45   : > { %p2624_p13 = por %p2986_p10, %p98_p12  ;;  %2989 = sst [smem:[#allocation24_spill]] %s3016_s25 }
  0x46   : > { %2087 = dma.hbm_to_vmem [thread:$0]  (!%p2581_p11), %s2985_s11, 256, %s492_s18, [#allocation12], %s2959_s15, %s2959_s15, %s2961_s10  }
  0x47   : > { %s2987_s29 = scalar_select %p2624_p13, 1, 0 }
  0x48   : > { %s525_s16 = sand.u32 1, %s2416_s20   ;;  %s86_s27 = ssub.s32 %s2424_s22, %s3016_s25 }
  0x49   : > { %2988 = sst [smem:[#allocation23_spill]] %s2987_s29  ;;  %p89_p2 = scmp.eq.s32.totalorder %s86_s27, 0 }
  0x4a   : > { %s1908_s18 = sshll.u32 %s525_s16, 4  ;;  %s1954_s30 = sshll.u32 %s2424_s22, 8 }
  0x4b   : > { %s2636_s15 = scalar_select %p89_p2, %s2416_s20, %s91_s17  }
  0x4c   : > { %s2990_s1 = sld [smem:[#allocation25_spill]]  ;;  %s529_s11 = scalar_lea.vmem [#allocation5], %s1908_s18 }
  0x4d   : > { %s537_s9 = sshll.u32 %s529_s11, 4  ;;  %p2643_p11 = pnand %p2102_p0, %p100_p1  ;;  %s538_s9 = int_to_ptr.vmem [resolvable:$true] %s537_s9 }
  0x4e   : > { %s2650_s27 = scalar_lea.hbm %s2939_s2, %s1954_s30  ;;  %s551_s17 = scalar_lea.vmem [#allocation8], %s1908_s18 }
  0x4f   : > { %s559_s25 = sshll.u32 %s551_s17, 4  ;;  %s526_s22 = scalar_lea.sflag [#allocation6], %s525_s16  ;;  %s560_s25 = int_to_ptr.vmem [resolvable:$true] %s559_s25 }
  0x50   : > { %p2282_p4 = pneg %p2643_p11  ;;  %s2293_s4 = scalar_lea.vmem %s538_s9, 256 }
  0x51   : > { %p2294_p6 = scmp.ne.s32.totalorder %s538_s9, %s2293_s4  ;;  %s2435_s10 = smov [#allocation5]  }
  0x52   : > { %s536_s5 = scalar_lea.hbm %s2990_s1, %s1954_s30  ;;  %s2298_s11 = sshll.u32 %s2435_s10, 4  ;;  %s2299_s11 = int_to_ptr.vmem [resolvable:$false] %s2298_s11 }
  0x53   : > { %p2296_p8 = pnand %p2294_p6, %p2282_p4  ;;  %s2300_s1 = scalar_lea.vmem %s2299_s11, 512 }
  0x54   : > { %p2301_p3 = scmp.lt.s32.totalorder %s538_s9, %s2299_s11  ;;  %p2302_p12 = scmp.lt.s32.totalorder %s2300_s1, %s2293_s4 }
  0x55   : > { %p2297_p9 = pneg %p2296_p8 }
  0x56   : > { %p2303_p5 = por %p2302_p12, %p2301_p3 }
  0x58   : > { %p2304_p7 = pnand %p2303_p5, %p2297_p9 }
  0x5a   : > { %2307 = shalt.err (!%p2304_p7)
}
  0x5b   : > { %s2992_s12 = smov 4   ;;  %s2993_s14 = smov 64  }
  0x5c   : > { %2091 = dma.hbm_to_vmem [thread:$0]  (!%p2643_p11), %s536_s5, 256, %s538_s9, %s526_s22, %s2993_s14, %s2993_s14, %s2992_s12  }
  0x5d   : > { %s547_s16 = sand.u32 1, %s2428_s23   ;;  %s2321_s30 = scalar_lea.vmem %s560_s25, 256 }
  0x5e   : > { %s548_s18 = scalar_lea.sflag [#allocation9], %s547_s16  ;;  %p2322_p10 = scmp.ne.s32.totalorder %s560_s25, %s2321_s30 }
  0x5f   : > { %s2436_s1 = smov [#allocation8]  }
  0x60   : > { %p2324_p0 = pnand %p2322_p10, %p2282_p4  ;;  %s2326_s17 = sshll.u32 %s2436_s1, 4  ;;  %s2327_s17 = int_to_ptr.vmem [resolvable:$false] %s2326_s17 }
  0x61   : > { %s2328_s4 = scalar_lea.vmem %s2327_s17, 512  ;;  %p2329_p2 = scmp.lt.s32.totalorder %s560_s25, %s2327_s17 }
  0x62   : > { %p2325_p1 = pneg %p2324_p0  ;;  %p2330_p6 = scmp.lt.s32.totalorder %s2328_s4, %s2321_s30 }
  0x64   : > { %p2331_p8 = por %p2330_p6, %p2329_p2 }
  0x66   : > { %p2332_p9 = pnand %p2331_p8, %p2325_p1 }
  0x68   : > { %2335 = shalt.err (!%p2332_p9)
}
  0x69   : > { %2094 = dma.hbm_to_vmem [thread:$0]  (!%p2643_p11), %s2650_s27, 256, %s560_s25, %s548_s18, %s2993_s14, %s2993_s14, %s2992_s12  }
  0x6a   : > { %p2994_p3 = scmp.ne.s32.totalorder %s2981_s28, 0 }
  0x6b   : > { %s2675_s5 = sand.u32 (!%p2994_p3), 1, %s2412_s19   ;;  %p2995_p4 = scmp.ne.s32.totalorder (!%p2994_p3), %s2978_s26, 0 }
  0x6c   : > { %581 = sbr.rel (%p2994_p3) target bundleno = 2388 (0x954), region = 80  ;;  %s1915_s9 = sshll.u32 (!%p2994_p3), %s2675_s5, 4 }
  0x6d   : > { %s584_s22 = scalar_lea.sflag (!%p2994_p3), [#allocation6], %s2675_s5  ;;  %s2679_s10 = scalar_lea.vmem (!%p2994_p3), [#allocation5], %s1915_s9 }
  0x71   : > { %2387 = dma.done.wait (%p2995_p4), %s584_s22, 256  }
  0x72   : > { %2389 = vsyncadd (%p2995_p4), %s584_s22, 4294967040  ;;  %s592_s25 = sand.u32 1, %s2553_s24   ;;  %s2686_s29 = scalar_lea.vmem [#allocation8], %s1915_s9 }
  0x73   : > { %s593_s28 = scalar_lea.sflag [#allocation9], %s592_s25 }
  0x74   : > { %2391 = dma.done.wait (%p2995_p4), %s593_s28, 256  }
  0x75   : > { %2393 = vsyncadd (%p2995_p4), %s593_s28, 4294967040  ;;  %p2996_p11 = scmp.eq.s32.totalorder %s2553_s24, 0 }
  0x77   : > { %2395 = dma.done.wait (%p2996_p11), [#allocation9], 128   ;;  %p2997_p12 = pmov %p2996_p11 }
  0x78   : > { %p2998_p5 = pmov %p2996_p11 }
  0x79   : > { %2397 = vsyncadd (%p2997_p12), [#allocation9], 4294967168 }
  0x7a   : > { %2399 = dma.done.wait (%p2998_p5), [#allocation12], 512   ;;  %p2999_p7 = pmov %p2998_p5 }
  0x7b   : > { %vm704_vm0 = vcmask 64512   ;;  %p675_p10 = scmp.lt.s32.totalorder %s2420_s21, 1  ;;  %v2437_v0 = vmov 0.0   ;;  %vm2438_vm1 = vmmov 0   ;;  %v716_v1 = vld [vmem:[%s2679_s10] sm:$0xf] }
  0x7c   : > { %2401 = vsyncadd (%p2999_p7), [#allocation12], 4294966784  ;;  %1984 = vmatprep.subr.bf16.mxu1 %v2437_v0  ;;  %705 = vst.msk [vmem:[#allocation4] sm:$0xff] %vm704_vm0, %v2437_v0  ;;  %1986 = vmatprep.mubr.msk.bf16.mxu1 %vm2438_vm1, %v2437_v0  ;;  %v718_v2 = vld [vmem:[%s2679_s10 + $0x8] sm:$0xf]  ;;  %v725_v3 = vsel %vm704_vm0, %v716_v1, 0 }
  0x7d   : > { %706 = vst.msk [vmem:[#allocation4 + $0x8] sm:$0xff] %vm704_vm0, %v2437_v0  ;;  %707 = vst.msk [vmem:[#allocation4 + $0x10] sm:$0xff] %vm704_vm0, %v2437_v0  ;;  %1996 = vmatprep.subr.bf16.mxu0 %v2437_v0  ;;  %s2714_s24 = scalar_select %p675_p10, %s2420_s21, 1  ;;  %1998 = vmatprep.mubr.msk.bf16.mxu0 %vm2438_vm1, %v2437_v0  ;;  %v817_v4 = vsel %vm704_vm0, %v718_v2, 0  ;;  %v717_v5 = vld [vmem:[%s2679_s10 + $0x4] sm:$0xf] }
  0x7e   : > { %708 = vst.msk [vmem:[#allocation4 + $0x18] sm:$0xff] %vm704_vm0, %v2437_v0  ;;  %1985 = vmatpush3.bf16.xpose.msra.mxu1 %v725_v3  ;;  %1997 = vmatpush3.bf16.xpose.msra.mxu0 %v817_v4  ;;  %v771_v7 = vsel %vm704_vm0, %v717_v5, 0  ;;  %v719_v9 = vld [vmem:[%s2679_s10 + $0xc] sm:$0xf]  ;;  %vm695_vm2 = vcmask 7168   ;;  %v709_v14 = vld [vmem:[#allocation10] sm:$0xff] }
  0x7f   : > { %s1956_s26 = sshll.u32 %s2714_s24, 4  ;;  %1990 = vmatprep.subr.bf16.mxu1 %v2437_v0  ;;  %2008 = vmatprep.subr.bf16.mxu0 %v2437_v0  ;;  %v863_v11 = vsel %vm704_vm0, %v719_v9, 0  ;;  %v2439_v13 = vmov -1e+30   ;;  %700 = vst.msk [vmem:[#allocation3] sm:$0xff] %vm695_vm2, %v2437_v0  ;;  %701 = vst.msk [vmem:[#allocation3 + $0x8] sm:$0xff] %vm695_vm2, %v2437_v0 }
  0x80   : > { %s682_s12 = scalar_lea.vmem %s2937_s0, %s1956_s26  ;;  %696 = vst.msk [vmem:[#allocation2] sm:$0xff] %vm695_vm2, %v2439_v13  ;;  %697 = vst.msk [vmem:[#allocation2 + $0x8] sm:$0xff] %vm695_vm2, %v2439_v13  ;;  %vm710_vm3 = vcmp.eq.f32.partialorder %v709_v14, 0.0  ;;  %v2440_v34 = vmov 0   ;;  %v1030_v54 = vld [vmem:[%s2686_s29] sm:$0xf] }
  0x81   : > { %v712_v6 = vld [vmem:[%s682_s12] sm:$0xf]  ;;  %v714_v8 = vld [vmem:[%s682_s12 + $0x8] sm:$0xf]  ;;  %v713_v10 = vld [vmem:[%s682_s12 + $0x4] sm:$0xf]  ;;  %2164 = vset.pattern.permute.xlu0 %v2440_v34  ;;  %2165 = vset.pattern.permute.xlu1 %v2440_v34 }
  0x82   : > { %v715_v12 = vld [vmem:[%s682_s12 + $0xc] sm:$0xf]  ;;  %698 = vst.msk [vmem:[#allocation2 + $0x10] sm:$0xff] %vm695_vm2, %v2439_v13  ;;  %699 = vst.msk [vmem:[#allocation2 + $0x18] sm:$0xff] %vm695_vm2, %v2439_v13  ;;  %v711_v15 = vsel %vm710_vm3, -1e+20, %v2437_v0 }
  0x83   : > { %702 = vst.msk [vmem:[#allocation3 + $0x10] sm:$0xff] %vm695_vm2, %v2437_v0  ;;  %703 = vst.msk [vmem:[#allocation3 + $0x18] sm:$0xff] %vm695_vm2, %v2437_v0  ;;  %vm1037_vm4 = vcmask 1043456   ;;  %v1031_v59 = vld [vmem:[%s2686_s29 + $0x4] sm:$0xf]  ;;  %vm1454_vm5 = vcmask 261120  }
  0x84   : > { %v1039_v55 = vsel %vm1037_vm4, %v1030_v54, 0  ;;  %v1085_v60 = vsel %vm1037_vm4, %v1031_v59, 0  ;;  %s1923_s14 = sshll.u32 %s2714_s24, 3  ;;  %s3000_s18 = sld [smem:[#allocation31_spill]]  ;;  %vm1638_vm6 = vcmask 523264  }
  0x85   : > { %1987 = vmatmul.mubr.msk.bf16.vlgmr.msra.gmra.mxu1 %vm704_vm0, %v712_v6  ;;  %1999 = vmatmul.mubr.msk.bf16.vlgmr.msra.gmra.mxu0 %vm704_vm0, %v714_v8  ;;  %v1032_v8 = vld [vmem:[%s2686_s29 + $0x8] sm:$0xf]  ;;  %s689_s30 = scalar_lea.vmem %s2940_s3, %s1923_s14  ;;  %s3001_s17 = sld [smem:[#allocation32_spill]] }
  0x86   : > { %1991 = vmatpush3.bf16.xpose.msra.mxu1 %v771_v7  ;;  %1992 = vmatprep.mubr.msk.bf16.mxu1 %vm2438_vm1, %v2437_v0  ;;  %v1131_v14 = vsel %vm1037_vm4, %v1032_v8, 0  ;;  %v969_v34 = vld [vmem:[#allocation3] sm:$0xff]  ;;  %s1920_s4 = sshll.u32 %s2675_s5, 3  ;;  %s3003_s25 = sld [smem:[#allocation28_spill]] }
  0x87   : > { %2002 = vmatprep.subr.bf16.mxu1 %v2437_v0  ;;  %2010 = vmatprep.mubr.msk.bf16.mxu0 %vm2438_vm1, %v2437_v0  ;;  %v2769_v41 = vld [vmem:[#allocation2] sm:$0xff]  ;;  %v906_v49 = vld [vmem:[#allocation2 + $0x8] sm:$0xff]  ;;  %s3004_s24 = sld [smem:[#allocation29_spill]]  ;;  %s1951_s26 = sshll.u32 %s2420_s21, 7 }
  0x88   : > { %2009 = vmatpush3.bf16.msra.mxu0 %v1039_v55  ;;  %s674_s27 = scalar_lea.vmem [#allocation14], %s1920_s4  ;;  %s3005_s16 = sld [smem:[#allocation33_spill]] }
  0x89   : > { %v2771_v42 = vld [vmem:[#allocation2 + $0x10] sm:$0xff]  ;;  %v2789_v53 = vld [vmem:[#allocation2 + $0x18] sm:$0xff]  ;;  %2020 = vmatprep.subr.bf16.mxu0 %v2437_v0  ;;  %s1728_s11 = sshll.u32 %s674_s27, 4  ;;  %s1729_s11 = int_to_ptr.vmem [resolvable:$true] %s1728_s11 }
  0x8a   : > { %s2336_s1 = scalar_lea.vmem %s1729_s11, 128 }
  0x8b   : > { %p2337_p0 = scmp.ne.s32.totalorder %s1729_s11, %s2336_s1 }
  0x8d   : > { %1993 = vmatmul.mubr.msk.bf16.vlgmr.msra.gmra.mxu1 %vm704_vm0, %v713_v10  ;;  %p2338_p1 = pnand %p2337_p0, %p2624_p13 }
  0x8e   : > { %2003 = vmatpush3.bf16.xpose.msra.mxu1 %v863_v11  ;;  %2004 = vmatprep.mubr.msk.bf16.mxu1 %vm2438_vm1, %v2437_v0 }
  0x8f   : > { %2014 = vmatprep.subr.bf16.mxu1 %v2437_v0  ;;  %p2339_p2 = pneg %p2338_p1 }
  0x95   : > { %2005 = vmatmul.mubr.msk.bf16.vlgmr.msra.gmra.mxu1 %vm704_vm0, %v715_v12 }
  0x96   : > { %2016 = vmatprep.mubr.msk.bf16.mxu1 %vm2438_vm1, %v2437_v0  ;;  %2015 = vmatpush3.bf16.msra.mxu1 %v1085_v60 }
  0x97   : > { %2026 = vmatprep.subr.bf16.mxu1 %v2437_v0 }
 0x145   : > { %v761_v16 = vpop.f32.mrf.mxu1  ;;  %v853_v17 = vpop.f32.mrf.mxu0 }
 0x146   : > { %v2759_v18 = vadd.f32 %v761_v16, %v711_v15  ;;  %v2761_v19 = vadd.f32 %v853_v17, %v711_v15 }
 0x147   : > { %v1988_v20 = vpop.f32.mrf.mxu1  ;;  %v2000_v21 = vpop.f32.mrf.mxu0 }
 0x148   : > { %v909_v22 = vsel %vm704_vm0, %v2759_v18, -inf  ;;  %v915_v23 = vsel %vm704_vm0, %v2761_v19, -inf }
 0x149   : > { %v764_v24 = vpop.f32.mrf.mxu1  ;;  %910 = vmax.xlane.f32.xlu0 %v909_v22  ;;  %v856_v25 = vpop.f32.mrf.mxu0  ;;  %916 = vmax.xlane.f32.xlu1 %v915_v23 }
 0x14b   : > { %v1989_v26 = vpop.f32.mrf.mxu1  ;;  %v2001_v27 = vpop.f32.mrf.mxu0 }
 0x14d   : > { %v807_v28 = vpop.f32.mrf.mxu1 }
 0x14e   : > { %v808_v29 = vadd.f32 %v807_v28, %v711_v15 }
 0x14f   : > { %v1994_v30 = vpop.f32.mrf.mxu1 }
 0x150   : > { %v912_v31 = vsel %vm704_vm0, %v808_v29, -inf }
 0x151   : > { %v810_v32 = vpop.f32.mrf.mxu1  ;;  %913 = vmax.xlane.f32.xlu0 %v912_v31 }
 0x153   : > { %v1995_v33 = vpop.f32.mrf.mxu1 }
 0x155   : > { %v899_v35 = vpop.f32.mrf.mxu1 }
 0x156   : > { %v900_v36 = vadd.f32 %v899_v35, %v711_v15  ;;  %v1033_v15 = vld [vmem:[%s2686_s29 + $0xc] sm:$0xf] }
 0x157   : > { %v2006_v37 = vpop.f32.mrf.mxu1 }
 0x158   : > { %v918_v38 = vsel %vm704_vm0, %v900_v36, -inf }
 0x159   : > { %919 = vmax.xlane.f32.xlu1 %v918_v38  ;;  %v902_v39 = vpop.f32.mrf.mxu1  ;;  %v970_v38 = vld [vmem:[#allocation3 + $0x8] sm:$0xff] }
 0x15b   : > { %v2007_v40 = vpop.f32.mrf.mxu1 }
 0x1d2   : > { %v911_v43 = vpop.xlane.xlu0 %910  ;;  %v917_v44 = vpop.xlane.xlu1 %916 }
 0x1d3   : > { %v2774_v45 = vmax.f32 %v2769_v41, %v911_v43  ;;  %v2777_v46 = vmax.f32 %v2771_v42, %v917_v44 }
 0x1d5   : > { %v925_v47 = vsub.f32 %v2769_v41, %v2774_v45  ;;  %1227 = vst.msk [vmem:[#allocation2] sm:$0xff] %vm695_vm2, %v2774_v45  ;;  %939 = vperm.xlu0 %2164, %v2774_v45   ;;  %v927_v48 = vsub.f32 %v2771_v42, %v2777_v46  ;;  %1229 = vst.msk [vmem:[#allocation2 + $0x10] sm:$0xff] %vm695_vm2, %v2777_v46  ;;  %v971_v41 = vld [vmem:[#allocation3 + $0x10] sm:$0xff] }
 0x1d7   : > { %v929_v25 = vmul.f32 1.442695, %v925_v47  ;;  %v933_v28 = vmul.f32 1.442695, %v927_v48 }
 0x1da   : > { %v914_v50 = vpop.xlane.xlu0 %913 }
 0x1db   : > { %v922_v51 = vmax.f32 %v906_v49, %v914_v50 }
 0x1dd   : > { %v926_v52 = vsub.f32 %v906_v49, %v922_v51  ;;  %1228 = vst.msk [vmem:[#allocation2 + $0x8] sm:$0xff] %vm695_vm2, %v922_v51  ;;  %944 = vperm.xlu1 %2165, %v922_v51  }
 0x1df   : > { %v931_v23 = vmul.f32 1.442695, %v926_v52 }
 0x1e1   : > { %949 = vperm.xlu1 %2165, %v2777_v46   ;;  %v972_v46 = vld [vmem:[#allocation3 + $0x18] sm:$0xff] }
 0x1e2   : > { %v920_v56 = vpop.xlane.xlu1 %919 }
 0x1e3   : > { %v2795_v57 = vmax.f32 %v2789_v53, %v920_v56 }
 0x1e5   : > { %v928_v58 = vsub.f32 %v2789_v53, %v2795_v57  ;;  %1230 = vst.msk [vmem:[#allocation2 + $0x18] sm:$0xff] %vm695_vm2, %v2795_v57  ;;  %954 = vperm.xlu1 %2165, %v2795_v57  }
 0x250   : > { %v940_v61 = vpop.permute.xlu0 %939 }
 0x251   : > { %v957_v62 = vsub.f32 %v2759_v18, %v940_v61 }
 0x253   : > { %v961_v63 = vmul.f32 1.442695, %v957_v62 }
 0x255   : > { %2174 = vpow2.f32 %v961_v63 }
 0x258   : > { %v945_v1 = vpop.permute.xlu1 %944 }
 0x259   : > { %v958_v2 = vsub.f32 %v808_v29, %v945_v1  ;;  %v935_v29 = vmul.f32 1.442695, %v928_v58  ;;  %v998_v58 = vld [vmem:[#allocation4] sm:$0xff]  ;;  %v999_v1 = vld [vmem:[#allocation4 + $0x8] sm:$0xff] }
 0x25b   : > { %v963_v3 = vmul.f32 1.442695, %v958_v2 }
 0x25c   : > { %v950_v4 = vpop.permute.xlu1 %949 }
 0x25d   : > { %2176 = vpow2.f32 %v963_v3  ;;  %v959_v5 = vsub.f32 %v2761_v19, %v950_v4  ;;  %v1177_v19 = vsel %vm1037_vm4, %v1033_v15, 0 }
 0x25f   : > { %v965_v6 = vmul.f32 1.442695, %v959_v5 }
 0x260   : > { %v955_v7 = vpop.permute.xlu1 %954 }
 0x261   : > { %2178 = vpow2.f32 %v965_v6  ;;  %v960_v9 = vsub.f32 %v900_v36, %v955_v7  ;;  %v1000_v7 = vld [vmem:[#allocation4 + $0x10] sm:$0xff] }
 0x262   : > { %v2175_v10 = vpop.eup %2174 }
 0x263   : > { %v967_v11 = vmul.f32 1.442695, %v960_v9  ;;  %v977_v12 = vsel %vm704_vm0, %v2175_v10, 0.0  ;;  %v1026_v13 = vpack.c.bf16 %v2175_v10, %v2175_v10 }
 0x264   : > { %978 = vadd.xlane.f32.xlu1 %v977_v12 }
 0x265   : > { %2180 = vpow2.f32 %v967_v11  ;;  %2011 = vmatmul.mubr.msk.bf16.vlgmr.msra.gmra.mxu0 %vm704_vm0, %v1026_v13  ;;  %v1001_v13 = vld [vmem:[#allocation4 + $0x18] sm:$0xff] }
 0x266   : > { %2021 = vmatpush3.bf16.msra.mxu0 %v1131_v14  ;;  %2022 = vmatprep.mubr.msk.bf16.mxu0 %vm2438_vm1, %v2437_v0  ;;  %2182 = vpow2.f32 %v931_v23 }
 0x267   : > { %2032 = vmatprep.subr.bf16.mxu0 %v2437_v0  ;;  %2184 = vpow2.f32 %v929_v25 }
 0x268   : > { %2186 = vpow2.f32 %v933_v28 }
 0x269   : > { %2188 = vpow2.f32 %v935_v29 }
 0x26a   : > { %v2177_v16 = vpop.eup %2176 }
 0x26b   : > { %v980_v17 = vsel %vm704_vm0, %v2177_v16, 0.0  ;;  %v1027_v18 = vpack.c.bf16 %v2177_v16, %v2177_v16 }
 0x26c   : > { %981 = vadd.xlane.f32.xlu0 %v980_v17 }
 0x26d   : > { %2017 = vmatmul.mubr.msk.bf16.vlgmr.msra.gmra.mxu1 %vm704_vm0, %v1027_v18 }
 0x26e   : > { %v2179_v20 = vpop.eup %2178  ;;  %2027 = vmatpush3.bf16.msra.mxu1 %v1177_v19  ;;  %2028 = vmatprep.mubr.msk.bf16.mxu1 %vm2438_vm1, %v2437_v0 }
 0x26f   : > { %v983_v21 = vsel %vm704_vm0, %v2179_v20, 0.0  ;;  %v1028_v22 = vpack.c.bf16 %v2179_v20, %v2179_v20  ;;  %2040 = vmatprep.subr.bf16.mxu1 %v2437_v0 }
 0x270   : > { %984 = vadd.xlane.f32.xlu1 %v983_v21 }
 0x271   : > { %2023 = vmatmul.mubr.msk.bf16.vlgmr.msra.gmra.mxu0 %vm704_vm0, %v1028_v22 }
 0x272   : > { %v2181_v24 = vpop.eup %2180  ;;  %2036 = vmatprep.mubr.msk.bf16.mxu0 %vm2438_vm1, %v2437_v0 }
 0x273   : > { %v986_v26 = vsel %vm704_vm0, %v2181_v24, 0.0  ;;  %v1029_v27 = vpack.c.bf16 %v2181_v24, %v2181_v24  ;;  %v2183_v30 = vpop.eup %2182 }
 0x274   : > { %987 = vadd.xlane.f32.xlu1 %v986_v26  ;;  %v2185_v31 = vpop.eup %2184  ;;  %v974_v39 = vmul.f32 %v2183_v30, %v970_v38 }
 0x275   : > { %2029 = vmatmul.mubr.msk.bf16.vlgmr.msra.gmra.mxu1 %vm704_vm0, %v1029_v27  ;;  %v2187_v32 = vpop.eup %2186  ;;  %v973_v35 = vmul.f32 %v2185_v31, %v969_v34 }
 0x276   : > { %2044 = vmatprep.mubr.msk.bf16.mxu1 %vm2438_vm1, %v2437_v0  ;;  %v2189_v33 = vpop.eup %2188  ;;  %v975_v44 = vmul.f32 %v2187_v32, %v971_v41 }
 0x277   : > { %v976_v48 = vmul.f32 %v2189_v33, %v972_v46 }
 0x282   : > { %1009 = vperm.xlu0 %2164, %v2183_v30  }
 0x285   : > { %1004 = vperm.xlu1 %2165, %v2185_v31  }
 0x289   : > { %1014 = vperm.xlu1 %2165, %v2187_v32  }
 0x28d   : > { %1019 = vperm.xlu1 %2165, %v2189_v33  }
 0x2ed   : > { %v979_v36 = vpop.xlane.xlu1 %978 }
 0x2ee   : > { %v989_v37 = vadd.f32 %v979_v36, %v973_v35 }
 0x2f0   : > { %994 = vst.msk [vmem:[#allocation3] sm:$0xff] %vm695_vm2, %v989_v37 }
 0x2f5   : > { %v982_v40 = vpop.xlane.xlu0 %981 }
 0x2f6   : > { %v990_v42 = vadd.f32 %v982_v40, %v974_v39  ;;  %v2166_v39 = vld [vmem:[#allocation11 + $0x8] sm:$0xff]   ;;  %v2167_v40 = vld [vmem:[#allocation11] sm:$0xff]  }
 0x2f7   : > { %v1238_v43 = vld [vmem:[#allocation3] sm:$0xff]  ;;  %2033 = vmatpush3.bf16.msra.mxu0 %v2166_v39 }
 0x2f8   : > { %995 = vst.msk [vmem:[#allocation3 + $0x8] sm:$0xff] %vm695_vm2, %v990_v42  ;;  %2190 = vrcp.f32 %v1238_v43  ;;  %2034 = vmatprep.subr.bf16.mxu0 %v2437_v0 }
 0x2f9   : > { %v985_v45 = vpop.xlane.xlu1 %984 }
 0x2fa   : > { %v991_v47 = vadd.f32 %v985_v45, %v975_v44 }
 0x2fb   : > { %2035 = vmatpush3.bf16.msra.mxu0 %v2167_v40  ;;  %v1949_v40 = vld [vmem:[%s3004_s24] ss:$0 sm:$0xff] }
 0x2fc   : > { %996 = vst.msk [vmem:[#allocation3 + $0x10] sm:$0xff] %vm695_vm2, %v991_v47  ;;  %2048 = vmatprep.subr.bf16.mxu0 %v2437_v0  ;;  %v1932_v47 = vld [vmem:[%s2943_s6] ss:$0 sm:$0xff] }
 0x2fd   : > { %v988_v49 = vpop.xlane.xlu1 %987  ;;  %v1010_v2 = vpop.permute.xlu0 %1009 }
 0x2fe   : > { %v992_v50 = vadd.f32 %v988_v49, %v976_v48  ;;  %v1023_v6 = vmul.f32 %v1010_v2, %v999_v1  ;;  %v1498_v49 = vld [vmem:[%s689_s30] sm:$0xff]  ;;  %v2171_v1 = vld [vmem:[%s2950_s13 + $0x10] sm:$0xff]   ;;  %s1714_s30 = scalar_lea.sflag [#allocation7], %s2675_s5 }
 0x2ff   : > { %v1239_v51 = vld [vmem:[#allocation3 + $0x8] sm:$0xff] }
 0x300   : > { %997 = vst.msk [vmem:[#allocation3 + $0x18] sm:$0xff] %vm695_vm2, %v992_v50  ;;  %2192 = vrcp.f32 %v1239_v51 }
 0x301   : > { %v1005_v59 = vpop.permute.xlu1 %1004 }
 0x302   : > { %v1022_v60 = vmul.f32 %v1005_v59, %v998_v58 }
 0x303   : > { %v1240_v52 = vld [vmem:[#allocation3 + $0x10] sm:$0xff] }
 0x304   : > { %2194 = vrcp.f32 %v1240_v52 }
 0x305   : > { %v2191_v53 = vpop.eup %2190  ;;  %v1015_v4 = vpop.permute.xlu1 %1014 }
 0x306   : > { %1248 = vperm.xlu1 %2165, %v2191_v53   ;;  %v1024_v11 = vmul.f32 %v1015_v4, %v1000_v7 }
 0x307   : > { %v1241_v54 = vld [vmem:[#allocation3 + $0x18] sm:$0xff] }
 0x308   : > { %2196 = vrcp.f32 %v1241_v54 }
 0x309   : > { %v1020_v12 = vpop.permute.xlu1 %1019 }
 0x30a   : > { %v1025_v19 = vmul.f32 %v1020_v12, %v1001_v13  ;;  %v2172_v12 = vld [vmem:[%s2950_s13 + $0x8] sm:$0xff]   ;;  %v2173_v13 = vld [vmem:[%s2950_s13] sm:$0xff]  }
 0x30d   : > { %v2193_v55 = vpop.eup %2192 }
 0x30e   : > { %1253 = vperm.xlu0 %2164, %v2193_v55  }
 0x311   : > { %v2195_v56 = vpop.eup %2194 }
 0x312   : > { %1258 = vperm.xlu1 %2165, %v2195_v56  }
 0x315   : > { %v2197_v57 = vpop.eup %2196 }
 0x316   : > { %1263 = vperm.xlu0 %2164, %v2197_v57  }
 0x325   : > { %v1075_v61 = vpop.f32.mrf.mxu0 }
 0x326   : > { %v1219_v62 = vadd.f32 %v1075_v61, %v1022_v60  ;;  %v2168_v61 = vld [vmem:[#allocation13 + $0x8] sm:$0xff]  }
 0x327   : > { %v2012_v63 = vpop.f32.mrf.mxu0  ;;  %2041 = vmatpush3.bf16.msra.mxu1 %v2168_v61 }
 0x328   : > { %1223 = vst.msk [vmem:[#allocation4] sm:$0xff] %vm704_vm0, %v1219_v62  ;;  %v2169_v62 = vld [vmem:[#allocation13] sm:$0xff]   ;;  %2042 = vmatprep.subr.bf16.mxu1 %v2437_v0 }
 0x329   : > { %v1078_v3 = vpop.f32.mrf.mxu0  ;;  %v2170_v63 = vld [vmem:[%s2950_s13 + $0x18] sm:$0xff]  }
 0x32b   : > { %v2013_v5 = vpop.f32.mrf.mxu0  ;;  %2043 = vmatpush3.bf16.msra.mxu1 %v2169_v62 }
 0x32d   : > { %v1121_v8 = vpop.f32.mrf.mxu1 }
 0x32e   : > { %v1220_v9 = vadd.f32 %v1121_v8, %v1023_v6  ;;  %v1936_v6 = vld [vmem:[%s2944_s7] ss:$0 sm:$0xff] }
 0x32f   : > { %v2018_v10 = vpop.f32.mrf.mxu1  ;;  %v1234_v27 = vld [vmem:[#allocation4] sm:$0xff] }
 0x330   : > { %1224 = vst.msk [vmem:[#allocation4 + $0x8] sm:$0xff] %vm704_vm0, %v1220_v9  ;;  %v1937_v8 = vld [vmem:[%s2945_s8] ss:$0 sm:$0xff] }
 0x331   : > { %v1124_v14 = vpop.f32.mrf.mxu1  ;;  %v1167_v15 = vpop.f32.mrf.mxu0 }
 0x332   : > { %v1221_v16 = vadd.f32 %v1167_v15, %v1024_v11  ;;  %v1938_v14 = vld [vmem:[%s3000_s18] ss:$0 sm:$0xff]  ;;  %s1726_s18 = scalar_lea.hbm %s3005_s16, %s1951_s26 }
 0x333   : > { %v2019_v17 = vpop.f32.mrf.mxu1  ;;  %v2024_v18 = vpop.f32.mrf.mxu0 }
 0x334   : > { %1225 = vst.msk [vmem:[#allocation4 + $0x10] sm:$0xff] %vm704_vm0, %v1221_v16 }
 0x335   : > { %v1170_v20 = vpop.f32.mrf.mxu0  ;;  %v1213_v21 = vpop.f32.mrf.mxu1 }
 0x336   : > { %v1222_v22 = vadd.f32 %v1213_v21, %v1025_v19 }
 0x337   : > { %v2025_v23 = vpop.f32.mrf.mxu0  ;;  %v2030_v24 = vpop.f32.mrf.mxu1  ;;  %v1235_v34 = vld [vmem:[#allocation4 + $0x8] sm:$0xff] }
 0x338   : > { %1226 = vst.msk [vmem:[#allocation4 + $0x18] sm:$0xff] %vm704_vm0, %v1222_v22 }
 0x339   : > { %v1216_v25 = vpop.f32.mrf.mxu1 }
 0x33b   : > { %v2031_v26 = vpop.f32.mrf.mxu1  ;;  %v1236_v30 = vld [vmem:[#allocation4 + $0x10] sm:$0xff] }
 0x33f   : > { %v1237_v37 = vld [vmem:[#allocation4 + $0x18] sm:$0xff] }
 0x381   : > { %v1249_v28 = vpop.permute.xlu1 %1248 }
 0x382   : > { %v1266_v29 = vmul.f32 %v1249_v28, %v1234_v27 }
 0x384   : > { %1270 = vxpose.xlu1.b32.start.end [1/1] (short) (narrow) %v1266_v29, 8 }
 0x389   : > { %v1254_v33 = vpop.permute.xlu0 %1253 }
 0x38a   : > { %v1267_v35 = vmul.f32 %v1254_v33, %v1235_v34 }
 0x38d   : > { %v1259_v31 = vpop.permute.xlu1 %1258 }
 0x38e   : > { %v1268_v32 = vmul.f32 %v1259_v31, %v1236_v30 }
 0x390   : > { %1334 = vxpose.xlu0.b32.start.end [1/1] (short) (narrow) %v1268_v32, 8 }
 0x391   : > { %v1264_v36 = vpop.permute.xlu0 %1263 }
 0x392   : > { %v1269_v38 = vmul.f32 %v1264_v36, %v1237_v37 }
 0x394   : > { %1302 = vxpose.xlu0.b32.start.end [1/1] (short) (narrow) %v1267_v35, 8 }
 0x398   : > { %1366 = vxpose.xlu0.b32.start.end [1/1] (short) (narrow) %v1269_v38, 8  ;;  %v1948_v38 = vld [vmem:[%s3003_s25] ss:$0 sm:$0xff] }
 0x400   : > { %v1286_v41 = vpop.trf.xlu1 }
 0x401   : > { %1398 = vxpose.xlu0.b32.start [1/4] (short) (narrow) %v1286_v41, 8 }
 0x40c   : > { %v1350_v42 = vpop.trf.xlu0 }
 0x410   : > { %v1318_v43 = vpop.trf.xlu0 }
 0x411   : > { %1399 = vxpose.xlu0.b32.cont [2/4] (short) (narrow) %v1318_v43, 8 }
 0x414   : > { %v1382_v44 = vpop.trf.xlu0 }
 0x415   : > { %1400 = vxpose.xlu0.b32.cont [3/4] (short) (narrow) %v1350_v42, 8 }
 0x419   : > { %1401 = vxpose.xlu0.b32.end [4/4] (short) (narrow) %v1382_v44, 8 }
 0x489   : > { %v1414_v45 = vpop.trf.xlu0 }
 0x48a   : > { %v1430_v46 = vpack.c.bf16 %v1414_v45, %v1414_v45 }
 0x48c   : > { %2037 = vmatmul.mubr.msk.bf16.vlgmr.msra.gmra.mxu0 %vm1454_vm5, %v1430_v46 }
 0x48d   : > { %2056 = vmatprep.mubr.msk.bf16.mxu0 %vm2438_vm1, %v2437_v0  ;;  %2049 = vmatpush3.bf16.msra.mxu0 %v2170_v63 }
 0x48e   : > { %2050 = vmatprep.subr.bf16.mxu0 %v2437_v0 }
 0x491   : > { %2051 = vmatpush3.bf16.msra.mxu0 %v2171_v1 }
 0x492   : > { %2052 = vmatprep.subr.bf16.mxu0 %v2437_v0 }
 0x495   : > { %2053 = vmatpush3.bf16.msra.mxu0 %v2172_v12 }
 0x496   : > { %2054 = vmatprep.subr.bf16.mxu0 %v2437_v0  ;;  %v1942_v0 = vld [vmem:[%s3001_s17] ss:$0 sm:$0xff]  ;;  %s2441_s17 = smov [#allocation14]  }
 0x497   : > { %s2340_s22 = sshll.u32 %s2441_s17, 4  ;;  %s2341_s22 = int_to_ptr.vmem [resolvable:$false] %s2340_s22 }
 0x498   : > { %s2342_s21 = scalar_lea.vmem %s2341_s22, 256  ;;  %p2343_p6 = scmp.lt.s32.totalorder %s1729_s11, %s2341_s22 }
 0x499   : > { %2055 = vmatpush3.bf16.msra.mxu0 %v2173_v13  ;;  %p2344_p8 = scmp.lt.s32.totalorder %s2342_s21, %s2336_s1 }
 0x49b   : > { %p2345_p9 = por %p2344_p8, %p2343_p6 }
 0x49d   : > { %p2346_p3 = pnand %p2345_p9, %p2339_p2 }
 0x54c   : > { %v1492_v48 = vpop.f32.mrf.mxu0 }
 0x54d   : > { %v1493_v50 = vadd.f32 %v1932_v47, %v1492_v48 }
 0x54e   : > { %v2038_v51 = vpop.f32.mrf.mxu0 }
 0x54f   : > { %v1499_v52 = vadd.f32 %v1498_v49, %v1493_v50 }
 0x550   : > { %v1495_v53 = vpop.f32.mrf.mxu0 }
 0x551   : > { %v1502_v54 = vsel %vm1454_vm5, %v1499_v52, 0.0 }
 0x552   : > { %1503 = vadd.xlane.f32.xlu1 %v1502_v54  ;;  %v2039_v55 = vpop.f32.mrf.mxu0 }
 0x5db   : > { %v1504_v56 = vpop.xlane.xlu1 %1503 }
 0x5dc   : > { %v1506_v57 = vmul.f32 0.03125, %v1504_v56 }
 0x5de   : > { %v1507_v58 = vsub.f32 %v1499_v52, %v1506_v57 }
 0x5e0   : > { %v1508_v59 = vmul.f32 %v1507_v58, %v1507_v58 }
 0x5e2   : > { %v1509_v60 = vsel %vm1454_vm5, %v1508_v59, 0.0 }
 0x5e3   : > { %1510 = vadd.xlane.f32.xlu0 %v1509_v60 }
 0x66c   : > { %v1511_v2 = vpop.xlane.xlu0 %1510 }
 0x66d   : > { %v1512_v3 = vmul.f32 0.03125, %v1511_v2 }
 0x66f   : > { %v1513_v4 = vadd.f32 1e-05, %v1512_v3 }
 0x671   : > { %2198 = vrsqrt.f32 %v1513_v4 }
 0x67e   : > { %v2199_v5 = vpop.eup %2198 }
 0x67f   : > { %v1515_v7 = vmul.f32 %v2199_v5, %v1507_v58 }
 0x681   : > { %v1522_v9 = vmul.f32 %v1936_v6, %v1515_v7 }
 0x683   : > { %v1529_v10 = vadd.f32 %v1937_v8, %v1522_v9 }
 0x685   : > { %v1530_v11 = vpack.c.bf16 %v1529_v10, %v1529_v10 }
 0x687   : > { %2045 = vmatmul.mubr.msk.bf16.vlgmr.msra.gmra.mxu1 %vm1454_vm5, %v1530_v11 }
 0x747   : > { %v1591_v15 = vpop.f32.mrf.mxu1 }
 0x748   : > { %v1592_v16 = vadd.f32 %v1938_v14, %v1591_v15 }
 0x749   : > { %v2046_v17 = vpop.f32.mrf.mxu1 }
 0x74a   : > { %v1597_v18 = vmax.f32 %v1592_v16, 0.0 }
 0x74b   : > { %v1594_v19 = vpop.f32.mrf.mxu1 }
 0x74c   : > { %v1598_v20 = vpack.c.bf16 %v1597_v18, %v1597_v18 }
 0x74d   : > { %v2047_v21 = vpop.f32.mrf.mxu1 }
 0x74e   : > { %2057 = vmatmul.mubr.msk.bf16.vlgmr.msra.gmra.mxu0 %vm1638_vm6, %v1598_v20 }
 0x80e   : > { %v1676_v22 = vpop.f32.mrf.mxu0 }
 0x80f   : > { %v1677_v23 = vadd.f32 %v1942_v0, %v1676_v22 }
 0x810   : > { %v2058_v24 = vpop.f32.mrf.mxu0 }
 0x811   : > { %v1682_v25 = vadd.f32 %v1677_v23, %v1529_v10 }
 0x812   : > { %v1679_v26 = vpop.f32.mrf.mxu0 }
 0x813   : > { %v1685_v27 = vsel %vm1454_vm5, %v1682_v25, 0.0 }
 0x814   : > { %1686 = vadd.xlane.f32.xlu1 %v1685_v27  ;;  %v2059_v28 = vpop.f32.mrf.mxu0 }
 0x89d   : > { %v1687_v29 = vpop.xlane.xlu1 %1686 }
 0x89e   : > { %v1688_v30 = vmul.f32 0.03125, %v1687_v29 }
 0x8a0   : > { %v1689_v31 = vsub.f32 %v1682_v25, %v1688_v30 }
 0x8a2   : > { %v1690_v32 = vmul.f32 %v1689_v31, %v1689_v31 }
 0x8a4   : > { %v1691_v33 = vsel %vm1454_vm5, %v1690_v32, 0.0 }
 0x8a5   : > { %1692 = vadd.xlane.f32.xlu1 %v1691_v33 }
 0x92e   : > { %v1693_v34 = vpop.xlane.xlu1 %1692 }
 0x92f   : > { %v1694_v35 = vmul.f32 0.03125, %v1693_v34 }
 0x931   : > { %v1695_v36 = vadd.f32 1e-05, %v1694_v35 }
 0x933   : > { %2200 = vrsqrt.f32 %v1695_v36 }
 0x940   : > { %v2201_v37 = vpop.eup %2200 }
 0x941   : > { %v1697_v39 = vmul.f32 %v2201_v37, %v1689_v31 }
 0x943   : > { %v1704_v41 = vmul.f32 %v1948_v38, %v1697_v39 }
 0x945   : > { %v1711_v42 = vadd.f32 %v1949_v40, %v1704_v41 }
 0x947   : > { %1712 = vst.msk [vmem:[%s674_s27] sm:$0xff] %vm1454_vm5, %v1711_v42 }
 0x948   : > { %2349 = shalt.err (!%p2346_p3)
}
 0x949   : > { %s2350_s4 = scalar_lea.hbm %s1726_s18, 128  ;;  %s2354_s25 = scalar_lea.hbm %s3005_s16, 256 }
 0x94a   : > { %p2351_p4 = scmp.ne.s32.totalorder %s1726_s18, %s2350_s4  ;;  %p2355_p5 = scmp.lt.s32.totalorder %s1726_s18, %s3005_s16 }
 0x94b   : > { %p2356_p7 = scmp.lt.s32.totalorder %s2354_s25, %s2350_s4 }
 0x94c   : > { %p2352_p11 = pnand %p2351_p4, %p2624_p13 }
 0x94d   : > { %p2357_p10 = por %p2356_p7, %p2355_p5 }
 0x94e   : > { %p2353_p12 = pneg %p2352_p11 }
 0x950   : > { %p2358_p0 = pnand %p2357_p10, %p2353_p12 }
 0x952   : > { %2361 = shalt.err (!%p2358_p0)
}
 0x953   : > { %2076 = dma.vmem_to_hbm [thread:$0]  (%p2624_p13), %s1729_s11, 128, %s1726_s18, %s1714_s30  }
 0x954 PF: > { %s3006_s24 = sld [smem:[#allocation20_spill]]  ;;  %p3009_p2 = scmp.ge.s32.totalorder %s2428_s23, 2 }
 0x955   : > { %s3007_s26 = sld [smem:[#allocation22_spill]] }
 0x95a   : > { %s1740_s27 = sand.u32 1, %s3006_s24  }
 0x95b   : > { %p3008_p1 = scmp.ne.s32.totalorder %s3007_s26, 0  ;;  %s1741_s12 = scalar_lea.sflag [#allocation7], %s1740_s27 }
 0x95d   : > { %p2096_p6 = pnand %p3009_p2, %p3008_p1 }
 0x95f   : > { %p2097_p8 = pneg %p2096_p6 }
 0x961   : > { %2403 = dma.done.wait (%p2097_p8), %s1741_s12, 128  }
 0x962   : > { %2405 = vsyncadd (%p2097_p8), %s1741_s12, 4294967168  ;;  %s35_s23 = sadd.s32 1, %s2428_s23   ;;  %s3010_s21 = sld [smem:[#allocation21_spill]] }
 0x963   : > { %p32_p9 = scmp.ge.s32.totalorder %s35_s23, 4   ;;  %s3011_s22 = sld [smem:[#allocation24_spill]] }
 0x964   : > { %s3012_s18 = smov %s2412_s19  ;;  %s3013_s19 = smov %s2416_s20 }
 0x965   : > { %s3014_s20 = smov %s2636_s15  ;;  %34 = sbr.rel (!%p32_p9) target bundleno = 19 (0x13), region = 165 }
 0x96a   :  { %1746 = vsyncpa [#allocation6], 1 }
 0x96b   :  { %1748 = vsyncpa [#allocation6 + $0x1], 1 }
 0x96c   :  { %1749 = vsyncpa [#allocation9], 1 }
 0x96d   :  { %1751 = vsyncpa [#allocation9 + $0x1], 1 }
 0x96e   :  { %1752 = vsyncpa [#allocation12], 1 }
 0x96f   :  { %1753 = vsyncpa [#allocation7], 1 }
 0x970   :  { %1755 = vsyncpa [#allocation7 + $0x1], 1 }

// kernel: tpu_custom_call.1
= control target key start
LH: loop header
LB: loop body
LE: loop exit
PB: predicated region body
PF: predicated region fallthrough
CT: control target
= control target key end

     0   :  { %s2937_s0 = inlined_call_operand.vmem [shape: bf16[2,4,8,8], index: 0, kind: input, shape index: {}]   ;;  %s2938_s1 = inlined_call_operand.hbm [shape: bf16[2,4,8,8], index: 1, kind: input, shape index: {}]   ;;  %s2939_s2 = inlined_call_operand.hbm [shape: bf16[2,4,8,8], index: 2, kind: input, shape index: {}]   ;;  %s2940_s3 = inlined_call_operand.vmem [shape: f32[2,8,32], index: 3, kind: input, shape index: {}]   ;;  %s2941_s4 = inlined_call_operand.hbm [shape: f32[1,8,8], index: 4, kind: input, shape index: {}]   ;;  %s2942_s5 = inlined_call_operand.hbm [shape: bf16[32,32], index: 5, kind: input, shape index: {}]   ;;  %s2943_s6 = inlined_call_operand.vmem [shape: f32[1,32], index: 6, kind: input, shape index: {}]   ;;  %s2944_s7 = inlined_call_operand.vmem [shape: f32[1,32], index: 7, kind: input, shape index: {}]   ;;  %s2945_s8 = inlined_call_operand.vmem [shape: f32[1,32], index: 8, kind: input, shape index: {}]   ;;  %s2946_s9 = inlined_call_operand.vmem [shape: f32[1,32], index: 9, kind: input, shape index: {}]   ;;  %s2947_s10 = inlined_call_operand.vmem [shape: f32[1,32], index: 10, kind: input, shape index: {}]   ;;  %s2948_s11 = inlined_call_operand.hbm [shape: bf16[32,64], index: 11, kind: input, shape index: {}]   ;;  %s2949_s12 = inlined_call_operand.vmem [shape: f32[1,64], index: 12, kind: input, shape index: {}]   ;;  %s2950_s13 = inlined_call_operand.vmem [shape: bf16[64,32], index: 13, kind: input, shape index: {}]   ;;  %s2951_s14 = inlined_call_operand.vmem [shape: f32[1,32], index: 14, kind: input, shape index: {}]   ;;  %s2952_s15 = inlined_call_operand.hbm [shape: f32[2,8,32], index: 15, kind: output, shape index: {}]  }
   0x1   :  { %2967 = sst [smem:[#allocation25_spill]] %s2938_s1 }
   0x2   :  { %2968 = sst [smem:[#allocation26_spill]] %s2941_s4 }
   0x3   :  { %2969 = sst [smem:[#allocation27_spill]] %s2942_s5 }
   0x4   :  { %2970 = sst [smem:[#allocation28_spill]] %s2946_s9 }
   0x5   :  { %2971 = sst [smem:[#allocation29_spill]] %s2947_s10 }
   0x6   :  { %2972 = sst [smem:[#allocation30_spill]] %s2948_s11 }
   0x7   :  { %2973 = sst [smem:[#allocation31_spill]] %s2949_s12 }
   0x8   :  { %2974 = sst [smem:[#allocation32_spill]] %s2951_s14 }
   0x9   :  { %2975 = sst [smem:[#allocation33_spill]] %s2952_s15 }
   0xa   :  { %20 = vsyncpa [#allocation6], 0 }
   0xb   :  { %22 = vsyncpa [#allocation6 + $0x1], 0 }
   0xc   :  { %23 = vsyncpa [#allocation9], 0 }
   0xd   :  { %25 = vsyncpa [#allocation9 + $0x1], 0 }
   0xe   :  { %26 = vsyncpa [#allocation12], 0 }
   0xf   :  { %27 = vsyncpa [#allocation7], 0 }
  0x10   :  { %29 = vsyncpa [#allocation7 + $0x1], 0  ;;  %s2522_s18 = smov 0   ;;  %s2524_s19 = smov 0  }
  0x11   :  { %s2526_s20 = smov 0   ;;  %s2528_s21 = smov 0  }
  0x12   :  { %s2530_s22 = smov 0   ;;  %s2532_s23 = smov 0  }
  0x13 LB: > { %2976 = sst [smem:[#allocation20_spill]] %s2408_s18  ;;  %s2553_s24 = sadd.s32 4294967295, %s2428_s23   ;;  %s2428_s23 = sphi %s2532_s23, %s35_s23   ;;  %s2424_s22 = sphi %s2530_s22, %s3011_s22   ;;  %s2420_s21 = sphi %s2528_s21, %s3010_s21   ;;  %s2416_s20 = sphi %s2526_s20, %s3014_s20   ;;  %s2412_s19 = sphi %s2524_s19, %s3013_s19   ;;  %s2408_s18 = sphi %s2522_s18, %s3012_s18  }
  0x14   : > { %2977 = sst [smem:[#allocation21_spill]] %s2424_s22  ;;  %s1902_s25 = sadd.s32 4294967294, %s2428_s23  }
  0x15   : > { %p104_p0 = scmp.ne.s32.totalorder %s2412_s19, %s2408_s18  ;;  %p2956_p1 = scmp.eq.s32.totalorder %s2553_s24, 0 }
  0x16   : > { %p430_p3 = scmp.eq.s32.totalorder %s1902_s25, 1  ;;  %p1903_p5 = scmp.ge.s32.totalorder %s2428_s23, 1 }
  0x17   : > { %p2562_p4 = por %p2956_p1, %p104_p0  ;;  %p437_p7 = scmp.lt.s32.totalorder %s2428_s23, 3 }
  0x18   : > { %p2567_p6 = por %p430_p3, %p104_p0  ;;  %s2430_s29 = smov [#allocation10]  }
  0x19   : > { %s2978_s26 = scalar_select %p2562_p4, 1, 0 }
  0x1a   : > { %s2979_s27 = scalar_select %p2567_p6, 1, 0 }
  0x1b   : > { %p2572_p8 = pnand %p1903_p5, %p437_p7  ;;  %s453_s30 = sshll.u32 %s2430_s29, 4  ;;  %s454_s30 = int_to_ptr.vmem [resolvable:$true] %s453_s30 }
  0x1c   : > { %2980 = sst [smem:[#allocation22_spill]] %s2979_s27  ;;  %s2431_s16 = smov [#allocation11]  }
  0x1d   : > { %s2981_s28 = scalar_select %p2572_p8, 1, 0 }
  0x1e   : > { %p2078_p10 = pneg %p2572_p8  ;;  %s463_s17 = sshll.u32 %s2431_s16, 4  ;;  %s464_s17 = int_to_ptr.vmem [resolvable:$true] %s463_s17 }
  0x1f   : > { %s2432_s27 = smov [#allocation13]   ;;  %s2213_s15 = scalar_lea.vmem %s454_s30, 128 }
  0x20   : > { %p2581_p11 = pnand %p2078_p10, %p2956_p1  ;;  %s491_s18 = sshll.u32 %s2432_s27, 4  ;;  %s492_s18 = int_to_ptr.vmem [resolvable:$true] %s491_s18 }
  0x21   : > { %p2214_p13 = scmp.ne.s32.totalorder %s454_s30, %s2213_s15  ;;  %p2221_p5 = scmp.lt.s32.totalorder %s454_s30, %s454_s30 }
  0x22   : > { %p2204_p12 = pneg %p2581_p11  ;;  %p2222_p7 = scmp.lt.s32.totalorder %s2213_s15, %s2213_s15 }
  0x24   : > { %p2216_p0 = pnand %p2214_p13, %p2204_p12  ;;  %p2223_p9 = por %p2222_p7, %p2221_p5 }
  0x26   : > { %p2217_p3 = pneg %p2216_p0 }
  0x28   : > { %p2224_p10 = pnand %p2223_p9, %p2217_p3 }
  0x2a   : > { %2227 = shalt.err (!%p2224_p10)
}
  0x2b   : > { %s2983_s4 = sld [smem:[#allocation26_spill]]  ;;  %s2239_s27 = scalar_lea.vmem %s464_s17, 256 }
  0x2c   : > { %p2240_p1 = scmp.ne.s32.totalorder %s464_s17, %s2239_s27  ;;  %p2247_p13 = scmp.lt.s32.totalorder %s464_s17, %s464_s17 }
  0x2d   : > { %p2248_p0 = scmp.lt.s32.totalorder %s2239_s27, %s2239_s27 }
  0x2e   : > { %p2242_p2 = pnand %p2240_p1, %p2204_p12 }
  0x2f   : > { %p2249_p4 = por %p2248_p0, %p2247_p13 }
  0x30   : > { %p2243_p6 = pneg %p2242_p2 }
  0x31   : > { %2081 = dma.hbm_to_vmem [thread:$0]  (!%p2581_p11), %s2983_s4, 128, %s454_s30, [#allocation9]  }
  0x32   : > { %p2250_p8 = pnand %p2249_p4, %p2243_p6 }
  0x34   : > { %2253 = shalt.err (!%p2250_p8)
}
  0x35   : > { %s2959_s15 = smov 64   ;;  %s2961_s10 = smov 4  }
  0x36   : > { %s2984_s5 = sld [smem:[#allocation27_spill]]  ;;  %s2265_s16 = scalar_lea.vmem %s492_s18, 256 }
  0x37   : > { %p2266_p1 = scmp.ne.s32.totalorder %s492_s18, %s2265_s16  ;;  %p2273_p6 = scmp.lt.s32.totalorder %s492_s18, %s492_s18 }
  0x38   : > { %p2274_p8 = scmp.lt.s32.totalorder %s2265_s16, %s2265_s16 }
  0x39   : > { %p2268_p2 = pnand %p2266_p1, %p2204_p12 }
  0x3a   : > { %p2275_p9 = por %p2274_p8, %p2273_p6 }
  0x3b   : > { %p2269_p4 = pneg %p2268_p2 }
  0x3c   : > { %2084 = dma.hbm_to_vmem [thread:$0]  (!%p2581_p11), %s2984_s5, 256, %s464_s17, [#allocation12], %s2959_s15, %s2959_s15, %s2961_s10  }
  0x3d   : > { %p2276_p3 = pnand %p2275_p9, %p2269_p4 }
  0x3f   : > { %2279 = shalt.err (!%p2276_p3)
}
  0x40   : > { %s2985_s11 = sld [smem:[#allocation30_spill]]  ;;  %s91_s17 = sadd.s32 1, %s2416_s20 }
  0x41   : > { %s54_s25 = sadd.s32 1, %s2424_s22  ;;  %p98_p12 = scmp.ne.s32.totalorder %s2416_s20, %s2412_s19 }
  0x42   : > { %p56_p5 = scmp.ge.s32.totalorder %s54_s25, 2  ;;  %p99_p7 = scmp.eq.s32.totalorder %s2428_s23, 0 }
  0x43   : > { %p2986_p10 = scmp.eq.s32.totalorder %s2553_s24, 1  ;;  %p2102_p0 = scmp.lt.s32.totalorder %s2428_s23, 2 }
  0x44   : > { %s3016_s25 = smov (%p56_p5, %s54_s25), 0  ;;  %p100_p1 = por %p99_p7, %p98_p12 }
  0x45   : > { %p2624_p13 = por %p2986_p10, %p98_p12  ;;  %2989 = sst [smem:[#allocation24_spill]] %s3016_s25 }
  0x46   : > { %2087 = dma.hbm_to_vmem [thread:$0]  (!%p2581_p11), %s2985_s11, 256, %s492_s18, [#allocation12], %s2959_s15, %s2959_s15, %s2961_s10  }
  0x47   : > { %s2987_s29 = scalar_select %p2624_p13, 1, 0 }
  0x48   : > { %s525_s16 = sand.u32 1, %s2416_s20   ;;  %s86_s27 = ssub.s32 %s2424_s22, %s3016_s25 }
  0x49   : > { %2988 = sst [smem:[#allocation23_spill]] %s2987_s29  ;;  %p89_p2 = scmp.eq.s32.totalorder %s86_s27, 0 }
  0x4a   : > { %s1908_s18 = sshll.u32 %s525_s16, 4  ;;  %s1954_s30 = sshll.u32 %s2424_s22, 8 }
  0x4b   : > { %s2636_s15 = scalar_select %p89_p2, %s2416_s20, %s91_s17  }
  0x4c   : > { %s2990_s1 = sld [smem:[#allocation25_spill]]  ;;  %s529_s11 = scalar_lea.vmem [#allocation5], %s1908_s18 }
  0x4d   : > { %s537_s9 = sshll.u32 %s529_s11, 4  ;;  %p2643_p11 = pnand %p2102_p0, %p100_p1  ;;  %s538_s9 = int_to_ptr.vmem [resolvable:$true] %s537_s9 }
  0x4e   : > { %s2650_s27 = scalar_lea.hbm %s2939_s2, %s1954_s30  ;;  %s551_s17 = scalar_lea.vmem [#allocation8], %s1908_s18 }
  0x4f   : > { %s559_s25 = sshll.u32 %s551_s17, 4  ;;  %s526_s22 = scalar_lea.sflag [#allocation6], %s525_s16  ;;  %s560_s25 = int_to_ptr.vmem [resolvable:$true] %s559_s25 }
  0x50   : > { %p2282_p4 = pneg %p2643_p11  ;;  %s2293_s4 = scalar_lea.vmem %s538_s9, 256 }
  0x51   : > { %p2294_p6 = scmp.ne.s32.totalorder %s538_s9, %s2293_s4  ;;  %s2435_s10 = smov [#allocation5]  }
  0x52   : > { %s536_s5 = scalar_lea.hbm %s2990_s1, %s1954_s30  ;;  %s2298_s11 = sshll.u32 %s2435_s10, 4  ;;  %s2299_s11 = int_to_ptr.vmem [resolvable:$false] %s2298_s11 }
  0x53   : > { %p2296_p8 = pnand %p2294_p6, %p2282_p4  ;;  %s2300_s1 = scalar_lea.vmem %s2299_s11, 512 }
  0x54   : > { %p2301_p3 = scmp.lt.s32.totalorder %s538_s9, %s2299_s11  ;;  %p2302_p12 = scmp.lt.s32.totalorder %s2300_s1, %s2293_s4 }
  0x55   : > { %p2297_p9 = pneg %p2296_p8 }
  0x56   : > { %p2303_p5 = por %p2302_p12, %p2301_p3 }
  0x58   : > { %p2304_p7 = pnand %p2303_p5, %p2297_p9 }
  0x5a   : > { %2307 = shalt.err (!%p2304_p7)
}
  0x5b   : > { %s2992_s12 = smov 4   ;;  %s2993_s14 = smov 64  }
  0x5c   : > { %2091 = dma.hbm_to_vmem [thread:$0]  (!%p2643_p11), %s536_s5, 256, %s538_s9, %s526_s22, %s2993_s14, %s2993_s14, %s2992_s12  }
  0x5d   : > { %s547_s16 = sand.u32 1, %s2428_s23   ;;  %s2321_s30 = scalar_lea.vmem %s560_s25, 256 }
  0x5e   : > { %s548_s18 = scalar_lea.sflag [#allocation9], %s547_s16  ;;  %p2322_p10 = scmp.ne.s32.totalorder %s560_s25, %s2321_s30 }
  0x5f   : > { %s2436_s1 = smov [#allocation8]  }
  0x60   : > { %p2324_p0 = pnand %p2322_p10, %p2282_p4  ;;  %s2326_s17 = sshll.u32 %s2436_s1, 4  ;;  %s2327_s17 = int_to_ptr.vmem [resolvable:$false] %s2326_s17 }
  0x61   : > { %s2328_s4 = scalar_lea.vmem %s2327_s17, 512  ;;  %p2329_p2 = scmp.lt.s32.totalorder %s560_s25, %s2327_s17 }
  0x62   : > { %p2325_p1 = pneg %p2324_p0  ;;  %p2330_p6 = scmp.lt.s32.totalorder %s2328_s4, %s2321_s30 }
  0x64   : > { %p2331_p8 = por %p2330_p6, %p2329_p2 }
  0x66   : > { %p2332_p9 = pnand %p2331_p8, %p2325_p1 }
  0x68   : > { %2335 = shalt.err (!%p2332_p9)
}
  0x69   : > { %2094 = dma.hbm_to_vmem [thread:$0]  (!%p2643_p11), %s2650_s27, 256, %s560_s25, %s548_s18, %s2993_s14, %s2993_s14, %s2992_s12  }
  0x6a   : > { %p2994_p3 = scmp.ne.s32.totalorder %s2981_s28, 0 }
  0x6b   : > { %s2675_s5 = sand.u32 (!%p2994_p3), 1, %s2412_s19   ;;  %p2995_p4 = scmp.ne.s32.totalorder (!%p2994_p3), %s2978_s26, 0 }
  0x6c   : > { %581 = sbr.rel (%p2994_p3) target bundleno = 2388 (0x954), region = 80  ;;  %s1915_s9 = sshll.u32 (!%p2994_p3), %s2675_s5, 4 }
  0x6d   : > { %s584_s22 = scalar_lea.sflag (!%p2994_p3), [#allocation6], %s2675_s5  ;;  %s2679_s10 = scalar_lea.vmem (!%p2994_p3), [#allocation5], %s1915_s9 }
  0x71   : > { %2387 = dma.done.wait (%p2995_p4), %s584_s22, 256  }
  0x72   : > { %2389 = vsyncadd (%p2995_p4), %s584_s22, 4294967040  ;;  %s592_s25 = sand.u32 1, %s2553_s24   ;;  %s2686_s29 = scalar_lea.vmem [#allocation8], %s1915_s9 }
  0x73   : > { %s593_s28 = scalar_lea.sflag [#allocation9], %s592_s25 }
  0x74   : > { %2391 = dma.done.wait (%p2995_p4), %s593_s28, 256  }
  0x75   : > { %2393 = vsyncadd (%p2995_p4), %s593_s28, 4294967040  ;;  %p2996_p11 = scmp.eq.s32.totalorder %s2553_s24, 0 }
  0x77   : > { %2395 = dma.done.wait (%p2996_p11), [#allocation9], 128   ;;  %p2997_p12 = pmov %p2996_p11 }
  0x78   : > { %p2998_p5 = pmov %p2996_p11 }
  0x79   : > { %2397 = vsyncadd (%p2997_p12), [#allocation9], 4294967168 }
  0x7a   : > { %2399 = dma.done.wait (%p2998_p5), [#allocation12], 512   ;;  %p2999_p7 = pmov %p2998_p5 }
  0x7b   : > { %vm704_vm0 = vcmask 64512   ;;  %p675_p10 = scmp.lt.s32.totalorder %s2420_s21, 1  ;;  %v2437_v0 = vmov 0.0   ;;  %vm2438_vm1 = vmmov 0   ;;  %v716_v1 = vld [vmem:[%s2679_s10] sm:$0xf] }
  0x7c   : > { %2401 = vsyncadd (%p2999_p7), [#allocation12], 4294966784  ;;  %1984 = vmatprep.subr.bf16.mxu1 %v2437_v0  ;;  %705 = vst.msk [vmem:[#allocation4] sm:$0xff] %vm704_vm0, %v2437_v0  ;;  %1986 = vmatprep.mubr.msk.bf16.mxu1 %vm2438_vm1, %v2437_v0  ;;  %v718_v2 = vld [vmem:[%s2679_s10 + $0x8] sm:$0xf]  ;;  %v725_v3 = vsel %vm704_vm0, %v716_v1, 0 }
  0x7d   : > { %706 = vst.msk [vmem:[#allocation4 + $0x8] sm:$0xff] %vm704_vm0, %v2437_v0  ;;  %707 = vst.msk [vmem:[#allocation4 + $0x10] sm:$0xff] %vm704_vm0, %v2437_v0  ;;  %1996 = vmatprep.subr.bf16.mxu0 %v2437_v0  ;;  %s2714_s24 = scalar_select %p675_p10, %s2420_s21, 1  ;;  %1998 = vmatprep.mubr.msk.bf16.mxu0 %vm2438_vm1, %v2437_v0  ;;  %v817_v4 = vsel %vm704_vm0, %v718_v2, 0  ;;  %v717_v5 = vld [vmem:[%s2679_s10 + $0x4] sm:$0xf] }
  0x7e   : > { %708 = vst.msk [vmem:[#allocation4 + $0x18] sm:$0xff] %vm704_vm0, %v2437_v0  ;;  %1985 = vmatpush3.bf16.xpose.msra.mxu1 %v725_v3  ;;  %1997 = vmatpush3.bf16.xpose.msra.mxu0 %v817_v4  ;;  %v771_v7 = vsel %vm704_vm0, %v717_v5, 0  ;;  %v719_v9 = vld [vmem:[%s2679_s10 + $0xc] sm:$0xf]  ;;  %vm695_vm2 = vcmask 7168   ;;  %v709_v14 = vld [vmem:[#allocation10] sm:$0xff] }
  0x7f   : > { %s1956_s26 = sshll.u32 %s2714_s24, 4  ;;  %1990 = vmatprep.subr.bf16.mxu1 %v2437_v0  ;;  %2008 = vmatprep.subr.bf16.mxu0 %v2437_v0  ;;  %v863_v11 = vsel %vm704_vm0, %v719_v9, 0  ;;  %v2439_v13 = vmov -1e+30   ;;  %700 = vst.msk [vmem:[#allocation3] sm:$0xff] %vm695_vm2, %v2437_v0  ;;  %701 = vst.msk [vmem:[#allocation3 + $0x8] sm:$0xff] %vm695_vm2, %v2437_v0 }
  0x80   : > { %s682_s12 = scalar_lea.vmem %s2937_s0, %s1956_s26  ;;  %696 = vst.msk [vmem:[#allocation2] sm:$0xff] %vm695_vm2, %v2439_v13  ;;  %697 = vst.msk [vmem:[#allocation2 + $0x8] sm:$0xff] %vm695_vm2, %v2439_v13  ;;  %vm710_vm3 = vcmp.eq.f32.partialorder %v709_v14, 0.0  ;;  %v2440_v34 = vmov 0   ;;  %v1030_v54 = vld [vmem:[%s2686_s29] sm:$0xf] }
  0x81   : > { %v712_v6 = vld [vmem:[%s682_s12] sm:$0xf]  ;;  %v714_v8 = vld [vmem:[%s682_s12 + $0x8] sm:$0xf]  ;;  %v713_v10 = vld [vmem:[%s682_s12 + $0x4] sm:$0xf]  ;;  %2164 = vset.pattern.permute.xlu0 %v2440_v34  ;;  %2165 = vset.pattern.permute.xlu1 %v2440_v34 }
  0x82   : > { %v715_v12 = vld [vmem:[%s682_s12 + $0xc] sm:$0xf]  ;;  %698 = vst.msk [vmem:[#allocation2 + $0x10] sm:$0xff] %vm695_vm2, %v2439_v13  ;;  %699 = vst.msk [vmem:[#allocation2 + $0x18] sm:$0xff] %vm695_vm2, %v2439_v13  ;;  %v711_v15 = vsel %vm710_vm3, -1e+20, %v2437_v0 }
  0x83   : > { %702 = vst.msk [vmem:[#allocation3 + $0x10] sm:$0xff] %vm695_vm2, %v2437_v0  ;;  %703 = vst.msk [vmem:[#allocation3 + $0x18] sm:$0xff] %vm695_vm2, %v2437_v0  ;;  %vm1037_vm4 = vcmask 1043456   ;;  %v1031_v59 = vld [vmem:[%s2686_s29 + $0x4] sm:$0xf]  ;;  %vm1454_vm5 = vcmask 261120  }
  0x84   : > { %v1039_v55 = vsel %vm1037_vm4, %v1030_v54, 0  ;;  %v1085_v60 = vsel %vm1037_vm4, %v1031_v59, 0  ;;  %s1923_s14 = sshll.u32 %s2714_s24, 3  ;;  %s3000_s18 = sld [smem:[#allocation31_spill]]  ;;  %vm1638_vm6 = vcmask 523264  }
  0x85   : > { %1987 = vmatmul.mubr.msk.bf16.vlgmr.msra.gmra.mxu1 %vm704_vm0, %v712_v6  ;;  %1999 = vmatmul.mubr.msk.bf16.vlgmr.msra.gmra.mxu0 %vm704_vm0, %v714_v8  ;;  %v1032_v8 = vld [vmem:[%s2686_s29 + $0x8] sm:$0xf]  ;;  %s689_s30 = scalar_lea.vmem %s2940_s3, %s1923_s14  ;;  %s3001_s17 = sld [smem:[#allocation32_spill]] }
  0x86   : > { %1991 = vmatpush3.bf16.xpose.msra.mxu1 %v771_v7  ;;  %1992 = vmatprep.mubr.msk.bf16.mxu1 %vm2438_vm1, %v2437_v0  ;;  %v1131_v14 = vsel %vm1037_vm4, %v1032_v8, 0  ;;  %v969_v34 = vld [vmem:[#allocation3] sm:$0xff]  ;;  %s1920_s4 = sshll.u32 %s2675_s5, 3  ;;  %s3003_s25 = sld [smem:[#allocation28_spill]] }
  0x87   : > { %2002 = vmatprep.subr.bf16.mxu1 %v2437_v0  ;;  %2010 = vmatprep.mubr.msk.bf16.mxu0 %vm2438_vm1, %v2437_v0  ;;  %v2769_v41 = vld [vmem:[#allocation2] sm:$0xff]  ;;  %v906_v49 = vld [vmem:[#allocation2 + $0x8] sm:$0xff]  ;;  %s3004_s24 = sld [smem:[#allocation29_spill]]  ;;  %s1951_s26 = sshll.u32 %s2420_s21, 7 }
  0x88   : > { %2009 = vmatpush3.bf16.msra.mxu0 %v1039_v55  ;;  %s674_s27 = scalar_lea.vmem [#allocation14], %s1920_s4  ;;  %s3005_s16 = sld [smem:[#allocation33_spill]] }
  0x89   : > { %v2771_v42 = vld [vmem:[#allocation2 + $0x10] sm:$0xff]  ;;  %v2789_v53 = vld [vmem:[#allocation2 + $0x18] sm:$0xff]  ;;  %2020 = vmatprep.subr.bf16.mxu0 %v2437_v0  ;;  %s1728_s11 = sshll.u32 %s674_s27, 4  ;;  %s1729_s11 = int_to_ptr.vmem [resolvable:$true] %s1728_s11 }
  0x8a   : > { %s2336_s1 = scalar_lea.vmem %s1729_s11, 128 }
  0x8b   : > { %p2337_p0 = scmp.ne.s32.totalorder %s1729_s11, %s2336_s1 }
  0x8d   : > { %1993 = vmatmul.mubr.msk.bf16.vlgmr.msra.gmra.mxu1 %vm704_vm0, %v713_v10  ;;  %p2338_p1 = pnand %p2337_p0, %p2624_p13 }
  0x8e   : > { %2003 = vmatpush3.bf16.xpose.msra.mxu1 %v863_v11  ;;  %2004 = vmatprep.mubr.msk.bf16.mxu1 %vm2438_vm1, %v2437_v0 }
  0x8f   : > { %2014 = vmatprep.subr.bf16.mxu1 %v2437_v0  ;;  %p2339_p2 = pneg %p2338_p1 }
  0x95   : > { %2005 = vmatmul.mubr.msk.bf16.vlgmr.msra.gmra.mxu1 %vm704_vm0, %v715_v12 }
  0x96   : > { %2016 = vmatprep.mubr.msk.bf16.mxu1 %vm2438_vm1, %v2437_v0  ;;  %2015 = vmatpush3.bf16.msra.mxu1 %v1085_v60 }
  0x97   : > { %2026 = vmatprep.subr.bf16.mxu1 %v2437_v0 }
 0x145   : > { %v761_v16 = vpop.f32.mrf.mxu1  ;;  %v853_v17 = vpop.f32.mrf.mxu0 }
 0x146   : > { %v2759_v18 = vadd.f32 %v761_v16, %v711_v15  ;;  %v2761_v19 = vadd.f32 %v853_v17, %v711_v15 }
 0x147   : > { %v1988_v20 = vpop.f32.mrf.mxu1  ;;  %v2000_v21 = vpop.f32.mrf.mxu0 }
 0x148   : > { %v909_v22 = vsel %vm704_vm0, %v2759_v18, -inf  ;;  %v915_v23 = vsel %vm704_vm0, %v2761_v19, -inf }
 0x149   : > { %v764_v24 = vpop.f32.mrf.mxu1  ;;  %910 = vmax.xlane.f32.xlu0 %v909_v22  ;;  %v856_v25 = vpop.f32.mrf.mxu0  ;;  %916 = vmax.xlane.f32.xlu1 %v915_v23 }
 0x14b   : > { %v1989_v26 = vpop.f32.mrf.mxu1  ;;  %v2001_v27 = vpop.f32.mrf.mxu0 }
 0x14d   : > { %v807_v28 = vpop.f32.mrf.mxu1 }
 0x14e   : > { %v808_v29 = vadd.f32 %v807_v28, %v711_v15 }
 0x14f   : > { %v1994_v30 = vpop.f32.mrf.mxu1 }
 0x150   : > { %v912_v31 = vsel %vm704_vm0, %v808_v29, -inf }
 0x151   : > { %v810_v32 = vpop.f32.mrf.mxu1  ;;  %913 = vmax.xlane.f32.xlu0 %v912_v31 }
 0x153   : > { %v1995_v33 = vpop.f32.mrf.mxu1 }
 0x155   : > { %v899_v35 = vpop.f32.mrf.mxu1 }
 0x156   : > { %v900_v36 = vadd.f32 %v899_v35, %v711_v15  ;;  %v1033_v15 = vld [vmem:[%s2686_s29 + $0xc] sm:$0xf] }
 0x157   : > { %v2006_v37 = vpop.f32.mrf.mxu1 }
 0x158   : > { %v918_v38 = vsel %vm704_vm0, %v900_v36, -inf }
 0x159   : > { %919 = vmax.xlane.f32.xlu1 %v918_v38  ;;  %v902_v39 = vpop.f32.mrf.mxu1  ;;  %v970_v38 = vld [vmem:[#allocation3 + $0x8] sm:$0xff] }
 0x15b   : > { %v2007_v40 = vpop.f32.mrf.mxu1 }
 0x1d2   : > { %v911_v43 = vpop.xlane.xlu0 %910  ;;  %v917_v44 = vpop.xlane.xlu1 %916 }
 0x1d3   : > { %v2774_v45 = vmax.f32 %v2769_v41, %v911_v43  ;;  %v2777_v46 = vmax.f32 %v2771_v42, %v917_v44 }
 0x1d5   : > { %v925_v47 = vsub.f32 %v2769_v41, %v2774_v45  ;;  %1227 = vst.msk [vmem:[#allocation2] sm:$0xff] %vm695_vm2, %v2774_v45  ;;  %939 = vperm.xlu0 %2164, %v2774_v45   ;;  %v927_v48 = vsub.f32 %v2771_v42, %v2777_v46  ;;  %1229 = vst.msk [vmem:[#allocation2 + $0x10] sm:$0xff] %vm695_vm2, %v2777_v46  ;;  %v971_v41 = vld [vmem:[#allocation3 + $0x10] sm:$0xff] }
 0x1d7   : > { %v929_v25 = vmul.f32 1.442695, %v925_v47  ;;  %v933_v28 = vmul.f32 1.442695, %v927_v48 }
 0x1da   : > { %v914_v50 = vpop.xlane.xlu0 %913 }
 0x1db   : > { %v922_v51 = vmax.f32 %v906_v49, %v914_v50 }
 0x1dd   : > { %v926_v52 = vsub.f32 %v906_v49, %v922_v51  ;;  %1228 = vst.msk [vmem:[#allocation2 + $0x8] sm:$0xff] %vm695_vm2, %v922_v51  ;;  %944 = vperm.xlu1 %2165, %v922_v51  }
 0x1df   : > { %v931_v23 = vmul.f32 1.442695, %v926_v52 }
 0x1e1   : > { %949 = vperm.xlu1 %2165, %v2777_v46   ;;  %v972_v46 = vld [vmem:[#allocation3 + $0x18] sm:$0xff] }
 0x1e2   : > { %v920_v56 = vpop.xlane.xlu1 %919 }
 0x1e3   : > { %v2795_v57 = vmax.f32 %v2789_v53, %v920_v56 }
 0x1e5   : > { %v928_v58 = vsub.f32 %v2789_v53, %v2795_v57  ;;  %1230 = vst.msk [vmem:[#allocation2 + $0x18] sm:$0xff] %vm695_vm2, %v2795_v57  ;;  %954 = vperm.xlu1 %2165, %v2795_v57  }
 0x250   : > { %v940_v61 = vpop.permute.xlu0 %939 }
 0x251   : > { %v957_v62 = vsub.f32 %v2759_v18, %v940_v61 }
 0x253   : > { %v961_v63 = vmul.f32 1.442695, %v957_v62 }
 0x255   : > { %2174 = vpow2.f32 %v961_v63 }
 0x258   : > { %v945_v1 = vpop.permute.xlu1 %944 }
 0x259   : > { %v958_v2 = vsub.f32 %v808_v29, %v945_v1  ;;  %v935_v29 = vmul.f32 1.442695, %v928_v58  ;;  %v998_v58 = vld [vmem:[#allocation4] sm:$0xff]  ;;  %v999_v1 = vld [vmem:[#allocation4 + $0x8] sm:$0xff] }
 0x25b   : > { %v963_v3 = vmul.f32 1.442695, %v958_v2 }
 0x25c   : > { %v950_v4 = vpop.permute.xlu1 %949 }
 0x25d   : > { %2176 = vpow2.f32 %v963_v3  ;;  %v959_v5 = vsub.f32 %v2761_v19, %v950_v4  ;;  %v1177_v19 = vsel %vm1037_vm4, %v1033_v15, 0 }
 0x25f   : > { %v965_v6 = vmul.f32 1.442695, %v959_v5 }
 0x260   : > { %v955_v7 = vpop.permute.xlu1 %954 }
 0x261   : > { %2178 = vpow2.f32 %v965_v6  ;;  %v960_v9 = vsub.f32 %v900_v36, %v955_v7  ;;  %v1000_v7 = vld [vmem:[#allocation4 + $0x10] sm:$0xff] }
 0x262   : > { %v2175_v10 = vpop.eup %2174 }
 0x263   : > { %v967_v11 = vmul.f32 1.442695, %v960_v9  ;;  %v977_v12 = vsel %vm704_vm0, %v2175_v10, 0.0  ;;  %v1026_v13 = vpack.c.bf16 %v2175_v10, %v2175_v10 }
 0x264   : > { %978 = vadd.xlane.f32.xlu1 %v977_v12 }
 0x265   : > { %2180 = vpow2.f32 %v967_v11  ;;  %2011 = vmatmul.mubr.msk.bf16.vlgmr.msra.gmra.mxu0 %vm704_vm0, %v1026_v13  ;;  %v1001_v13 = vld [vmem:[#allocation4 + $0x18] sm:$0xff] }
 0x266   : > { %2021 = vmatpush3.bf16.msra.mxu0 %v1131_v14  ;;  %2022 = vmatprep.mubr.msk.bf16.mxu0 %vm2438_vm1, %v2437_v0  ;;  %2182 = vpow2.f32 %v931_v23 }
 0x267   : > { %2032 = vmatprep.subr.bf16.mxu0 %v2437_v0  ;;  %2184 = vpow2.f32 %v929_v25 }
 0x268   : > { %2186 = vpow2.f32 %v933_v28 }
 0x269   : > { %2188 = vpow2.f32 %v935_v29 }
 0x26a   : > { %v2177_v16 = vpop.eup %2176 }
 0x26b   : > { %v980_v17 = vsel %vm704_vm0, %v2177_v16, 0.0  ;;  %v1027_v18 = vpack.c.bf16 %v2177_v16, %v2177_v16 }
 0x26c   : > { %981 = vadd.xlane.f32.xlu0 %v980_v17 }
 0x26d   : > { %2017 = vmatmul.mubr.msk.bf16.vlgmr.msra.gmra.mxu1 %vm704_vm0, %v1027_v18 }
 0x26e   : > { %v2179_v20 = vpop.eup %2178  ;;  %2027 = vmatpush3.bf16.msra.mxu1 %v1177_v19  ;;  %2028 = vmatprep.mubr.msk.bf16.mxu1 %vm2438_vm1, %v2437_v0 }
 0x26f   : > { %v983_v21 = vsel %vm704_vm0, %v2179_v20, 0.0  ;;  %v1028_v22 = vpack.c.bf16 %v2179_v20, %v2179_v20  ;;  %2040 = vmatprep.subr.bf16.mxu1 %v2437_v0 }
 0x270   : > { %984 = vadd.xlane.f32.xlu1 %v983_v21 }
 0x271   : > { %2023 = vmatmul.mubr.msk.bf16.vlgmr.msra.gmra.mxu0 %vm704_vm0, %v1028_v22 }
 0x272   : > { %v2181_v24 = vpop.eup %2180  ;;  %2036 = vmatprep.mubr.msk.bf16.mxu0 %vm2438_vm1, %v2437_v0 }
 0x273   : > { %v986_v26 = vsel %vm704_vm0, %v2181_v24, 0.0  ;;  %v1029_v27 = vpack.c.bf16 %v2181_v24, %v2181_v24  ;;  %v2183_v30 = vpop.eup %2182 }
 0x274   : > { %987 = vadd.xlane.f32.xlu1 %v986_v26  ;;  %v2185_v31 = vpop.eup %2184  ;;  %v974_v39 = vmul.f32 %v2183_v30, %v970_v38 }
 0x275   : > { %2029 = vmatmul.mubr.msk.bf16.vlgmr.msra.gmra.mxu1 %vm704_vm0, %v1029_v27  ;;  %v2187_v32 = vpop.eup %2186  ;;  %v973_v35 = vmul.f32 %v2185_v31, %v969_v34 }
 0x276   : > { %2044 = vmatprep.mubr.msk.bf16.mxu1 %vm2438_vm1, %v2437_v0  ;;  %v2189_v33 = vpop.eup %2188  ;;  %v975_v44 = vmul.f32 %v2187_v32, %v971_v41 }
 0x277   : > { %v976_v48 = vmul.f32 %v2189_v33, %v972_v46 }
 0x282   : > { %1009 = vperm.xlu0 %2164, %v2183_v30  }
 0x285   : > { %1004 = vperm.xlu1 %2165, %v2185_v31  }
 0x289   : > { %1014 = vperm.xlu1 %2165, %v2187_v32  }
 0x28d   : > { %1019 = vperm.xlu1 %2165, %v2189_v33  }
 0x2ed   : > { %v979_v36 = vpop.xlane.xlu1 %978 }
 0x2ee   : > { %v989_v37 = vadd.f32 %v979_v36, %v973_v35 }
 0x2f0   : > { %994 = vst.msk [vmem:[#allocation3] sm:$0xff] %vm695_vm2, %v989_v37 }
 0x2f5   : > { %v982_v40 = vpop.xlane.xlu0 %981 }
 0x2f6   : > { %v990_v42 = vadd.f32 %v982_v40, %v974_v39  ;;  %v2166_v39 = vld [vmem:[#allocation11 + $0x8] sm:$0xff]   ;;  %v2167_v40 = vld [vmem:[#allocation11] sm:$0xff]  }
 0x2f7   : > { %v1238_v43 = vld [vmem:[#allocation3] sm:$0xff]  ;;  %2033 = vmatpush3.bf16.msra.mxu0 %v2166_v39 }
 0x2f8   : > { %995 = vst.msk [vmem:[#allocation3 + $0x8] sm:$0xff] %vm695_vm2, %v990_v42  ;;  %2190 = vrcp.f32 %v1238_v43  ;;  %2034 = vmatprep.subr.bf16.mxu0 %v2437_v0 }
 0x2f9   : > { %v985_v45 = vpop.xlane.xlu1 %984 }
 0x2fa   : > { %v991_v47 = vadd.f32 %v985_v45, %v975_v44 }
 0x2fb   : > { %2035 = vmatpush3.bf16.msra.mxu0 %v2167_v40  ;;  %v1949_v40 = vld [vmem:[%s3004_s24] ss:$0 sm:$0xff] }
 0x2fc   : > { %996 = vst.msk [vmem:[#allocation3 + $0x10] sm:$0xff] %vm695_vm2, %v991_v47  ;;  %2048 = vmatprep.subr.bf16.mxu0 %v2437_v0  ;;  %v1932_v47 = vld [vmem:[%s2943_s6] ss:$0 sm:$0xff] }
 0x2fd   : > { %v988_v49 = vpop.xlane.xlu1 %987  ;;  %v1010_v2 = vpop.permute.xlu0 %1009 }
 0x2fe   : > { %v992_v50 = vadd.f32 %v988_v49, %v976_v48  ;;  %v1023_v6 = vmul.f32 %v1010_v2, %v999_v1  ;;  %v1498_v49 = vld [vmem:[%s689_s30] sm:$0xff]  ;;  %v2171_v1 = vld [vmem:[%s2950_s13 + $0x10] sm:$0xff]   ;;  %s1714_s30 = scalar_lea.sflag [#allocation7], %s2675_s5 }
 0x2ff   : > { %v1239_v51 = vld [vmem:[#allocation3 + $0x8] sm:$0xff] }
 0x300   : > { %997 = vst.msk [vmem:[#allocation3 + $0x18] sm:$0xff] %vm695_vm2, %v992_v50  ;;  %2192 = vrcp.f32 %v1239_v51 }
 0x301   : > { %v1005_v59 = vpop.permute.xlu1 %1004 }
 0x302   : > { %v1022_v60 = vmul.f32 %v1005_v59, %v998_v58 }
 0x303   : > { %v1240_v52 = vld [vmem:[#allocation3 + $0x10] sm:$0xff] }
 0x304   : > { %2194 = vrcp.f32 %v1240_v52 }
 0x305   : > { %v2191_v53 = vpop.eup %2190  ;;  %v1015_v4 = vpop.permute.xlu1 %1014 }
 0x306   : > { %1248 = vperm.xlu1 %2165, %v2191_v53   ;;  %v1024_v11 = vmul.f32 %v1015_v4, %v1000_v7 }
 0x307   : > { %v1241_v54 = vld [vmem:[#allocation3 + $0x18] sm:$0xff] }
 0x308   : > { %2196 = vrcp.f32 %v1241_v54 }
 0x309   : > { %v1020_v12 = vpop.permute.xlu1 %1019 }
 0x30a   : > { %v1025_v19 = vmul.f32 %v1020_v12, %v1001_v13  ;;  %v2172_v12 = vld [vmem:[%s2950_s13 + $0x8] sm:$0xff]   ;;  %v2173_v13 = vld [vmem:[%s2950_s13] sm:$0xff]  }
 0x30d   : > { %v2193_v55 = vpop.eup %2192 }
 0x30e   : > { %1253 = vperm.xlu0 %2164, %v2193_v55  }
 0x311   : > { %v2195_v56 = vpop.eup %2194 }
 0x312   : > { %1258 = vperm.xlu1 %2165, %v2195_v56  }
 0x315   : > { %v2197_v57 = vpop.eup %2196 }
 0x316   : > { %1263 = vperm.xlu0 %2164, %v2197_v57  }
 0x325   : > { %v1075_v61 = vpop.f32.mrf.mxu0 }
 0x326   : > { %v1219_v62 = vadd.f32 %v1075_v61, %v1022_v60  ;;  %v2168_v61 = vld [vmem:[#allocation13 + $0x8] sm:$0xff]  }
 0x327   : > { %v2012_v63 = vpop.f32.mrf.mxu0  ;;  %2041 = vmatpush3.bf16.msra.mxu1 %v2168_v61 }
 0x328   : > { %1223 = vst.msk [vmem:[#allocation4] sm:$0xff] %vm704_vm0, %v1219_v62  ;;  %v2169_v62 = vld [vmem:[#allocation13] sm:$0xff]   ;;  %2042 = vmatprep.subr.bf16.mxu1 %v2437_v0 }
 0x329   : > { %v1078_v3 = vpop.f32.mrf.mxu0  ;;  %v2170_v63 = vld [vmem:[%s2950_s13 + $0x18] sm:$0xff]  }
 0x32b   : > { %v2013_v5 = vpop.f32.mrf.mxu0  ;;  %2043 = vmatpush3.bf16.msra.mxu1 %v2169_v62 }
 0x32d   : > { %v1121_v8 = vpop.f32.mrf.mxu1 }
 0x32e   : > { %v1220_v9 = vadd.f32 %v1121_v8, %v1023_v6  ;;  %v1936_v6 = vld [vmem:[%s2944_s7] ss:$0 sm:$0xff] }
 0x32f   : > { %v2018_v10 = vpop.f32.mrf.mxu1  ;;  %v1234_v27 = vld [vmem:[#allocation4] sm:$0xff] }
 0x330   : > { %1224 = vst.msk [vmem:[#allocation4 + $0x8] sm:$0xff] %vm704_vm0, %v1220_v9  ;;  %v1937_v8 = vld [vmem:[%s2945_s8] ss:$0 sm:$0xff] }
 0x331   : > { %v1124_v14 = vpop.f32.mrf.mxu1  ;;  %v1167_v15 = vpop.f32.mrf.mxu0 }
 0x332   : > { %v1221_v16 = vadd.f32 %v1167_v15, %v1024_v11  ;;  %v1938_v14 = vld [vmem:[%s3000_s18] ss:$0 sm:$0xff]  ;;  %s1726_s18 = scalar_lea.hbm %s3005_s16, %s1951_s26 }
 0x333   : > { %v2019_v17 = vpop.f32.mrf.mxu1  ;;  %v2024_v18 = vpop.f32.mrf.mxu0 }
 0x334   : > { %1225 = vst.msk [vmem:[#allocation4 + $0x10] sm:$0xff] %vm704_vm0, %v1221_v16 }
 0x335   : > { %v1170_v20 = vpop.f32.mrf.mxu0  ;;  %v1213_v21 = vpop.f32.mrf.mxu1 }
 0x336   : > { %v1222_v22 = vadd.f32 %v1213_v21, %v1025_v19 }
 0x337   : > { %v2025_v23 = vpop.f32.mrf.mxu0  ;;  %v2030_v24 = vpop.f32.mrf.mxu1  ;;  %v1235_v34 = vld [vmem:[#allocation4 + $0x8] sm:$0xff] }
 0x338   : > { %1226 = vst.msk [vmem:[#allocation4 + $0x18] sm:$0xff] %vm704_vm0, %v1222_v22 }
 0x339   : > { %v1216_v25 = vpop.f32.mrf.mxu1 }
 0x33b   : > { %v2031_v26 = vpop.f32.mrf.mxu1  ;;  %v1236_v30 = vld [vmem:[#allocation4 + $0x10] sm:$0xff] }
 0x33f   : > { %v1237_v37 = vld [vmem:[#allocation4 + $0x18] sm:$0xff] }
 0x381   : > { %v1249_v28 = vpop.permute.xlu1 %1248 }
 0x382   : > { %v1266_v29 = vmul.f32 %v1249_v28, %v1234_v27 }
 0x384   : > { %1270 = vxpose.xlu1.b32.start.end [1/1] (short) (narrow) %v1266_v29, 8 }
 0x389   : > { %v1254_v33 = vpop.permute.xlu0 %1253 }
 0x38a   : > { %v1267_v35 = vmul.f32 %v1254_v33, %v1235_v34 }
 0x38d   : > { %v1259_v31 = vpop.permute.xlu1 %1258 }
 0x38e   : > { %v1268_v32 = vmul.f32 %v1259_v31, %v1236_v30 }
 0x390   : > { %1334 = vxpose.xlu0.b32.start.end [1/1] (short) (narrow) %v1268_v32, 8 }
 0x391   : > { %v1264_v36 = vpop.permute.xlu0 %1263 }
 0x392   : > { %v1269_v38 = vmul.f32 %v1264_v36, %v1237_v37 }
 0x394   : > { %1302 = vxpose.xlu0.b32.start.end [1/1] (short) (narrow) %v1267_v35, 8 }
 0x398   : > { %1366 = vxpose.xlu0.b32.start.end [1/1] (short) (narrow) %v1269_v38, 8  ;;  %v1948_v38 = vld [vmem:[%s3003_s25] ss:$0 sm:$0xff] }
 0x400   : > { %v1286_v41 = vpop.trf.xlu1 }
 0x401   : > { %1398 = vxpose.xlu0.b32.start [1/4] (short) (narrow) %v1286_v41, 8 }
 0x40c   : > { %v1350_v42 = vpop.trf.xlu0 }
 0x410   : > { %v1318_v43 = vpop.trf.xlu0 }
 0x411   : > { %1399 = vxpose.xlu0.b32.cont [2/4] (short) (narrow) %v1318_v43, 8 }
 0x414   : > { %v1382_v44 = vpop.trf.xlu0 }
 0x415   : > { %1400 = vxpose.xlu0.b32.cont [3/4] (short) (narrow) %v1350_v42, 8 }
 0x419   : > { %1401 = vxpose.xlu0.b32.end [4/4] (short) (narrow) %v1382_v44, 8 }
 0x489   : > { %v1414_v45 = vpop.trf.xlu0 }
 0x48a   : > { %v1430_v46 = vpack.c.bf16 %v1414_v45, %v1414_v45 }
 0x48c   : > { %2037 = vmatmul.mubr.msk.bf16.vlgmr.msra.gmra.mxu0 %vm1454_vm5, %v1430_v46 }
 0x48d   : > { %2056 = vmatprep.mubr.msk.bf16.mxu0 %vm2438_vm1, %v2437_v0  ;;  %2049 = vmatpush3.bf16.msra.mxu0 %v2170_v63 }
 0x48e   : > { %2050 = vmatprep.subr.bf16.mxu0 %v2437_v0 }
 0x491   : > { %2051 = vmatpush3.bf16.msra.mxu0 %v2171_v1 }
 0x492   : > { %2052 = vmatprep.subr.bf16.mxu0 %v2437_v0 }
 0x495   : > { %2053 = vmatpush3.bf16.msra.mxu0 %v2172_v12 }
 0x496   : > { %2054 = vmatprep.subr.bf16.mxu0 %v2437_v0  ;;  %v1942_v0 = vld [vmem:[%s3001_s17] ss:$0 sm:$0xff]  ;;  %s2441_s17 = smov [#allocation14]  }
 0x497   : > { %s2340_s22 = sshll.u32 %s2441_s17, 4  ;;  %s2341_s22 = int_to_ptr.vmem [resolvable:$false] %s2340_s22 }
 0x498   : > { %s2342_s21 = scalar_lea.vmem %s2341_s22, 256  ;;  %p2343_p6 = scmp.lt.s32.totalorder %s1729_s11, %s2341_s22 }
 0x499   : > { %2055 = vmatpush3.bf16.msra.mxu0 %v2173_v13  ;;  %p2344_p8 = scmp.lt.s32.totalorder %s2342_s21, %s2336_s1 }
 0x49b   : > { %p2345_p9 = por %p2344_p8, %p2343_p6 }
 0x49d   : > { %p2346_p3 = pnand %p2345_p9, %p2339_p2 }
 0x54c   : > { %v1492_v48 = vpop.f32.mrf.mxu0 }
 0x54d   : > { %v1493_v50 = vadd.f32 %v1932_v47, %v1492_v48 }
 0x54e   : > { %v2038_v51 = vpop.f32.mrf.mxu0 }
 0x54f   : > { %v1499_v52 = vadd.f32 %v1498_v49, %v1493_v50 }
 0x550   : > { %v1495_v53 = vpop.f32.mrf.mxu0 }
 0x551   : > { %v1502_v54 = vsel %vm1454_vm5, %v1499_v52, 0.0 }
 0x552   : > { %1503 = vadd.xlane.f32.xlu1 %v1502_v54  ;;  %v2039_v55 = vpop.f32.mrf.mxu0 }
 0x5db   : > { %v1504_v56 = vpop.xlane.xlu1 %1503 }
 0x5dc   : > { %v1506_v57 = vmul.f32 0.03125, %v1504_v56 }
 0x5de   : > { %v1507_v58 = vsub.f32 %v1499_v52, %v1506_v57 }
 0x5e0   : > { %v1508_v59 = vmul.f32 %v1507_v58, %v1507_v58 }
 0x5e2   : > { %v1509_v60 = vsel %vm1454_vm5, %v1508_v59, 0.0 }
 0x5e3   : > { %1510 = vadd.xlane.f32.xlu0 %v1509_v60 }
 0x66c   : > { %v1511_v2 = vpop.xlane.xlu0 %1510 }
 0x66d   : > { %v1512_v3 = vmul.f32 0.03125, %v1511_v2 }
 0x66f   : > { %v1513_v4 = vadd.f32 1e-05, %v1512_v3 }
 0x671   : > { %2198 = vrsqrt.f32 %v1513_v4 }
 0x67e   : > { %v2199_v5 = vpop.eup %2198 }
 0x67f   : > { %v1515_v7 = vmul.f32 %v2199_v5, %v1507_v58 }
 0x681   : > { %v1522_v9 = vmul.f32 %v1936_v6, %v1515_v7 }
 0x683   : > { %v1529_v10 = vadd.f32 %v1937_v8, %v1522_v9 }
 0x685   : > { %v1530_v11 = vpack.c.bf16 %v1529_v10, %v1529_v10 }
 0x687   : > { %2045 = vmatmul.mubr.msk.bf16.vlgmr.msra.gmra.mxu1 %vm1454_vm5, %v1530_v11 }
 0x747   : > { %v1591_v15 = vpop.f32.mrf.mxu1 }
 0x748   : > { %v1592_v16 = vadd.f32 %v1938_v14, %v1591_v15 }
 0x749   : > { %v2046_v17 = vpop.f32.mrf.mxu1 }
 0x74a   : > { %v1597_v18 = vmax.f32 %v1592_v16, 0.0 }
 0x74b   : > { %v1594_v19 = vpop.f32.mrf.mxu1 }
 0x74c   : > { %v1598_v20 = vpack.c.bf16 %v1597_v18, %v1597_v18 }
 0x74d   : > { %v2047_v21 = vpop.f32.mrf.mxu1 }
 0x74e   : > { %2057 = vmatmul.mubr.msk.bf16.vlgmr.msra.gmra.mxu0 %vm1638_vm6, %v1598_v20 }
 0x80e   : > { %v1676_v22 = vpop.f32.mrf.mxu0 }
 0x80f   : > { %v1677_v23 = vadd.f32 %v1942_v0, %v1676_v22 }
 0x810   : > { %v2058_v24 = vpop.f32.mrf.mxu0 }
 0x811   : > { %v1682_v25 = vadd.f32 %v1677_v23, %v1529_v10 }
 0x812   : > { %v1679_v26 = vpop.f32.mrf.mxu0 }
 0x813   : > { %v1685_v27 = vsel %vm1454_vm5, %v1682_v25, 0.0 }
 0x814   : > { %1686 = vadd.xlane.f32.xlu1 %v1685_v27  ;;  %v2059_v28 = vpop.f32.mrf.mxu0 }
 0x89d   : > { %v1687_v29 = vpop.xlane.xlu1 %1686 }
 0x89e   : > { %v1688_v30 = vmul.f32 0.03125, %v1687_v29 }
 0x8a0   : > { %v1689_v31 = vsub.f32 %v1682_v25, %v1688_v30 }
 0x8a2   : > { %v1690_v32 = vmul.f32 %v1689_v31, %v1689_v31 }
 0x8a4   : > { %v1691_v33 = vsel %vm1454_vm5, %v1690_v32, 0.0 }
 0x8a5   : > { %1692 = vadd.xlane.f32.xlu1 %v1691_v33 }
 0x92e   : > { %v1693_v34 = vpop.xlane.xlu1 %1692 }
 0x92f   : > { %v1694_v35 = vmul.f32 0.03125, %v1693_v34 }
 0x931   : > { %v1695_v36 = vadd.f32 1e-05, %v1694_v35 }
 0x933   : > { %2200 = vrsqrt.f32 %v1695_v36 }
 0x940   : > { %v2201_v37 = vpop.eup %2200 }
 0x941   : > { %v1697_v39 = vmul.f32 %v2201_v37, %v1689_v31 }
 0x943   : > { %v1704_v41 = vmul.f32 %v1948_v38, %v1697_v39 }
 0x945   : > { %v1711_v42 = vadd.f32 %v1949_v40, %v1704_v41 }
 0x947   : > { %1712 = vst.msk [vmem:[%s674_s27] sm:$0xff] %vm1454_vm5, %v1711_v42 }
 0x948   : > { %2349 = shalt.err (!%p2346_p3)
}
 0x949   : > { %s2350_s4 = scalar_lea.hbm %s1726_s18, 128  ;;  %s2354_s25 = scalar_lea.hbm %s3005_s16, 256 }
 0x94a   : > { %p2351_p4 = scmp.ne.s32.totalorder %s1726_s18, %s2350_s4  ;;  %p2355_p5 = scmp.lt.s32.totalorder %s1726_s18, %s3005_s16 }
 0x94b   : > { %p2356_p7 = scmp.lt.s32.totalorder %s2354_s25, %s2350_s4 }
 0x94c   : > { %p2352_p11 = pnand %p2351_p4, %p2624_p13 }
 0x94d   : > { %p2357_p10 = por %p2356_p7, %p2355_p5 }
 0x94e   : > { %p2353_p12 = pneg %p2352_p11 }
 0x950   : > { %p2358_p0 = pnand %p2357_p10, %p2353_p12 }
 0x952   : > { %2361 = shalt.err (!%p2358_p0)
}
 0x953   : > { %2076 = dma.vmem_to_hbm [thread:$0]  (%p2624_p13), %s1729_s11, 128, %s1726_s18, %s1714_s30  }
 0x954 PF: > { %s3006_s24 = sld [smem:[#allocation20_spill]]  ;;  %p3009_p2 = scmp.ge.s32.totalorder %s2428_s23, 2 }
 0x955   : > { %s3007_s26 = sld [smem:[#allocation22_spill]] }
 0x95a   : > { %s1740_s27 = sand.u32 1, %s3006_s24  }
 0x95b   : > { %p3008_p1 = scmp.ne.s32.totalorder %s3007_s26, 0  ;;  %s1741_s12 = scalar_lea.sflag [#allocation7], %s1740_s27 }
 0x95d   : > { %p2096_p6 = pnand %p3009_p2, %p3008_p1 }
 0x95f   : > { %p2097_p8 = pneg %p2096_p6 }
 0x961   : > { %2403 = dma.done.wait (%p2097_p8), %s1741_s12, 128  }
 0x962   : > { %2405 = vsyncadd (%p2097_p8), %s1741_s12, 4294967168  ;;  %s35_s23 = sadd.s32 1, %s2428_s23   ;;  %s3010_s21 = sld [smem:[#allocation21_spill]] }
 0x963   : > { %p32_p9 = scmp.ge.s32.totalorder %s35_s23, 4   ;;  %s3011_s22 = sld [smem:[#allocation24_spill]] }
 0x964   : > { %s3012_s18 = smov %s2412_s19  ;;  %s3013_s19 = smov %s2416_s20 }
 0x965   : > { %s3014_s20 = smov %s2636_s15  ;;  %34 = sbr.rel (!%p32_p9) target bundleno = 19 (0x13), region = 165 }
 0x96a   :  { %1746 = vsyncpa [#allocation6], 1 }
 0x96b   :  { %1748 = vsyncpa [#allocation6 + $0x1], 1 }
 0x96c   :  { %1749 = vsyncpa [#allocation9], 1 }
 0x96d   :  { %1751 = vsyncpa [#allocation9 + $0x1], 1 }
 0x96e   :  { %1752 = vsyncpa [#allocation12], 1 }
 0x96f   :  { %1753 = vsyncpa [#allocation7], 1 }
 0x970   :  { %1755 = vsyncpa [#allocation7 + $0x1], 1 }

// kernel: tpu_custom_call.1
= control target key start
LH: loop header
LB: loop body
LE: loop exit
PB: predicated region body
PF: predicated region fallthrough
CT: control target
= control target key end

     0   :  { %s2954_s0 = inlined_call_operand.vmem [shape: bf16[2,4,8,8], index: 0, kind: input, shape index: {}]   ;;  %s2955_s1 = inlined_call_operand.hbm [shape: bf16[2,4,8,8], index: 1, kind: input, shape index: {}]   ;;  %s2956_s2 = inlined_call_operand.hbm [shape: bf16[2,4,8,8], index: 2, kind: input, shape index: {}]   ;;  %s2957_s3 = inlined_call_operand.vmem [shape: f32[2,8,32], index: 3, kind: input, shape index: {}]   ;;  %s2958_s4 = inlined_call_operand.hbm [shape: f32[1,8,8], index: 4, kind: input, shape index: {}]   ;;  %s2959_s5 = inlined_call_operand.hbm [shape: bf16[32,32], index: 5, kind: input, shape index: {}]   ;;  %s2960_s6 = inlined_call_operand.vmem [shape: f32[1,32], index: 6, kind: input, shape index: {}]   ;;  %s2961_s7 = inlined_call_operand.vmem [shape: f32[1,32], index: 7, kind: input, shape index: {}]   ;;  %s2962_s8 = inlined_call_operand.vmem [shape: f32[1,32], index: 8, kind: input, shape index: {}]   ;;  %s2963_s9 = inlined_call_operand.vmem [shape: f32[1,32], index: 9, kind: input, shape index: {}]   ;;  %s2964_s10 = inlined_call_operand.vmem [shape: f32[1,32], index: 10, kind: input, shape index: {}]   ;;  %s2965_s11 = inlined_call_operand.hbm [shape: bf16[32,64], index: 11, kind: input, shape index: {}]   ;;  %s2966_s12 = inlined_call_operand.vmem [shape: f32[1,64], index: 12, kind: input, shape index: {}]   ;;  %s2967_s13 = inlined_call_operand.vmem [shape: bf16[64,32], index: 13, kind: input, shape index: {}]   ;;  %s2968_s14 = inlined_call_operand.vmem [shape: f32[1,32], index: 14, kind: input, shape index: {}]   ;;  %s2969_s15 = inlined_call_operand.hbm [shape: f32[2,8,32], index: 15, kind: output, shape index: {}]  }
   0x1   :  { %2984 = sst [smem:[#allocation25_spill]] %s2955_s1 }
   0x2   :  { %2985 = sst [smem:[#allocation26_spill]] %s2958_s4 }
   0x3   :  { %2986 = sst [smem:[#allocation27_spill]] %s2959_s5 }
   0x4   :  { %2987 = sst [smem:[#allocation28_spill]] %s2963_s9 }
   0x5   :  { %2988 = sst [smem:[#allocation29_spill]] %s2964_s10 }
   0x6   :  { %2989 = sst [smem:[#allocation30_spill]] %s2965_s11 }
   0x7   :  { %2990 = sst [smem:[#allocation31_spill]] %s2966_s12 }
   0x8   :  { %2991 = sst [smem:[#allocation32_spill]] %s2968_s14 }
   0x9   :  { %2992 = sst [smem:[#allocation33_spill]] %s2969_s15 }
   0xa   :  { %20 = vsyncpa [#allocation6], 0 }
   0xb   :  { %22 = vsyncpa [#allocation6 + $0x1], 0 }
   0xc   :  { %23 = vsyncpa [#allocation9], 0 }
   0xd   :  { %25 = vsyncpa [#allocation9 + $0x1], 0 }
   0xe   :  { %26 = vsyncpa [#allocation12], 0 }
   0xf   :  { %27 = vsyncpa [#allocation7], 0 }
  0x10   :  { %29 = vsyncpa [#allocation7 + $0x1], 0  ;;  %s2517_s18 = smov 0   ;;  %s2519_s19 = smov 0  }
  0x11   :  { %s2521_s20 = smov 0   ;;  %s2523_s21 = smov 0  }
  0x12   :  { %s2525_s22 = smov 0   ;;  %s2527_s23 = smov 0  }
  0x13 LB: > { %2993 = sst [smem:[#allocation20_spill]] %s2403_s18  ;;  %s2548_s24 = sadd.s32 4294967295, %s2423_s23   ;;  %s2423_s23 = sphi %s2527_s23, %s35_s23   ;;  %s2419_s22 = sphi %s2525_s22, %s3028_s22   ;;  %s2415_s21 = sphi %s2523_s21, %s3027_s21   ;;  %s2411_s20 = sphi %s2521_s20, %s3031_s20   ;;  %s2407_s19 = sphi %s2519_s19, %s3030_s19   ;;  %s2403_s18 = sphi %s2517_s18, %s3029_s18  }
  0x14   : > { %2994 = sst [smem:[#allocation21_spill]] %s2419_s22  ;;  %s1877_s25 = sadd.s32 4294967294, %s2423_s23  }
  0x15   : > { %p104_p0 = scmp.ne.s32.totalorder %s2407_s19, %s2403_s18  ;;  %p2973_p1 = scmp.eq.s32.totalorder %s2548_s24, 0 }
  0x16   : > { %p430_p3 = scmp.eq.s32.totalorder %s1877_s25, 1  ;;  %p1878_p5 = scmp.ge.s32.totalorder %s2423_s23, 1 }
  0x17   : > { %p2557_p4 = por %p2973_p1, %p104_p0  ;;  %p437_p7 = scmp.lt.s32.totalorder %s2423_s23, 3 }
  0x18   : > { %p2562_p6 = por %p430_p3, %p104_p0  ;;  %s2425_s29 = smov [#allocation10]  }
  0x19   : > { %s2995_s26 = scalar_select %p2557_p4, 1, 0 }
  0x1a   : > { %s2996_s27 = scalar_select %p2562_p6, 1, 0 }
  0x1b   : > { %p2567_p8 = pnand %p1878_p5, %p437_p7  ;;  %s453_s30 = sshll.u32 %s2425_s29, 4  ;;  %s454_s30 = int_to_ptr.vmem [resolvable:$true] %s453_s30 }
  0x1c   : > { %2997 = sst [smem:[#allocation22_spill]] %s2996_s27  ;;  %s2426_s16 = smov [#allocation11]  }
  0x1d   : > { %s2998_s28 = scalar_select %p2567_p8, 1, 0 }
  0x1e   : > { %p2075_p10 = pneg %p2567_p8  ;;  %s463_s17 = sshll.u32 %s2426_s16, 4  ;;  %s464_s17 = int_to_ptr.vmem [resolvable:$true] %s463_s17 }
  0x1f   : > { %s2427_s27 = smov [#allocation13]   ;;  %s2208_s15 = scalar_lea.vmem %s454_s30, 128 }
  0x20   : > { %p2576_p11 = pnand %p2075_p10, %p2973_p1  ;;  %s491_s18 = sshll.u32 %s2427_s27, 4  ;;  %s492_s18 = int_to_ptr.vmem [resolvable:$true] %s491_s18 }
  0x21   : > { %p2209_p13 = scmp.ne.s32.totalorder %s454_s30, %s2208_s15  ;;  %p2216_p5 = scmp.lt.s32.totalorder %s454_s30, %s454_s30 }
  0x22   : > { %p2199_p12 = pneg %p2576_p11  ;;  %p2217_p7 = scmp.lt.s32.totalorder %s2208_s15, %s2208_s15 }
  0x24   : > { %p2211_p0 = pnand %p2209_p13, %p2199_p12  ;;  %p2218_p9 = por %p2217_p7, %p2216_p5 }
  0x26   : > { %p2212_p3 = pneg %p2211_p0 }
  0x28   : > { %p2219_p10 = pnand %p2218_p9, %p2212_p3 }
  0x2a   : > { %2222 = shalt.err (!%p2219_p10)
}
  0x2b   : > { %s3000_s4 = sld [smem:[#allocation26_spill]]  ;;  %s2234_s27 = scalar_lea.vmem %s464_s17, 256 }
  0x2c   : > { %p2235_p1 = scmp.ne.s32.totalorder %s464_s17, %s2234_s27  ;;  %p2242_p13 = scmp.lt.s32.totalorder %s464_s17, %s464_s17 }
  0x2d   : > { %p2243_p0 = scmp.lt.s32.totalorder %s2234_s27, %s2234_s27 }
  0x2e   : > { %p2237_p2 = pnand %p2235_p1, %p2199_p12 }
  0x2f   : > { %p2244_p4 = por %p2243_p0, %p2242_p13 }
  0x30   : > { %p2238_p6 = pneg %p2237_p2 }
  0x31   : > { %2078 = dma.hbm_to_vmem [thread:$0]  (!%p2576_p11), %s3000_s4, 128, %s454_s30, [#allocation9]  }
  0x32   : > { %p2245_p8 = pnand %p2244_p4, %p2238_p6 }
  0x34   : > { %2248 = shalt.err (!%p2245_p8)
}
  0x35   : > { %s2976_s15 = smov 64   ;;  %s2978_s10 = smov 4  }
  0x36   : > { %s3001_s5 = sld [smem:[#allocation27_spill]]  ;;  %s2260_s16 = scalar_lea.vmem %s492_s18, 256 }
  0x37   : > { %p2261_p1 = scmp.ne.s32.totalorder %s492_s18, %s2260_s16  ;;  %p2268_p6 = scmp.lt.s32.totalorder %s492_s18, %s492_s18 }
  0x38   : > { %p2269_p8 = scmp.lt.s32.totalorder %s2260_s16, %s2260_s16 }
  0x39   : > { %p2263_p2 = pnand %p2261_p1, %p2199_p12 }
  0x3a   : > { %p2270_p9 = por %p2269_p8, %p2268_p6 }
  0x3b   : > { %p2264_p4 = pneg %p2263_p2 }
  0x3c   : > { %2081 = dma.hbm_to_vmem [thread:$0]  (!%p2576_p11), %s3001_s5, 256, %s464_s17, [#allocation12], %s2976_s15, %s2976_s15, %s2978_s10  }
  0x3d   : > { %p2271_p3 = pnand %p2270_p9, %p2264_p4 }
  0x3f   : > { %2274 = shalt.err (!%p2271_p3)
}
  0x40   : > { %s3002_s11 = sld [smem:[#allocation30_spill]]  ;;  %s91_s17 = sadd.s32 1, %s2411_s20 }
  0x41   : > { %s54_s25 = sadd.s32 1, %s2419_s22  ;;  %p98_p12 = scmp.ne.s32.totalorder %s2411_s20, %s2407_s19 }
  0x42   : > { %p56_p5 = scmp.ge.s32.totalorder %s54_s25, 2  ;;  %p99_p7 = scmp.eq.s32.totalorder %s2423_s23, 0 }
  0x43   : > { %p3003_p10 = scmp.eq.s32.totalorder %s2548_s24, 1  ;;  %p2099_p0 = scmp.lt.s32.totalorder %s2423_s23, 2 }
  0x44   : > { %s3033_s25 = smov (%p56_p5, %s54_s25), 0  ;;  %p100_p1 = por %p99_p7, %p98_p12 }
  0x45   : > { %p2619_p13 = por %p3003_p10, %p98_p12  ;;  %3006 = sst [smem:[#allocation24_spill]] %s3033_s25 }
  0x46   : > { %2084 = dma.hbm_to_vmem [thread:$0]  (!%p2576_p11), %s3002_s11, 256, %s492_s18, [#allocation12], %s2976_s15, %s2976_s15, %s2978_s10  }
  0x47   : > { %s3004_s29 = scalar_select %p2619_p13, 1, 0 }
  0x48   : > { %s525_s16 = sand.u32 1, %s2411_s20   ;;  %s86_s27 = ssub.s32 %s2419_s22, %s3033_s25 }
  0x49   : > { %3005 = sst [smem:[#allocation23_spill]] %s3004_s29  ;;  %p89_p2 = scmp.eq.s32.totalorder %s86_s27, 0 }
  0x4a   : > { %s1883_s18 = sshll.u32 %s525_s16, 4  ;;  %s1930_s30 = sshll.u32 %s2419_s22, 8 }
  0x4b   : > { %s2631_s15 = scalar_select %p89_p2, %s2411_s20, %s91_s17  }
  0x4c   : > { %s3007_s1 = sld [smem:[#allocation25_spill]]  ;;  %s529_s11 = scalar_lea.vmem [#allocation5], %s1883_s18 }
  0x4d   : > { %s537_s9 = sshll.u32 %s529_s11, 4  ;;  %p2638_p11 = pnand %p2099_p0, %p100_p1  ;;  %s538_s9 = int_to_ptr.vmem [resolvable:$true] %s537_s9 }
  0x4e   : > { %s2645_s27 = scalar_lea.hbm %s2956_s2, %s1930_s30  ;;  %s551_s17 = scalar_lea.vmem [#allocation8], %s1883_s18 }
  0x4f   : > { %s559_s25 = sshll.u32 %s551_s17, 4  ;;  %s526_s22 = scalar_lea.sflag [#allocation6], %s525_s16  ;;  %s560_s25 = int_to_ptr.vmem [resolvable:$true] %s559_s25 }
  0x50   : > { %p2277_p4 = pneg %p2638_p11  ;;  %s2288_s4 = scalar_lea.vmem %s538_s9, 256 }
  0x51   : > { %p2289_p6 = scmp.ne.s32.totalorder %s538_s9, %s2288_s4  ;;  %s2430_s10 = smov [#allocation5]  }
  0x52   : > { %s536_s5 = scalar_lea.hbm %s3007_s1, %s1930_s30  ;;  %s2293_s11 = sshll.u32 %s2430_s10, 4  ;;  %s2294_s11 = int_to_ptr.vmem [resolvable:$false] %s2293_s11 }
  0x53   : > { %p2291_p8 = pnand %p2289_p6, %p2277_p4  ;;  %s2295_s1 = scalar_lea.vmem %s2294_s11, 512 }
  0x54   : > { %p2296_p3 = scmp.lt.s32.totalorder %s538_s9, %s2294_s11  ;;  %p2297_p12 = scmp.lt.s32.totalorder %s2295_s1, %s2288_s4 }
  0x55   : > { %p2292_p9 = pneg %p2291_p8 }
  0x56   : > { %p2298_p5 = por %p2297_p12, %p2296_p3 }
  0x58   : > { %p2299_p7 = pnand %p2298_p5, %p2292_p9 }
  0x5a   : > { %2302 = shalt.err (!%p2299_p7)
}
  0x5b   : > { %s3009_s12 = smov 4   ;;  %s3010_s14 = smov 64  }
  0x5c   : > { %2088 = dma.hbm_to_vmem [thread:$0]  (!%p2638_p11), %s536_s5, 256, %s538_s9, %s526_s22, %s3010_s14, %s3010_s14, %s3009_s12  }
  0x5d   : > { %s547_s16 = sand.u32 1, %s2423_s23   ;;  %s2316_s30 = scalar_lea.vmem %s560_s25, 256 }
  0x5e   : > { %s548_s18 = scalar_lea.sflag [#allocation9], %s547_s16  ;;  %p2317_p10 = scmp.ne.s32.totalorder %s560_s25, %s2316_s30 }
  0x5f   : > { %s2431_s1 = smov [#allocation8]  }
  0x60   : > { %p2319_p0 = pnand %p2317_p10, %p2277_p4  ;;  %s2321_s17 = sshll.u32 %s2431_s1, 4  ;;  %s2322_s17 = int_to_ptr.vmem [resolvable:$false] %s2321_s17 }
  0x61   : > { %s2323_s4 = scalar_lea.vmem %s2322_s17, 512  ;;  %p2324_p2 = scmp.lt.s32.totalorder %s560_s25, %s2322_s17 }
  0x62   : > { %p2320_p1 = pneg %p2319_p0  ;;  %p2325_p6 = scmp.lt.s32.totalorder %s2323_s4, %s2316_s30 }
  0x64   : > { %p2326_p8 = por %p2325_p6, %p2324_p2 }
  0x66   : > { %p2327_p9 = pnand %p2326_p8, %p2320_p1 }
  0x68   : > { %2330 = shalt.err (!%p2327_p9)
}
  0x69   : > { %2091 = dma.hbm_to_vmem [thread:$0]  (!%p2638_p11), %s2645_s27, 256, %s560_s25, %s548_s18, %s3010_s14, %s3010_s14, %s3009_s12  }
  0x6a   : > { %p3011_p3 = scmp.ne.s32.totalorder %s2998_s28, 0 }
  0x6b   : > { %s2670_s5 = sand.u32 (!%p3011_p3), 1, %s2407_s19   ;;  %p3012_p4 = scmp.ne.s32.totalorder (!%p3011_p3), %s2995_s26, 0 }
  0x6c   : > { %581 = sbr.rel (%p3011_p3) target bundleno = 2142 (0x85e), region = 80  ;;  %s1890_s9 = sshll.u32 (!%p3011_p3), %s2670_s5, 4 }
  0x6d   : > { %s584_s22 = scalar_lea.sflag (!%p3011_p3), [#allocation6], %s2670_s5  ;;  %s2674_s10 = scalar_lea.vmem (!%p3011_p3), [#allocation5], %s1890_s9 }
  0x71   : > { %2382 = dma.done.wait (%p3012_p4), %s584_s22, 256  }
  0x72   : > { %2384 = vsyncadd (%p3012_p4), %s584_s22, 4294967040  ;;  %s592_s25 = sand.u32 1, %s2548_s24   ;;  %s2681_s29 = scalar_lea.vmem [#allocation8], %s1890_s9 }
  0x73   : > { %s593_s28 = scalar_lea.sflag [#allocation9], %s592_s25 }
  0x74   : > { %2386 = dma.done.wait (%p3012_p4), %s593_s28, 256  }
  0x75   : > { %2388 = vsyncadd (%p3012_p4), %s593_s28, 4294967040  ;;  %p3013_p11 = scmp.eq.s32.totalorder %s2548_s24, 0 }
  0x77   : > { %2390 = dma.done.wait (%p3013_p11), [#allocation9], 128   ;;  %p3014_p12 = pmov %p3013_p11 }
  0x78   : > { %p3015_p5 = pmov %p3013_p11 }
  0x79   : > { %2392 = vsyncadd (%p3014_p12), [#allocation9], 4294967168 }
  0x7a   : > { %2394 = dma.done.wait (%p3015_p5), [#allocation12], 512   ;;  %p3016_p7 = pmov %p3015_p5 }
  0x7b   : > { %vm704_vm0 = vcmask 64512   ;;  %p675_p10 = scmp.lt.s32.totalorder %s2415_s21, 1  ;;  %v2432_v0 = vmov 0.0   ;;  %vm2433_vm1 = vmmov 0   ;;  %v716_v1 = vld [vmem:[%s2674_s10] sm:$0xf] }
  0x7c   : > { %2396 = vsyncadd (%p3016_p7), [#allocation12], 4294966784  ;;  %1965 = vmatprep.subr.bf16.mxu0 %v2432_v0  ;;  %1971 = vmatprep.subr.bf16.mxu1 %v2432_v0  ;;  %705 = vst.msk [vmem:[#allocation4] sm:$0xff] %vm704_vm0, %v2432_v0  ;;  %v717_v2 = vld [vmem:[%s2674_s10 + $0x4] sm:$0xf]  ;;  %v725_v3 = vsel %vm704_vm0, %v716_v1, 0 }
  0x7d   : > { %706 = vst.msk [vmem:[#allocation4 + $0x8] sm:$0xff] %vm704_vm0, %v2432_v0  ;;  %707 = vst.msk [vmem:[#allocation4 + $0x10] sm:$0xff] %vm704_vm0, %v2432_v0  ;;  %1967 = vmatprep.mubr.msk.bf16.mxu0 %vm2433_vm1, %v2432_v0  ;;  %1973 = vmatprep.mubr.msk.bf16.mxu1 %vm2433_vm1, %v2432_v0  ;;  %s2711_s24 = scalar_select %p675_p10, %s2415_s21, 1  ;;  %v771_v4 = vsel %vm704_vm0, %v717_v2, 0  ;;  %v718_v5 = vld [vmem:[%s2674_s10 + $0x8] sm:$0xf] }
  0x7e   : > { %708 = vst.msk [vmem:[#allocation4 + $0x18] sm:$0xff] %vm704_vm0, %v2432_v0  ;;  %1966 = vmatpush3.bf16.xpose.msra.mxu0 %v725_v3  ;;  %1972 = vmatpush3.bf16.xpose.msra.mxu1 %v771_v4  ;;  %v719_v6 = vld [vmem:[%s2674_s10 + $0xc] sm:$0xf]  ;;  %v817_v9 = vsel %vm704_vm0, %v718_v5, 0  ;;  %vm695_vm2 = vcmask 7168   ;;  %v709_v14 = vld [vmem:[#allocation10] sm:$0xff] }
  0x7f   : > { %s1932_s26 = sshll.u32 %s2711_s24, 4  ;;  %1977 = vmatprep.subr.bf16.mxu0 %v2432_v0  ;;  %1983 = vmatprep.subr.bf16.mxu1 %v2432_v0  ;;  %v863_v10 = vsel %vm704_vm0, %v719_v6, 0  ;;  %v2434_v13 = vmov -1e+30   ;;  %700 = vst.msk [vmem:[#allocation3] sm:$0xff] %vm695_vm2, %v2432_v0  ;;  %701 = vst.msk [vmem:[#allocation3 + $0x8] sm:$0xff] %vm695_vm2, %v2432_v0 }
  0x80   : > { %s682_s12 = scalar_lea.vmem %s2954_s0, %s1932_s26  ;;  %696 = vst.msk [vmem:[#allocation2] sm:$0xff] %vm695_vm2, %v2434_v13  ;;  %697 = vst.msk [vmem:[#allocation2 + $0x8] sm:$0xff] %vm695_vm2, %v2434_v13  ;;  %vm710_vm3 = vcmp.eq.f32.partialorder %v709_v14, 0.0  ;;  %v2435_v40 = vmov 0   ;;  %v1030_v56 = vld [vmem:[%s2681_s29] sm:$0xf] }
  0x81   : > { %v712_v7 = vld [vmem:[%s682_s12] sm:$0xf]  ;;  %v713_v8 = vld [vmem:[%s682_s12 + $0x4] sm:$0xf]  ;;  %v714_v11 = vld [vmem:[%s682_s12 + $0x8] sm:$0xf]  ;;  %2161 = vset.pattern.permute.xlu0 %v2435_v40  ;;  %2162 = vset.pattern.permute.xlu1 %v2435_v40 }
  0x82   : > { %v715_v12 = vld [vmem:[%s682_s12 + $0xc] sm:$0xf]  ;;  %698 = vst.msk [vmem:[#allocation2 + $0x10] sm:$0xff] %vm695_vm2, %v2434_v13  ;;  %699 = vst.msk [vmem:[#allocation2 + $0x18] sm:$0xff] %vm695_vm2, %v2434_v13  ;;  %v711_v15 = vsel %vm710_vm3, -1e+20, %v2432_v0 }
  0x83   : > { %702 = vst.msk [vmem:[#allocation3 + $0x10] sm:$0xff] %vm695_vm2, %v2432_v0  ;;  %703 = vst.msk [vmem:[#allocation3 + $0x18] sm:$0xff] %vm695_vm2, %v2432_v0  ;;  %vm1037_vm4 = vcmask 1043456   ;;  %v1031_v59 = vld [vmem:[%s2681_s29 + $0x4] sm:$0xf]  ;;  %s1898_s14 = sshll.u32 %s2711_s24, 3 }
  0x84   : > { %v1039_v58 = vsel %vm1037_vm4, %v1030_v56, 0  ;;  %v1085_v60 = vsel %vm1037_vm4, %v1031_v59, 0  ;;  %v1273_v56 = vld [vmem:[#allocation11 + $0x4] sm:$0xf]  ;;  %s689_s30 = scalar_lea.vmem %s2957_s3, %s1898_s14  ;;  %vm1476_vm5 = vcmask 261120   ;;  %s3017_s18 = sld [smem:[#allocation31_spill]] }
  0x85   : > { %1968 = vmatmul.mubr.msk.bf16.vlgmr.msra.gmra.mxu0 %vm704_vm0, %v712_v7  ;;  %1974 = vmatmul.mubr.msk.bf16.vlgmr.msra.gmra.mxu1 %vm704_vm0, %v713_v8  ;;  %vm1613_vm6 = vcmask 523264   ;;  %s3018_s17 = sld [smem:[#allocation32_spill]]  ;;  %s1895_s4 = sshll.u32 %s2670_s5, 3 }
  0x86   : > { %1978 = vmatpush3.bf16.xpose.msra.mxu0 %v817_v9  ;;  %1984 = vmatpush3.bf16.xpose.msra.mxu1 %v863_v10  ;;  %v1032_v10 = vld [vmem:[%s2681_s29 + $0x8] sm:$0xf]  ;;  %s3020_s25 = sld [smem:[#allocation28_spill]]  ;;  %s1927_s26 = sshll.u32 %s2415_s21, 7 }
  0x87   : > { %1979 = vmatprep.mubr.msk.bf16.mxu0 %vm2433_vm1, %v2432_v0  ;;  %1985 = vmatprep.mubr.msk.bf16.mxu1 %vm2433_vm1, %v2432_v0  ;;  %v2764_v41 = vld [vmem:[#allocation2] sm:$0xff]  ;;  %v2767_v44 = vld [vmem:[#allocation2 + $0x8] sm:$0xff]  ;;  %v1131_v14 = vsel %vm1037_vm4, %v1032_v10, 0  ;;  %s3021_s24 = sld [smem:[#allocation29_spill]]  ;;  %s674_s27 = scalar_lea.vmem [#allocation14], %s1895_s4 }
  0x88   : > { %1989 = vmatprep.subr.bf16.mxu0 %v2432_v0  ;;  %1995 = vmatprep.subr.bf16.mxu1 %v2432_v0  ;;  %s1703_s11 = sshll.u32 %s674_s27, 4  ;;  %s3022_s16 = sld [smem:[#allocation33_spill]]  ;;  %s1704_s11 = int_to_ptr.vmem [resolvable:$true] %s1703_s11 }
  0x89   : > { %v2774_v48 = vld [vmem:[#allocation2 + $0x10] sm:$0xff]  ;;  %v2784_v52 = vld [vmem:[#allocation2 + $0x18] sm:$0xff]  ;;  %s2331_s1 = scalar_lea.vmem %s1704_s11, 128 }
  0x8a   : > { %p2332_p0 = scmp.ne.s32.totalorder %s1704_s11, %s2331_s1 }
  0x8c   : > { %p2333_p1 = pnand %p2332_p0, %p2619_p13 }
  0x8d   : > { %1980 = vmatmul.mubr.msk.bf16.vlgmr.msra.gmra.mxu0 %vm704_vm0, %v714_v11  ;;  %1986 = vmatmul.mubr.msk.bf16.vlgmr.msra.gmra.mxu1 %vm704_vm0, %v715_v12 }
  0x8e   : > { %1991 = vmatprep.mubr.msk.bf16.mxu0 %vm2433_vm1, %v2432_v0  ;;  %1997 = vmatprep.mubr.msk.bf16.mxu1 %vm2433_vm1, %v2432_v0  ;;  %p2334_p2 = pneg %p2333_p1 }
  0x8f   : > { %1990 = vmatpush3.bf16.msra.mxu0 %v1039_v58  ;;  %1996 = vmatpush3.bf16.msra.mxu1 %v1085_v60  ;;  %v1278_v58 = vsel %vm1037_vm4, %v1273_v56, 0 }
  0x90   : > { %2001 = vmatprep.subr.bf16.mxu0 %v2432_v0  ;;  %2007 = vmatprep.subr.bf16.mxu1 %v2432_v0 }
 0x145   : > { %v761_v16 = vpop.f32.mrf.mxu0  ;;  %v807_v17 = vpop.f32.mrf.mxu1 }
 0x146   : > { %v2754_v18 = vadd.f32 %v761_v16, %v711_v15  ;;  %v2756_v19 = vadd.f32 %v807_v17, %v711_v15 }
 0x147   : > { %v1969_v20 = vpop.f32.mrf.mxu0  ;;  %v1975_v21 = vpop.f32.mrf.mxu1 }
 0x148   : > { %v909_v22 = vsel %vm704_vm0, %v2754_v18, -inf  ;;  %v912_v25 = vsel %vm704_vm0, %v2756_v19, -inf }
 0x149   : > { %v764_v23 = vpop.f32.mrf.mxu0  ;;  %v810_v24 = vpop.f32.mrf.mxu1  ;;  %910 = vmax.xlane.f32.xlu0 %v909_v22 }
 0x14b   : > { %v1970_v26 = vpop.f32.mrf.mxu0  ;;  %v1976_v27 = vpop.f32.mrf.mxu1 }
 0x14d   : > { %v853_v28 = vpop.f32.mrf.mxu0  ;;  %v899_v29 = vpop.f32.mrf.mxu1  ;;  %913 = vmax.xlane.f32.xlu0 %v912_v25 }
 0x14e   : > { %v854_v30 = vadd.f32 %v853_v28, %v711_v15  ;;  %v900_v31 = vadd.f32 %v899_v29, %v711_v15  ;;  %v1033_v15 = vld [vmem:[%s2681_s29 + $0xc] sm:$0xf] }
 0x14f   : > { %v1981_v32 = vpop.f32.mrf.mxu0  ;;  %v1987_v33 = vpop.f32.mrf.mxu1 }
 0x150   : > { %v915_v34 = vsel %vm704_vm0, %v854_v30, -inf  ;;  %v918_v37 = vsel %vm704_vm0, %v900_v31, -inf }
 0x151   : > { %v856_v35 = vpop.f32.mrf.mxu0  ;;  %v902_v36 = vpop.f32.mrf.mxu1  ;;  %916 = vmax.xlane.f32.xlu1 %v915_v34  ;;  %v969_v34 = vld [vmem:[#allocation3] sm:$0xff] }
 0x153   : > { %v1982_v38 = vpop.f32.mrf.mxu0  ;;  %v1988_v39 = vpop.f32.mrf.mxu1 }
 0x155   : > { %919 = vmax.xlane.f32.xlu1 %v918_v37  ;;  %v970_v37 = vld [vmem:[#allocation3 + $0x8] sm:$0xff] }
 0x1d2   : > { %v911_v42 = vpop.xlane.xlu0 %910 }
 0x1d3   : > { %v921_v43 = vmax.f32 %v2764_v41, %v911_v42 }
 0x1d5   : > { %v925_v45 = vsub.f32 %v2764_v41, %v921_v43  ;;  %1227 = vst.msk [vmem:[#allocation2] sm:$0xff] %vm695_vm2, %v921_v43  ;;  %939 = vperm.xlu0 %2161, %v921_v43   ;;  %v971_v41 = vld [vmem:[#allocation3 + $0x10] sm:$0xff] }
 0x1d6   : > { %v914_v46 = vpop.xlane.xlu0 %913 }
 0x1d7   : > { %v2772_v47 = vmax.f32 %v2767_v44, %v914_v46  ;;  %v929_v20 = vmul.f32 1.442695, %v925_v45  ;;  %v972_v45 = vld [vmem:[#allocation3 + $0x18] sm:$0xff] }
 0x1d9   : > { %v926_v49 = vsub.f32 %v2767_v44, %v2772_v47  ;;  %1228 = vst.msk [vmem:[#allocation2 + $0x8] sm:$0xff] %vm695_vm2, %v2772_v47  ;;  %944 = vperm.xlu1 %2162, %v2772_v47  }
 0x1da   : > { %v917_v50 = vpop.xlane.xlu1 %916 }
 0x1db   : > { %v2782_v51 = vmax.f32 %v2774_v48, %v917_v50  ;;  %v931_v25 = vmul.f32 1.442695, %v926_v49 }
 0x1dd   : > { %v927_v53 = vsub.f32 %v2774_v48, %v2782_v51  ;;  %1229 = vst.msk [vmem:[#allocation2 + $0x10] sm:$0xff] %vm695_vm2, %v2782_v51  ;;  %949 = vperm.xlu1 %2162, %v2782_v51  }
 0x1de   : > { %v920_v54 = vpop.xlane.xlu1 %919 }
 0x1df   : > { %v2792_v55 = vmax.f32 %v2784_v52, %v920_v54  ;;  %v933_v28 = vmul.f32 1.442695, %v927_v53  ;;  %v1271_v53 = vld [vmem:[#allocation11] sm:$0xf] }
 0x1e0   : > { %v1324_v54 = vsel %vm1037_vm4, %v1271_v53, 0 }
 0x1e1   : > { %v928_v57 = vsub.f32 %v2784_v52, %v2792_v55  ;;  %1230 = vst.msk [vmem:[#allocation2 + $0x18] sm:$0xff] %vm695_vm2, %v2792_v55  ;;  %954 = vperm.xlu1 %2162, %v2792_v55  }
 0x1e3   : > { %v935_v29 = vmul.f32 1.442695, %v928_v57 }
 0x250   : > { %v940_v61 = vpop.permute.xlu0 %939 }
 0x251   : > { %v957_v62 = vsub.f32 %v2754_v18, %v940_v61 }
 0x253   : > { %v961_v63 = vmul.f32 1.442695, %v957_v62 }
 0x254   : > { %v945_v1 = vpop.permute.xlu1 %944 }
 0x255   : > { %2169 = vpow2.f32 %v961_v63  ;;  %v958_v2 = vsub.f32 %v2756_v19, %v945_v1  ;;  %v1177_v19 = vsel %vm1037_vm4, %v1033_v15, 0  ;;  %v998_v63 = vld [vmem:[#allocation4] sm:$0xff] }
 0x257   : > { %v963_v3 = vmul.f32 1.442695, %v958_v2 }
 0x258   : > { %v950_v4 = vpop.permute.xlu1 %949 }
 0x259   : > { %2171 = vpow2.f32 %v963_v3  ;;  %v959_v5 = vsub.f32 %v854_v30, %v950_v4  ;;  %v999_v3 = vld [vmem:[#allocation4 + $0x8] sm:$0xff] }
 0x25b   : > { %v965_v6 = vmul.f32 1.442695, %v959_v5 }
 0x25c   : > { %v955_v7 = vpop.permute.xlu1 %954 }
 0x25d   : > { %2173 = vpow2.f32 %v965_v6  ;;  %v960_v8 = vsub.f32 %v900_v31, %v955_v7 }
 0x25f   : > { %v967_v9 = vmul.f32 1.442695, %v960_v8 }
 0x261   : > { %2175 = vpow2.f32 %v967_v9  ;;  %v1000_v9 = vld [vmem:[#allocation4 + $0x10] sm:$0xff] }
 0x262   : > { %v2170_v11 = vpop.eup %2169  ;;  %2177 = vpow2.f32 %v929_v20 }
 0x263   : > { %v977_v12 = vsel %vm704_vm0, %v2170_v11, 0.0  ;;  %v1026_v13 = vpack.c.bf16 %v2170_v11, %v2170_v11  ;;  %2179 = vpow2.f32 %v931_v25 }
 0x264   : > { %978 = vadd.xlane.f32.xlu0 %v977_v12  ;;  %2181 = vpow2.f32 %v933_v28 }
 0x265   : > { %1992 = vmatmul.mubr.msk.bf16.vlgmr.msra.gmra.mxu0 %vm704_vm0, %v1026_v13  ;;  %2183 = vpow2.f32 %v935_v29 }
 0x266   : > { %v2172_v16 = vpop.eup %2171  ;;  %2002 = vmatpush3.bf16.msra.mxu0 %v1131_v14  ;;  %2003 = vmatprep.mubr.msk.bf16.mxu0 %vm2433_vm1, %v2432_v0 }
 0x267   : > { %v980_v17 = vsel %vm704_vm0, %v2172_v16, 0.0  ;;  %v1027_v18 = vpack.c.bf16 %v2172_v16, %v2172_v16  ;;  %2013 = vmatprep.subr.bf16.mxu0 %v2432_v0 }
 0x268   : > { %981 = vadd.xlane.f32.xlu1 %v980_v17  ;;  %v1001_v17 = vld [vmem:[#allocation4 + $0x18] sm:$0xff] }
 0x269   : > { %1998 = vmatmul.mubr.msk.bf16.vlgmr.msra.gmra.mxu1 %vm704_vm0, %v1027_v18 }
 0x26a   : > { %v2174_v21 = vpop.eup %2173  ;;  %2008 = vmatpush3.bf16.msra.mxu1 %v1177_v19  ;;  %2009 = vmatprep.mubr.msk.bf16.mxu1 %vm2433_vm1, %v2432_v0 }
 0x26b   : > { %v983_v22 = vsel %vm704_vm0, %v2174_v21, 0.0  ;;  %v1028_v23 = vpack.c.bf16 %v2174_v21, %v2174_v21  ;;  %2019 = vmatprep.subr.bf16.mxu1 %v2432_v0 }
 0x26c   : > { %984 = vadd.xlane.f32.xlu1 %v983_v22 }
 0x26d   : > { %2004 = vmatmul.mubr.msk.bf16.vlgmr.msra.gmra.mxu0 %vm704_vm0, %v1028_v23 }
 0x26e   : > { %v2176_v24 = vpop.eup %2175  ;;  %2015 = vmatprep.mubr.msk.bf16.mxu0 %vm2433_vm1, %v2432_v0  ;;  %2014 = vmatpush3.bf16.msra.mxu0 %v1278_v58 }
 0x26f   : > { %v986_v26 = vsel %vm704_vm0, %v2176_v24, 0.0  ;;  %v1029_v27 = vpack.c.bf16 %v2176_v24, %v2176_v24  ;;  %v2178_v30 = vpop.eup %2177  ;;  %2025 = vmatprep.subr.bf16.mxu0 %v2432_v0 }
 0x270   : > { %987 = vadd.xlane.f32.xlu1 %v986_v26  ;;  %v2180_v31 = vpop.eup %2179  ;;  %v973_v35 = vmul.f32 %v2178_v30, %v969_v34 }
 0x271   : > { %2010 = vmatmul.mubr.msk.bf16.vlgmr.msra.gmra.mxu1 %vm704_vm0, %v1029_v27  ;;  %v2182_v32 = vpop.eup %2181  ;;  %v974_v39 = vmul.f32 %v2180_v31, %v970_v37 }
 0x272   : > { %2021 = vmatprep.mubr.msk.bf16.mxu1 %vm2433_vm1, %v2432_v0  ;;  %v2184_v33 = vpop.eup %2183  ;;  %v975_v43 = vmul.f32 %v2182_v32, %v971_v41  ;;  %2020 = vmatpush3.bf16.msra.mxu1 %v1324_v54 }
 0x273   : > { %v976_v48 = vmul.f32 %v2184_v33, %v972_v45  ;;  %2031 = vmatprep.subr.bf16.mxu1 %v2432_v0 }
 0x27a   : > { %1004 = vperm.xlu0 %2161, %v2178_v30  }
 0x281   : > { %1009 = vperm.xlu1 %2162, %v2180_v31  }
 0x285   : > { %1014 = vperm.xlu1 %2162, %v2182_v32  }
 0x289   : > { %1019 = vperm.xlu1 %2162, %v2184_v33   ;;  %v1416_v33 = vld [vmem:[#allocation11 + $0xc] sm:$0xf] }
 0x2ed   : > { %v979_v36 = vpop.xlane.xlu0 %978 }
 0x2ee   : > { %v989_v38 = vadd.f32 %v979_v36, %v973_v35  ;;  %v1421_v36 = vsel %vm1037_vm4, %v1416_v33, 0  ;;  %v1914_v33 = vld [vmem:[%s3017_s18] ss:$0 sm:$0xff]  ;;  %s1701_s18 = scalar_lea.hbm %s3022_s16, %s1927_s26 }
 0x2f0   : > { %994 = vst.msk [vmem:[#allocation3] sm:$0xff] %vm695_vm2, %v989_v38 }
 0x2f1   : > { %v982_v40 = vpop.xlane.xlu1 %981 }
 0x2f2   : > { %v990_v42 = vadd.f32 %v982_v40, %v974_v39  ;;  %v1367_v39 = vld [vmem:[#allocation11 + $0x8] sm:$0xf] }
 0x2f4   : > { %995 = vst.msk [vmem:[#allocation3 + $0x8] sm:$0xff] %vm695_vm2, %v990_v42  ;;  %v1372_v42 = vsel %vm1037_vm4, %v1367_v39, 0 }
 0x2f5   : > { %v985_v44 = vpop.xlane.xlu1 %984  ;;  %v1005_v1 = vpop.permute.xlu0 %1004 }
 0x2f6   : > { %v991_v46 = vadd.f32 %v985_v44, %v975_v43  ;;  %v1022_v2 = vmul.f32 %v1005_v1, %v998_v63  ;;  %v1911_v63 = vld [vmem:[%s2960_s6] ss:$0 sm:$0xff] }
 0x2f7   : > { %v1238_v47 = vld [vmem:[#allocation3] sm:$0xff] }
 0x2f8   : > { %996 = vst.msk [vmem:[#allocation3 + $0x10] sm:$0xff] %vm695_vm2, %v991_v46  ;;  %2185 = vrcp.f32 %v1238_v47 }
 0x2f9   : > { %v988_v49 = vpop.xlane.xlu1 %987 }
 0x2fa   : > { %v992_v50 = vadd.f32 %v988_v49, %v976_v48 }
 0x2fb   : > { %v1239_v51 = vld [vmem:[#allocation3 + $0x8] sm:$0xff] }
 0x2fc   : > { %997 = vst.msk [vmem:[#allocation3 + $0x18] sm:$0xff] %vm695_vm2, %v992_v50  ;;  %2187 = vrcp.f32 %v1239_v51 }
 0x2fd   : > { %v1010_v62 = vpop.permute.xlu1 %1009 }
 0x2fe   : > { %v1023_v8 = vmul.f32 %v1010_v62, %v999_v3 }
 0x2ff   : > { %v1240_v52 = vld [vmem:[#allocation3 + $0x10] sm:$0xff] }
 0x300   : > { %2189 = vrcp.f32 %v1240_v52 }
 0x301   : > { %v1015_v5 = vpop.permute.xlu1 %1014 }
 0x302   : > { %v1024_v15 = vmul.f32 %v1015_v5, %v1000_v9 }
 0x303   : > { %v1241_v55 = vld [vmem:[#allocation3 + $0x18] sm:$0xff] }
 0x304   : > { %2191 = vrcp.f32 %v1241_v55 }
 0x305   : > { %v2186_v57 = vpop.eup %2185  ;;  %v1020_v16 = vpop.permute.xlu1 %1019 }
 0x306   : > { %1248 = vperm.xlu0 %2161, %v2186_v57   ;;  %v1025_v23 = vmul.f32 %v1020_v16, %v1001_v17  ;;  %v2163_v17 = vld [vmem:[#allocation13 + $0x8] sm:$0xff]  }
 0x309   : > { %v2188_v59 = vpop.eup %2187 }
 0x30a   : > { %1253 = vperm.xlu1 %2162, %v2188_v59  }
 0x30d   : > { %v2190_v60 = vpop.eup %2189 }
 0x30e   : > { %1258 = vperm.xlu1 %2162, %v2190_v60  }
 0x311   : > { %v2192_v61 = vpop.eup %2191 }
 0x312   : > { %1263 = vperm.xlu0 %2161, %v2192_v61  }
 0x325   : > { %v1075_v4 = vpop.f32.mrf.mxu0 }
 0x326   : > { %v1219_v6 = vadd.f32 %v1075_v4, %v1022_v2 }
 0x327   : > { %v1993_v7 = vpop.f32.mrf.mxu0 }
 0x328   : > { %1223 = vst.msk [vmem:[#allocation4] sm:$0xff] %vm704_vm0, %v1219_v6  ;;  %v1472_v6 = vld [vmem:[%s689_s30] sm:$0xff]  ;;  %s1689_s30 = scalar_lea.sflag [#allocation7], %s2670_s5 }
 0x329   : > { %v1078_v10 = vpop.f32.mrf.mxu0  ;;  %v1121_v11 = vpop.f32.mrf.mxu1 }
 0x32a   : > { %v1220_v12 = vadd.f32 %v1121_v11, %v1023_v8 }
 0x32b   : > { %v1994_v13 = vpop.f32.mrf.mxu0  ;;  %v1999_v14 = vpop.f32.mrf.mxu1 }
 0x32c   : > { %1224 = vst.msk [vmem:[#allocation4 + $0x8] sm:$0xff] %vm704_vm0, %v1220_v12 }
 0x32d   : > { %v1124_v18 = vpop.f32.mrf.mxu1  ;;  %v1167_v19 = vpop.f32.mrf.mxu0 }
 0x32e   : > { %v1221_v20 = vadd.f32 %v1167_v19, %v1024_v15  ;;  %v2164_v18 = vld [vmem:[#allocation13] sm:$0xff]  }
 0x32f   : > { %v2000_v21 = vpop.f32.mrf.mxu1  ;;  %v2005_v22 = vpop.f32.mrf.mxu0  ;;  %v1234_v31 = vld [vmem:[#allocation4] sm:$0xff]  ;;  %v2165_v19 = vld [vmem:[%s2967_s13 + $0x18] sm:$0xff]  }
 0x330   : > { %1225 = vst.msk [vmem:[#allocation4 + $0x10] sm:$0xff] %vm704_vm0, %v1221_v20  ;;  %v2166_v20 = vld [vmem:[%s2967_s13 + $0x10] sm:$0xff]  }
 0x331   : > { %v1170_v24 = vpop.f32.mrf.mxu0  ;;  %v1213_v25 = vpop.f32.mrf.mxu1 }
 0x332   : > { %v1222_v26 = vadd.f32 %v1213_v25, %v1025_v23  ;;  %v1912_v25 = vld [vmem:[%s2961_s7] ss:$0 sm:$0xff] }
 0x333   : > { %v2006_v27 = vpop.f32.mrf.mxu0  ;;  %v2011_v28 = vpop.f32.mrf.mxu1  ;;  %v1235_v37 = vld [vmem:[#allocation4 + $0x8] sm:$0xff] }
 0x334   : > { %1226 = vst.msk [vmem:[#allocation4 + $0x18] sm:$0xff] %vm704_vm0, %v1222_v26  ;;  %v1913_v27 = vld [vmem:[%s2962_s8] ss:$0 sm:$0xff] }
 0x335   : > { %v1216_v29 = vpop.f32.mrf.mxu1 }
 0x337   : > { %v2012_v30 = vpop.f32.mrf.mxu1  ;;  %v1236_v44 = vld [vmem:[#allocation4 + $0x10] sm:$0xff] }
 0x33b   : > { %v1237_v46 = vld [vmem:[#allocation4 + $0x18] sm:$0xff] }
 0x381   : > { %v1249_v32 = vpop.permute.xlu0 %1248 }
 0x382   : > { %v1266_v34 = vmul.f32 %v1249_v32, %v1234_v31  ;;  %v2167_v31 = vld [vmem:[%s2967_s13 + $0x8] sm:$0xff]   ;;  %v2168_v32 = vld [vmem:[%s2967_s13] sm:$0xff]  }
 0x384   : > { %v1270_v35 = vpack.c.bf16 %v1266_v34, %v1266_v34 }
 0x385   : > { %v1254_v38 = vpop.permute.xlu1 %1253 }
 0x386   : > { %v1267_v40 = vmul.f32 %v1254_v38, %v1235_v37  ;;  %2022 = vmatmul.mubr.msk.bf16.vlgmr.msra.gmra.mxu1 %vm704_vm0, %v1270_v35 }
 0x387   : > { %2032 = vmatpush3.bf16.msra.mxu1 %v1421_v36  ;;  %2033 = vmatprep.mubr.msk.bf16.mxu1 %vm2433_vm1, %v2432_v0 }
 0x388   : > { %v1272_v41 = vpack.c.bf16 %v1267_v40, %v1267_v40  ;;  %2045 = vmatprep.subr.bf16.mxu1 %v2432_v0 }
 0x389   : > { %v1259_v43 = vpop.permute.xlu1 %1258 }
 0x38a   : > { %2016 = vmatmul.mubr.msk.bf16.vlgmr.msra.gmra.mxu0 %vm704_vm0, %v1272_v41  ;;  %v1268_v45 = vmul.f32 %v1259_v43, %v1236_v44 }
 0x38b   : > { %2026 = vmatpush3.bf16.msra.mxu0 %v1372_v42  ;;  %2027 = vmatprep.mubr.msk.bf16.mxu0 %vm2433_vm1, %v2432_v0 }
 0x38c   : > { %2037 = vmatprep.subr.bf16.mxu0 %v2432_v0  ;;  %v1366_v49 = vpack.c.bf16 %v1268_v45, %v1268_v45 }
 0x38d   : > { %v1264_v47 = vpop.permute.xlu0 %1263 }
 0x38e   : > { %v1269_v48 = vmul.f32 %v1264_v47, %v1237_v46 }
 0x390   : > { %v1415_v50 = vpack.c.bf16 %v1269_v48, %v1269_v48 }
 0x392   : > { %2028 = vmatmul.mubr.msk.bf16.vlgmr.msra.gmra.mxu0 %vm704_vm0, %v1366_v49  ;;  %2034 = vmatmul.mubr.msk.bf16.vlgmr.msra.gmra.mxu1 %vm704_vm0, %v1415_v50 }
 0x393   : > { %2041 = vmatprep.mubr.msk.bf16.mxu0 %vm2433_vm1, %v2432_v0  ;;  %2053 = vmatprep.mubr.msk.bf16.mxu1 %vm2433_vm1, %v2432_v0 }
 0x394   : > { %2038 = vmatpush3.bf16.msra.mxu0 %v2163_v17  ;;  %2046 = vmatpush3.bf16.msra.mxu1 %v2165_v19 }
 0x395   : > { %2039 = vmatprep.subr.bf16.mxu0 %v2432_v0  ;;  %2047 = vmatprep.subr.bf16.mxu1 %v2432_v0 }
 0x398   : > { %2040 = vmatpush3.bf16.msra.mxu0 %v2164_v18  ;;  %2048 = vmatpush3.bf16.msra.mxu1 %v2166_v20 }
 0x399   : > { %2049 = vmatprep.subr.bf16.mxu1 %v2432_v0 }
 0x39c   : > { %2050 = vmatpush3.bf16.msra.mxu1 %v2167_v31 }
 0x39d   : > { %2051 = vmatprep.subr.bf16.mxu1 %v2432_v0  ;;  %v1918_v0 = vld [vmem:[%s3018_s17] ss:$0 sm:$0xff]  ;;  %s2436_s17 = smov [#allocation14]  }
 0x39e   : > { %s2335_s22 = sshll.u32 %s2436_s17, 4  ;;  %s2336_s22 = int_to_ptr.vmem [resolvable:$false] %s2335_s22 }
 0x39f   : > { %s2337_s21 = scalar_lea.vmem %s2336_s22, 256  ;;  %p2338_p6 = scmp.lt.s32.totalorder %s1704_s11, %s2336_s22 }
 0x3a0   : > { %2052 = vmatpush3.bf16.msra.mxu1 %v2168_v32  ;;  %p2339_p8 = scmp.lt.s32.totalorder %s2337_s21, %s2331_s1 }
 0x3a2   : > { %p2340_p9 = por %p2339_p8, %p2338_p6 }
 0x3a4   : > { %p2341_p3 = pnand %p2340_p9, %p2334_p2 }
 0x446   : > { %v1360_v51 = vpop.f32.mrf.mxu1 }
 0x448   : > { %v2023_v52 = vpop.f32.mrf.mxu1 }
 0x44a   : > { %v1314_v53 = vpop.f32.mrf.mxu0  ;;  %v1363_v54 = vpop.f32.mrf.mxu1 }
 0x44b   : > { %v1361_v59 = vadd.f32 %v1360_v51, %v1314_v53 }
 0x44c   : > { %v2017_v55 = vpop.f32.mrf.mxu0  ;;  %v2024_v56 = vpop.f32.mrf.mxu1 }
 0x44e   : > { %v1317_v57 = vpop.f32.mrf.mxu0 }
 0x44f   : > { %v1924_v57 = vld [vmem:[%s3020_s25] ss:$0 sm:$0xff] }
 0x450   : > { %v2018_v58 = vpop.f32.mrf.mxu0 }
 0x452   : > { %v1408_v60 = vpop.f32.mrf.mxu0  ;;  %v1457_v61 = vpop.f32.mrf.mxu1 }
 0x453   : > { %v1414_v62 = vadd.f32 %v1408_v60, %v1361_v59  ;;  %v1925_v59 = vld [vmem:[%s3021_s24] ss:$0 sm:$0xff] }
 0x454   : > { %v2029_v1 = vpop.f32.mrf.mxu0  ;;  %v2035_v2 = vpop.f32.mrf.mxu1 }
 0x455   : > { %v1463_v3 = vadd.f32 %v1457_v61, %v1414_v62 }
 0x456   : > { %v1411_v4 = vpop.f32.mrf.mxu0  ;;  %v1460_v5 = vpop.f32.mrf.mxu1 }
 0x457   : > { %v1471_v7 = vadd.f32 %v1911_v63, %v1463_v3 }
 0x458   : > { %v2030_v8 = vpop.f32.mrf.mxu0  ;;  %v2036_v9 = vpop.f32.mrf.mxu1 }
 0x459   : > { %v1473_v10 = vadd.f32 %v1472_v6, %v1471_v7 }
 0x45b   : > { %v1477_v11 = vsel %vm1476_vm5, %v1473_v10, 0.0 }
 0x45c   : > { %1478 = vadd.xlane.f32.xlu1 %v1477_v11 }
 0x4e5   : > { %v1479_v12 = vpop.xlane.xlu1 %1478 }
 0x4e6   : > { %v1481_v13 = vmul.f32 0.03125, %v1479_v12 }
 0x4e8   : > { %v1482_v14 = vsub.f32 %v1473_v10, %v1481_v13 }
 0x4ea   : > { %v1483_v15 = vmul.f32 %v1482_v14, %v1482_v14 }
 0x4ec   : > { %v1484_v16 = vsel %vm1476_vm5, %v1483_v15, 0.0 }
 0x4ed   : > { %1485 = vadd.xlane.f32.xlu0 %v1484_v16 }
 0x576   : > { %v1486_v21 = vpop.xlane.xlu0 %1485 }
 0x577   : > { %v1487_v22 = vmul.f32 0.03125, %v1486_v21 }
 0x579   : > { %v1488_v23 = vadd.f32 1e-05, %v1487_v22 }
 0x57b   : > { %2193 = vrsqrt.f32 %v1488_v23 }
 0x588   : > { %v2194_v24 = vpop.eup %2193 }
 0x589   : > { %v1490_v26 = vmul.f32 %v2194_v24, %v1482_v14 }
 0x58b   : > { %v1497_v28 = vmul.f32 %v1912_v25, %v1490_v26 }
 0x58d   : > { %v1504_v29 = vadd.f32 %v1913_v27, %v1497_v28 }
 0x58f   : > { %v1505_v30 = vpack.c.bf16 %v1504_v29, %v1504_v29 }
 0x591   : > { %2042 = vmatmul.mubr.msk.bf16.vlgmr.msra.gmra.mxu0 %vm1476_vm5, %v1505_v30 }
 0x651   : > { %v1566_v34 = vpop.f32.mrf.mxu0 }
 0x652   : > { %v1567_v35 = vadd.f32 %v1914_v33, %v1566_v34 }
 0x653   : > { %v2043_v36 = vpop.f32.mrf.mxu0 }
 0x654   : > { %v1572_v37 = vmax.f32 %v1567_v35, 0.0 }
 0x655   : > { %v1569_v38 = vpop.f32.mrf.mxu0 }
 0x656   : > { %v1573_v39 = vpack.c.bf16 %v1572_v37, %v1572_v37 }
 0x657   : > { %v2044_v40 = vpop.f32.mrf.mxu0 }
 0x658   : > { %2054 = vmatmul.mubr.msk.bf16.vlgmr.msra.gmra.mxu1 %vm1613_vm6, %v1573_v39 }
 0x718   : > { %v1651_v41 = vpop.f32.mrf.mxu1 }
 0x719   : > { %v1652_v42 = vadd.f32 %v1918_v0, %v1651_v41 }
 0x71a   : > { %v2055_v43 = vpop.f32.mrf.mxu1 }
 0x71b   : > { %v1657_v44 = vadd.f32 %v1652_v42, %v1504_v29 }
 0x71c   : > { %v1654_v45 = vpop.f32.mrf.mxu1 }
 0x71d   : > { %v1660_v46 = vsel %vm1476_vm5, %v1657_v44, 0.0 }
 0x71e   : > { %1661 = vadd.xlane.f32.xlu0 %v1660_v46  ;;  %v2056_v47 = vpop.f32.mrf.mxu1 }
 0x7a7   : > { %v1662_v48 = vpop.xlane.xlu0 %1661 }
 0x7a8   : > { %v1663_v49 = vmul.f32 0.03125, %v1662_v48 }
 0x7aa   : > { %v1664_v50 = vsub.f32 %v1657_v44, %v1663_v49 }
 0x7ac   : > { %v1665_v51 = vmul.f32 %v1664_v50, %v1664_v50 }
 0x7ae   : > { %v1666_v52 = vsel %vm1476_vm5, %v1665_v51, 0.0 }
 0x7af   : > { %1667 = vadd.xlane.f32.xlu1 %v1666_v52 }
 0x838   : > { %v1668_v53 = vpop.xlane.xlu1 %1667 }
 0x839   : > { %v1669_v54 = vmul.f32 0.03125, %v1668_v53 }
 0x83b   : > { %v1670_v55 = vadd.f32 1e-05, %v1669_v54 }
 0x83d   : > { %2195 = vrsqrt.f32 %v1670_v55 }
 0x84a   : > { %v2196_v56 = vpop.eup %2195 }
 0x84b   : > { %v1672_v58 = vmul.f32 %v2196_v56, %v1664_v50 }
 0x84d   : > { %v1679_v60 = vmul.f32 %v1924_v57, %v1672_v58 }
 0x84f   : > { %v1686_v61 = vadd.f32 %v1925_v59, %v1679_v60 }
 0x851   : > { %1687 = vst.msk [vmem:[%s674_s27] sm:$0xff] %vm1476_vm5, %v1686_v61 }
 0x852   : > { %2344 = shalt.err (!%p2341_p3)
}
 0x853   : > { %s2345_s4 = scalar_lea.hbm %s1701_s18, 128  ;;  %s2349_s25 = scalar_lea.hbm %s3022_s16, 256 }
 0x854   : > { %p2346_p4 = scmp.ne.s32.totalorder %s1701_s18, %s2345_s4  ;;  %p2350_p5 = scmp.lt.s32.totalorder %s1701_s18, %s3022_s16 }
 0x855   : > { %p2351_p7 = scmp.lt.s32.totalorder %s2349_s25, %s2345_s4 }
 0x856   : > { %p2347_p11 = pnand %p2346_p4, %p2619_p13 }
 0x857   : > { %p2352_p10 = por %p2351_p7, %p2350_p5 }
 0x858   : > { %p2348_p12 = pneg %p2347_p11 }
 0x85a   : > { %p2353_p0 = pnand %p2352_p10, %p2348_p12 }
 0x85c   : > { %2356 = shalt.err (!%p2353_p0)
}
 0x85d   : > { %2073 = dma.vmem_to_hbm [thread:$0]  (%p2619_p13), %s1704_s11, 128, %s1701_s18, %s1689_s30  }
 0x85e PF: > { %s3023_s24 = sld [smem:[#allocation20_spill]]  ;;  %p3026_p2 = scmp.ge.s32.totalorder %s2423_s23, 2 }
 0x85f   : > { %s3024_s26 = sld [smem:[#allocation22_spill]] }
 0x864   : > { %s1715_s27 = sand.u32 1, %s3023_s24  }
 0x865   : > { %p3025_p1 = scmp.ne.s32.totalorder %s3024_s26, 0  ;;  %s1716_s12 = scalar_lea.sflag [#allocation7], %s1715_s27 }
 0x867   : > { %p2093_p6 = pnand %p3026_p2, %p3025_p1 }
 0x869   : > { %p2094_p8 = pneg %p2093_p6 }
 0x86b   : > { %2398 = dma.done.wait (%p2094_p8), %s1716_s12, 128  }
 0x86c   : > { %2400 = vsyncadd (%p2094_p8), %s1716_s12, 4294967168  ;;  %s35_s23 = sadd.s32 1, %s2423_s23   ;;  %s3027_s21 = sld [smem:[#allocation21_spill]] }
 0x86d   : > { %p32_p9 = scmp.ge.s32.totalorder %s35_s23, 4   ;;  %s3028_s22 = sld [smem:[#allocation24_spill]] }
 0x86e   : > { %s3029_s18 = smov %s2407_s19  ;;  %s3030_s19 = smov %s2411_s20 }
 0x86f   : > { %s3031_s20 = smov %s2631_s15  ;;  %34 = sbr.rel (!%p32_p9) target bundleno = 19 (0x13), region = 165 }
 0x874   :  { %1721 = vsyncpa [#allocation6], 1 }
 0x875   :  { %1723 = vsyncpa [#allocation6 + $0x1], 1 }
 0x876   :  { %1724 = vsyncpa [#allocation9], 1 }
 0x877   :  { %1726 = vsyncpa [#allocation9 + $0x1], 1 }
 0x878   :  { %1727 = vsyncpa [#allocation12], 1 }
 0x879   :  { %1728 = vsyncpa [#allocation7], 1 }
 0x87a   :  { %1730 = vsyncpa [#allocation7 + $0x1], 1 }

// kernel: tpu_custom_call.1
= control target key start
LH: loop header
LB: loop body
LE: loop exit
PB: predicated region body
PF: predicated region fallthrough
CT: control target
= control target key end

     0   :  { %s2954_s0 = inlined_call_operand.vmem [shape: bf16[2,4,8,8], index: 0, kind: input, shape index: {}]   ;;  %s2955_s1 = inlined_call_operand.hbm [shape: bf16[2,4,8,8], index: 1, kind: input, shape index: {}]   ;;  %s2956_s2 = inlined_call_operand.hbm [shape: bf16[2,4,8,8], index: 2, kind: input, shape index: {}]   ;;  %s2957_s3 = inlined_call_operand.vmem [shape: f32[2,8,32], index: 3, kind: input, shape index: {}]   ;;  %s2958_s4 = inlined_call_operand.hbm [shape: f32[1,8,8], index: 4, kind: input, shape index: {}]   ;;  %s2959_s5 = inlined_call_operand.hbm [shape: bf16[32,32], index: 5, kind: input, shape index: {}]   ;;  %s2960_s6 = inlined_call_operand.vmem [shape: f32[1,32], index: 6, kind: input, shape index: {}]   ;;  %s2961_s7 = inlined_call_operand.vmem [shape: f32[1,32], index: 7, kind: input, shape index: {}]   ;;  %s2962_s8 = inlined_call_operand.vmem [shape: f32[1,32], index: 8, kind: input, shape index: {}]   ;;  %s2963_s9 = inlined_call_operand.vmem [shape: f32[1,32], index: 9, kind: input, shape index: {}]   ;;  %s2964_s10 = inlined_call_operand.vmem [shape: f32[1,32], index: 10, kind: input, shape index: {}]   ;;  %s2965_s11 = inlined_call_operand.hbm [shape: bf16[32,64], index: 11, kind: input, shape index: {}]   ;;  %s2966_s12 = inlined_call_operand.vmem [shape: f32[1,64], index: 12, kind: input, shape index: {}]   ;;  %s2967_s13 = inlined_call_operand.vmem [shape: bf16[64,32], index: 13, kind: input, shape index: {}]   ;;  %s2968_s14 = inlined_call_operand.vmem [shape: f32[1,32], index: 14, kind: input, shape index: {}]   ;;  %s2969_s15 = inlined_call_operand.hbm [shape: f32[2,8,32], index: 15, kind: output, shape index: {}]  }
   0x1   :  { %2984 = sst [smem:[#allocation25_spill]] %s2955_s1 }
   0x2   :  { %2985 = sst [smem:[#allocation26_spill]] %s2958_s4 }
   0x3   :  { %2986 = sst [smem:[#allocation27_spill]] %s2959_s5 }
   0x4   :  { %2987 = sst [smem:[#allocation28_spill]] %s2963_s9 }
   0x5   :  { %2988 = sst [smem:[#allocation29_spill]] %s2964_s10 }
   0x6   :  { %2989 = sst [smem:[#allocation30_spill]] %s2965_s11 }
   0x7   :  { %2990 = sst [smem:[#allocation31_spill]] %s2966_s12 }
   0x8   :  { %2991 = sst [smem:[#allocation32_spill]] %s2968_s14 }
   0x9   :  { %2992 = sst [smem:[#allocation33_spill]] %s2969_s15 }
   0xa   :  { %20 = vsyncpa [#allocation6], 0 }
   0xb   :  { %22 = vsyncpa [#allocation6 + $0x1], 0 }
   0xc   :  { %23 = vsyncpa [#allocation9], 0 }
   0xd   :  { %25 = vsyncpa [#allocation9 + $0x1], 0 }
   0xe   :  { %26 = vsyncpa [#allocation12], 0 }
   0xf   :  { %27 = vsyncpa [#allocation7], 0 }
  0x10   :  { %29 = vsyncpa [#allocation7 + $0x1], 0  ;;  %s2517_s18 = smov 0   ;;  %s2519_s19 = smov 0  }
  0x11   :  { %s2521_s20 = smov 0   ;;  %s2523_s21 = smov 0  }
  0x12   :  { %s2525_s22 = smov 0   ;;  %s2527_s23 = smov 0  }
  0x13 LB: > { %2993 = sst [smem:[#allocation20_spill]] %s2403_s18  ;;  %s2548_s24 = sadd.s32 4294967295, %s2423_s23   ;;  %s2423_s23 = sphi %s2527_s23, %s35_s23   ;;  %s2419_s22 = sphi %s2525_s22, %s3028_s22   ;;  %s2415_s21 = sphi %s2523_s21, %s3027_s21   ;;  %s2411_s20 = sphi %s2521_s20, %s3031_s20   ;;  %s2407_s19 = sphi %s2519_s19, %s3030_s19   ;;  %s2403_s18 = sphi %s2517_s18, %s3029_s18  }
  0x14   : > { %2994 = sst [smem:[#allocation21_spill]] %s2419_s22  ;;  %s1877_s25 = sadd.s32 4294967294, %s2423_s23  }
  0x15   : > { %p104_p0 = scmp.ne.s32.totalorder %s2407_s19, %s2403_s18  ;;  %p2973_p1 = scmp.eq.s32.totalorder %s2548_s24, 0 }
  0x16   : > { %p430_p3 = scmp.eq.s32.totalorder %s1877_s25, 1  ;;  %p1878_p5 = scmp.ge.s32.totalorder %s2423_s23, 1 }
  0x17   : > { %p2557_p4 = por %p2973_p1, %p104_p0  ;;  %p437_p7 = scmp.lt.s32.totalorder %s2423_s23, 3 }
  0x18   : > { %p2562_p6 = por %p430_p3, %p104_p0  ;;  %s2425_s29 = smov [#allocation10]  }
  0x19   : > { %s2995_s26 = scalar_select %p2557_p4, 1, 0 }
  0x1a   : > { %s2996_s27 = scalar_select %p2562_p6, 1, 0 }
  0x1b   : > { %p2567_p8 = pnand %p1878_p5, %p437_p7  ;;  %s453_s30 = sshll.u32 %s2425_s29, 4  ;;  %s454_s30 = int_to_ptr.vmem [resolvable:$true] %s453_s30 }
  0x1c   : > { %2997 = sst [smem:[#allocation22_spill]] %s2996_s27  ;;  %s2426_s16 = smov [#allocation11]  }
  0x1d   : > { %s2998_s28 = scalar_select %p2567_p8, 1, 0 }
  0x1e   : > { %p2075_p10 = pneg %p2567_p8  ;;  %s463_s17 = sshll.u32 %s2426_s16, 4  ;;  %s464_s17 = int_to_ptr.vmem [resolvable:$true] %s463_s17 }
  0x1f   : > { %s2427_s27 = smov [#allocation13]   ;;  %s2208_s15 = scalar_lea.vmem %s454_s30, 128 }
  0x20   : > { %p2576_p11 = pnand %p2075_p10, %p2973_p1  ;;  %s491_s18 = sshll.u32 %s2427_s27, 4  ;;  %s492_s18 = int_to_ptr.vmem [resolvable:$true] %s491_s18 }
  0x21   : > { %p2209_p13 = scmp.ne.s32.totalorder %s454_s30, %s2208_s15  ;;  %p2216_p5 = scmp.lt.s32.totalorder %s454_s30, %s454_s30 }
  0x22   : > { %p2199_p12 = pneg %p2576_p11  ;;  %p2217_p7 = scmp.lt.s32.totalorder %s2208_s15, %s2208_s15 }
  0x24   : > { %p2211_p0 = pnand %p2209_p13, %p2199_p12  ;;  %p2218_p9 = por %p2217_p7, %p2216_p5 }
  0x26   : > { %p2212_p3 = pneg %p2211_p0 }
  0x28   : > { %p2219_p10 = pnand %p2218_p9, %p2212_p3 }
  0x2a   : > { %2222 = shalt.err (!%p2219_p10)
}
  0x2b   : > { %s3000_s4 = sld [smem:[#allocation26_spill]]  ;;  %s2234_s27 = scalar_lea.vmem %s464_s17, 256 }
  0x2c   : > { %p2235_p1 = scmp.ne.s32.totalorder %s464_s17, %s2234_s27  ;;  %p2242_p13 = scmp.lt.s32.totalorder %s464_s17, %s464_s17 }
  0x2d   : > { %p2243_p0 = scmp.lt.s32.totalorder %s2234_s27, %s2234_s27 }
  0x2e   : > { %p2237_p2 = pnand %p2235_p1, %p2199_p12 }
  0x2f   : > { %p2244_p4 = por %p2243_p0, %p2242_p13 }
  0x30   : > { %p2238_p6 = pneg %p2237_p2 }
  0x31   : > { %2078 = dma.hbm_to_vmem [thread:$0]  (!%p2576_p11), %s3000_s4, 128, %s454_s30, [#allocation9]  }
  0x32   : > { %p2245_p8 = pnand %p2244_p4, %p2238_p6 }
  0x34   : > { %2248 = shalt.err (!%p2245_p8)
}
  0x35   : > { %s2976_s15 = smov 64   ;;  %s2978_s10 = smov 4  }
  0x36   : > { %s3001_s5 = sld [smem:[#allocation27_spill]]  ;;  %s2260_s16 = scalar_lea.vmem %s492_s18, 256 }
  0x37   : > { %p2261_p1 = scmp.ne.s32.totalorder %s492_s18, %s2260_s16  ;;  %p2268_p6 = scmp.lt.s32.totalorder %s492_s18, %s492_s18 }
  0x38   : > { %p2269_p8 = scmp.lt.s32.totalorder %s2260_s16, %s2260_s16 }
  0x39   : > { %p2263_p2 = pnand %p2261_p1, %p2199_p12 }
  0x3a   : > { %p2270_p9 = por %p2269_p8, %p2268_p6 }
  0x3b   : > { %p2264_p4 = pneg %p2263_p2 }
  0x3c   : > { %2081 = dma.hbm_to_vmem [thread:$0]  (!%p2576_p11), %s3001_s5, 256, %s464_s17, [#allocation12], %s2976_s15, %s2976_s15, %s2978_s10  }
  0x3d   : > { %p2271_p3 = pnand %p2270_p9, %p2264_p4 }
  0x3f   : > { %2274 = shalt.err (!%p2271_p3)
}
  0x40   : > { %s3002_s11 = sld [smem:[#allocation30_spill]]  ;;  %s91_s17 = sadd.s32 1, %s2411_s20 }
  0x41   : > { %s54_s25 = sadd.s32 1, %s2419_s22  ;;  %p98_p12 = scmp.ne.s32.totalorder %s2411_s20, %s2407_s19 }
  0x42   : > { %p56_p5 = scmp.ge.s32.totalorder %s54_s25, 2  ;;  %p99_p7 = scmp.eq.s32.totalorder %s2423_s23, 0 }
  0x43   : > { %p3003_p10 = scmp.eq.s32.totalorder %s2548_s24, 1  ;;  %p2099_p0 = scmp.lt.s32.totalorder %s2423_s23, 2 }
  0x44   : > { %s3033_s25 = smov (%p56_p5, %s54_s25), 0  ;;  %p100_p1 = por %p99_p7, %p98_p12 }
  0x45   : > { %p2619_p13 = por %p3003_p10, %p98_p12  ;;  %3006 = sst [smem:[#allocation24_spill]] %s3033_s25 }
  0x46   : > { %2084 = dma.hbm_to_vmem [thread:$0]  (!%p2576_p11), %s3002_s11, 256, %s492_s18, [#allocation12], %s2976_s15, %s2976_s15, %s2978_s10  }
  0x47   : > { %s3004_s29 = scalar_select %p2619_p13, 1, 0 }
  0x48   : > { %s525_s16 = sand.u32 1, %s2411_s20   ;;  %s86_s27 = ssub.s32 %s2419_s22, %s3033_s25 }
  0x49   : > { %3005 = sst [smem:[#allocation23_spill]] %s3004_s29  ;;  %p89_p2 = scmp.eq.s32.totalorder %s86_s27, 0 }
  0x4a   : > { %s1883_s18 = sshll.u32 %s525_s16, 4  ;;  %s1930_s30 = sshll.u32 %s2419_s22, 8 }
  0x4b   : > { %s2631_s15 = scalar_select %p89_p2, %s2411_s20, %s91_s17  }
  0x4c   : > { %s3007_s1 = sld [smem:[#allocation25_spill]]  ;;  %s529_s11 = scalar_lea.vmem [#allocation5], %s1883_s18 }
  0x4d   : > { %s537_s9 = sshll.u32 %s529_s11, 4  ;;  %p2638_p11 = pnand %p2099_p0, %p100_p1  ;;  %s538_s9 = int_to_ptr.vmem [resolvable:$true] %s537_s9 }
  0x4e   : > { %s2645_s27 = scalar_lea.hbm %s2956_s2, %s1930_s30  ;;  %s551_s17 = scalar_lea.vmem [#allocation8], %s1883_s18 }
  0x4f   : > { %s559_s25 = sshll.u32 %s551_s17, 4  ;;  %s526_s22 = scalar_lea.sflag [#allocation6], %s525_s16  ;;  %s560_s25 = int_to_ptr.vmem [resolvable:$true] %s559_s25 }
  0x50   : > { %p2277_p4 = pneg %p2638_p11  ;;  %s2288_s4 = scalar_lea.vmem %s538_s9, 256 }
  0x51   : > { %p2289_p6 = scmp.ne.s32.totalorder %s538_s9, %s2288_s4  ;;  %s2430_s10 = smov [#allocation5]  }
  0x52   : > { %s536_s5 = scalar_lea.hbm %s3007_s1, %s1930_s30  ;;  %s2293_s11 = sshll.u32 %s2430_s10, 4  ;;  %s2294_s11 = int_to_ptr.vmem [resolvable:$false] %s2293_s11 }
  0x53   : > { %p2291_p8 = pnand %p2289_p6, %p2277_p4  ;;  %s2295_s1 = scalar_lea.vmem %s2294_s11, 512 }
  0x54   : > { %p2296_p3 = scmp.lt.s32.totalorder %s538_s9, %s2294_s11  ;;  %p2297_p12 = scmp.lt.s32.totalorder %s2295_s1, %s2288_s4 }
  0x55   : > { %p2292_p9 = pneg %p2291_p8 }
  0x56   : > { %p2298_p5 = por %p2297_p12, %p2296_p3 }
  0x58   : > { %p2299_p7 = pnand %p2298_p5, %p2292_p9 }
  0x5a   : > { %2302 = shalt.err (!%p2299_p7)
}
  0x5b   : > { %s3009_s12 = smov 4   ;;  %s3010_s14 = smov 64  }
  0x5c   : > { %2088 = dma.hbm_to_vmem [thread:$0]  (!%p2638_p11), %s536_s5, 256, %s538_s9, %s526_s22, %s3010_s14, %s3010_s14, %s3009_s12  }
  0x5d   : > { %s547_s16 = sand.u32 1, %s2423_s23   ;;  %s2316_s30 = scalar_lea.vmem %s560_s25, 256 }
  0x5e   : > { %s548_s18 = scalar_lea.sflag [#allocation9], %s547_s16  ;;  %p2317_p10 = scmp.ne.s32.totalorder %s560_s25, %s2316_s30 }
  0x5f   : > { %s2431_s1 = smov [#allocation8]  }
  0x60   : > { %p2319_p0 = pnand %p2317_p10, %p2277_p4  ;;  %s2321_s17 = sshll.u32 %s2431_s1, 4  ;;  %s2322_s17 = int_to_ptr.vmem [resolvable:$false] %s2321_s17 }
  0x61   : > { %s2323_s4 = scalar_lea.vmem %s2322_s17, 512  ;;  %p2324_p2 = scmp.lt.s32.totalorder %s560_s25, %s2322_s17 }
  0x62   : > { %p2320_p1 = pneg %p2319_p0  ;;  %p2325_p6 = scmp.lt.s32.totalorder %s2323_s4, %s2316_s30 }
  0x64   : > { %p2326_p8 = por %p2325_p6, %p2324_p2 }
  0x66   : > { %p2327_p9 = pnand %p2326_p8, %p2320_p1 }
  0x68   : > { %2330 = shalt.err (!%p2327_p9)
}
  0x69   : > { %2091 = dma.hbm_to_vmem [thread:$0]  (!%p2638_p11), %s2645_s27, 256, %s560_s25, %s548_s18, %s3010_s14, %s3010_s14, %s3009_s12  }
  0x6a   : > { %p3011_p3 = scmp.ne.s32.totalorder %s2998_s28, 0 }
  0x6b   : > { %s2670_s5 = sand.u32 (!%p3011_p3), 1, %s2407_s19   ;;  %p3012_p4 = scmp.ne.s32.totalorder (!%p3011_p3), %s2995_s26, 0 }
  0x6c   : > { %581 = sbr.rel (%p3011_p3) target bundleno = 2142 (0x85e), region = 80  ;;  %s1890_s9 = sshll.u32 (!%p3011_p3), %s2670_s5, 4 }
  0x6d   : > { %s584_s22 = scalar_lea.sflag (!%p3011_p3), [#allocation6], %s2670_s5  ;;  %s2674_s10 = scalar_lea.vmem (!%p3011_p3), [#allocation5], %s1890_s9 }
  0x71   : > { %2382 = dma.done.wait (%p3012_p4), %s584_s22, 256  }
  0x72   : > { %2384 = vsyncadd (%p3012_p4), %s584_s22, 4294967040  ;;  %s592_s25 = sand.u32 1, %s2548_s24   ;;  %s2681_s29 = scalar_lea.vmem [#allocation8], %s1890_s9 }
  0x73   : > { %s593_s28 = scalar_lea.sflag [#allocation9], %s592_s25 }
  0x74   : > { %2386 = dma.done.wait (%p3012_p4), %s593_s28, 256  }
  0x75   : > { %2388 = vsyncadd (%p3012_p4), %s593_s28, 4294967040  ;;  %p3013_p11 = scmp.eq.s32.totalorder %s2548_s24, 0 }
  0x77   : > { %2390 = dma.done.wait (%p3013_p11), [#allocation9], 128   ;;  %p3014_p12 = pmov %p3013_p11 }
  0x78   : > { %p3015_p5 = pmov %p3013_p11 }
  0x79   : > { %2392 = vsyncadd (%p3014_p12), [#allocation9], 4294967168 }
  0x7a   : > { %2394 = dma.done.wait (%p3015_p5), [#allocation12], 512   ;;  %p3016_p7 = pmov %p3015_p5 }
  0x7b   : > { %vm704_vm0 = vcmask 64512   ;;  %p675_p10 = scmp.lt.s32.totalorder %s2415_s21, 1  ;;  %v2432_v0 = vmov 0.0   ;;  %vm2433_vm1 = vmmov 0   ;;  %v716_v1 = vld [vmem:[%s2674_s10] sm:$0xf] }
  0x7c   : > { %2396 = vsyncadd (%p3016_p7), [#allocation12], 4294966784  ;;  %1965 = vmatprep.subr.bf16.mxu0 %v2432_v0  ;;  %1971 = vmatprep.subr.bf16.mxu1 %v2432_v0  ;;  %705 = vst.msk [vmem:[#allocation4] sm:$0xff] %vm704_vm0, %v2432_v0  ;;  %v717_v2 = vld [vmem:[%s2674_s10 + $0x4] sm:$0xf]  ;;  %v725_v3 = vsel %vm704_vm0, %v716_v1, 0 }
  0x7d   : > { %706 = vst.msk [vmem:[#allocation4 + $0x8] sm:$0xff] %vm704_vm0, %v2432_v0  ;;  %707 = vst.msk [vmem:[#allocation4 + $0x10] sm:$0xff] %vm704_vm0, %v2432_v0  ;;  %1967 = vmatprep.mubr.msk.bf16.mxu0 %vm2433_vm1, %v2432_v0  ;;  %1973 = vmatprep.mubr.msk.bf16.mxu1 %vm2433_vm1, %v2432_v0  ;;  %s2711_s24 = scalar_select %p675_p10, %s2415_s21, 1  ;;  %v771_v4 = vsel %vm704_vm0, %v717_v2, 0  ;;  %v718_v5 = vld [vmem:[%s2674_s10 + $0x8] sm:$0xf] }
  0x7e   : > { %708 = vst.msk [vmem:[#allocation4 + $0x18] sm:$0xff] %vm704_vm0, %v2432_v0  ;;  %1966 = vmatpush3.bf16.xpose.msra.mxu0 %v725_v3  ;;  %1972 = vmatpush3.bf16.xpose.msra.mxu1 %v771_v4  ;;  %v719_v6 = vld [vmem:[%s2674_s10 + $0xc] sm:$0xf]  ;;  %v817_v9 = vsel %vm704_vm0, %v718_v5, 0  ;;  %vm695_vm2 = vcmask 7168   ;;  %v709_v14 = vld [vmem:[#allocation10] sm:$0xff] }
  0x7f   : > { %s1932_s26 = sshll.u32 %s2711_s24, 4  ;;  %1977 = vmatprep.subr.bf16.mxu0 %v2432_v0  ;;  %1983 = vmatprep.subr.bf16.mxu1 %v2432_v0  ;;  %v863_v10 = vsel %vm704_vm0, %v719_v6, 0  ;;  %v2434_v13 = vmov -1e+30   ;;  %700 = vst.msk [vmem:[#allocation3] sm:$0xff] %vm695_vm2, %v2432_v0  ;;  %701 = vst.msk [vmem:[#allocation3 + $0x8] sm:$0xff] %vm695_vm2, %v2432_v0 }
  0x80   : > { %s682_s12 = scalar_lea.vmem %s2954_s0, %s1932_s26  ;;  %696 = vst.msk [vmem:[#allocation2] sm:$0xff] %vm695_vm2, %v2434_v13  ;;  %697 = vst.msk [vmem:[#allocation2 + $0x8] sm:$0xff] %vm695_vm2, %v2434_v13  ;;  %vm710_vm3 = vcmp.eq.f32.partialorder %v709_v14, 0.0  ;;  %v2435_v40 = vmov 0   ;;  %v1030_v56 = vld [vmem:[%s2681_s29] sm:$0xf] }
  0x81   : > { %v712_v7 = vld [vmem:[%s682_s12] sm:$0xf]  ;;  %v713_v8 = vld [vmem:[%s682_s12 + $0x4] sm:$0xf]  ;;  %v714_v11 = vld [vmem:[%s682_s12 + $0x8] sm:$0xf]  ;;  %2161 = vset.pattern.permute.xlu0 %v2435_v40  ;;  %2162 = vset.pattern.permute.xlu1 %v2435_v40 }
  0x82   : > { %v715_v12 = vld [vmem:[%s682_s12 + $0xc] sm:$0xf]  ;;  %698 = vst.msk [vmem:[#allocation2 + $0x10] sm:$0xff] %vm695_vm2, %v2434_v13  ;;  %699 = vst.msk [vmem:[#allocation2 + $0x18] sm:$0xff] %vm695_vm2, %v2434_v13  ;;  %v711_v15 = vsel %vm710_vm3, -1e+20, %v2432_v0 }
  0x83   : > { %702 = vst.msk [vmem:[#allocation3 + $0x10] sm:$0xff] %vm695_vm2, %v2432_v0  ;;  %703 = vst.msk [vmem:[#allocation3 + $0x18] sm:$0xff] %vm695_vm2, %v2432_v0  ;;  %vm1037_vm4 = vcmask 1043456   ;;  %v1031_v59 = vld [vmem:[%s2681_s29 + $0x4] sm:$0xf]  ;;  %s1898_s14 = sshll.u32 %s2711_s24, 3 }
  0x84   : > { %v1039_v58 = vsel %vm1037_vm4, %v1030_v56, 0  ;;  %v1085_v60 = vsel %vm1037_vm4, %v1031_v59, 0  ;;  %v1273_v56 = vld [vmem:[#allocation11 + $0x4] sm:$0xf]  ;;  %s689_s30 = scalar_lea.vmem %s2957_s3, %s1898_s14  ;;  %vm1476_vm5 = vcmask 261120   ;;  %s3017_s18 = sld [smem:[#allocation31_spill]] }
  0x85   : > { %1968 = vmatmul.mubr.msk.bf16.vlgmr.msra.gmra.mxu0 %vm704_vm0, %v712_v7  ;;  %1974 = vmatmul.mubr.msk.bf16.vlgmr.msra.gmra.mxu1 %vm704_vm0, %v713_v8  ;;  %vm1613_vm6 = vcmask 523264   ;;  %s3018_s17 = sld [smem:[#allocation32_spill]]  ;;  %s1895_s4 = sshll.u32 %s2670_s5, 3 }
  0x86   : > { %1978 = vmatpush3.bf16.xpose.msra.mxu0 %v817_v9  ;;  %1984 = vmatpush3.bf16.xpose.msra.mxu1 %v863_v10  ;;  %v1032_v10 = vld [vmem:[%s2681_s29 + $0x8] sm:$0xf]  ;;  %s3020_s25 = sld [smem:[#allocation28_spill]]  ;;  %s1927_s26 = sshll.u32 %s2415_s21, 7 }
  0x87   : > { %1979 = vmatprep.mubr.msk.bf16.mxu0 %vm2433_vm1, %v2432_v0  ;;  %1985 = vmatprep.mubr.msk.bf16.mxu1 %vm2433_vm1, %v2432_v0  ;;  %v2764_v41 = vld [vmem:[#allocation2] sm:$0xff]  ;;  %v2767_v44 = vld [vmem:[#allocation2 + $0x8] sm:$0xff]  ;;  %v1131_v14 = vsel %vm1037_vm4, %v1032_v10, 0  ;;  %s3021_s24 = sld [smem:[#allocation29_spill]]  ;;  %s674_s27 = scalar_lea.vmem [#allocation14], %s1895_s4 }
  0x88   : > { %1989 = vmatprep.subr.bf16.mxu0 %v2432_v0  ;;  %1995 = vmatprep.subr.bf16.mxu1 %v2432_v0  ;;  %s1703_s11 = sshll.u32 %s674_s27, 4  ;;  %s3022_s16 = sld [smem:[#allocation33_spill]]  ;;  %s1704_s11 = int_to_ptr.vmem [resolvable:$true] %s1703_s11 }
  0x89   : > { %v2774_v48 = vld [vmem:[#allocation2 + $0x10] sm:$0xff]  ;;  %v2784_v52 = vld [vmem:[#allocation2 + $0x18] sm:$0xff]  ;;  %s2331_s1 = scalar_lea.vmem %s1704_s11, 128 }
  0x8a   : > { %p2332_p0 = scmp.ne.s32.totalorder %s1704_s11, %s2331_s1 }
  0x8c   : > { %p2333_p1 = pnand %p2332_p0, %p2619_p13 }
  0x8d   : > { %1980 = vmatmul.mubr.msk.bf16.vlgmr.msra.gmra.mxu0 %vm704_vm0, %v714_v11  ;;  %1986 = vmatmul.mubr.msk.bf16.vlgmr.msra.gmra.mxu1 %vm704_vm0, %v715_v12 }
  0x8e   : > { %1991 = vmatprep.mubr.msk.bf16.mxu0 %vm2433_vm1, %v2432_v0  ;;  %1997 = vmatprep.mubr.msk.bf16.mxu1 %vm2433_vm1, %v2432_v0  ;;  %p2334_p2 = pneg %p2333_p1 }
  0x8f   : > { %1990 = vmatpush3.bf16.msra.mxu0 %v1039_v58  ;;  %1996 = vmatpush3.bf16.msra.mxu1 %v1085_v60  ;;  %v1278_v58 = vsel %vm1037_vm4, %v1273_v56, 0 }
  0x90   : > { %2001 = vmatprep.subr.bf16.mxu0 %v2432_v0  ;;  %2007 = vmatprep.subr.bf16.mxu1 %v2432_v0 }
 0x145   : > { %v761_v16 = vpop.f32.mrf.mxu0  ;;  %v807_v17 = vpop.f32.mrf.mxu1 }
 0x146   : > { %v2754_v18 = vadd.f32 %v761_v16, %v711_v15  ;;  %v2756_v19 = vadd.f32 %v807_v17, %v711_v15 }
 0x147   : > { %v1969_v20 = vpop.f32.mrf.mxu0  ;;  %v1975_v21 = vpop.f32.mrf.mxu1 }
 0x148   : > { %v909_v22 = vsel %vm704_vm0, %v2754_v18, -inf  ;;  %v912_v25 = vsel %vm704_vm0, %v2756_v19, -inf }
 0x149   : > { %v764_v23 = vpop.f32.mrf.mxu0  ;;  %v810_v24 = vpop.f32.mrf.mxu1  ;;  %910 = vmax.xlane.f32.xlu0 %v909_v22 }
 0x14b   : > { %v1970_v26 = vpop.f32.mrf.mxu0  ;;  %v1976_v27 = vpop.f32.mrf.mxu1 }
 0x14d   : > { %v853_v28 = vpop.f32.mrf.mxu0  ;;  %v899_v29 = vpop.f32.mrf.mxu1  ;;  %913 = vmax.xlane.f32.xlu0 %v912_v25 }
 0x14e   : > { %v854_v30 = vadd.f32 %v853_v28, %v711_v15  ;;  %v900_v31 = vadd.f32 %v899_v29, %v711_v15  ;;  %v1033_v15 = vld [vmem:[%s2681_s29 + $0xc] sm:$0xf] }
 0x14f   : > { %v1981_v32 = vpop.f32.mrf.mxu0  ;;  %v1987_v33 = vpop.f32.mrf.mxu1 }
 0x150   : > { %v915_v34 = vsel %vm704_vm0, %v854_v30, -inf  ;;  %v918_v37 = vsel %vm704_vm0, %v900_v31, -inf }
 0x151   : > { %v856_v35 = vpop.f32.mrf.mxu0  ;;  %v902_v36 = vpop.f32.mrf.mxu1  ;;  %916 = vmax.xlane.f32.xlu1 %v915_v34  ;;  %v969_v34 = vld [vmem:[#allocation3] sm:$0xff] }
 0x153   : > { %v1982_v38 = vpop.f32.mrf.mxu0  ;;  %v1988_v39 = vpop.f32.mrf.mxu1 }
 0x155   : > { %919 = vmax.xlane.f32.xlu1 %v918_v37  ;;  %v970_v37 = vld [vmem:[#allocation3 + $0x8] sm:$0xff] }
 0x1d2   : > { %v911_v42 = vpop.xlane.xlu0 %910 }
 0x1d3   : > { %v921_v43 = vmax.f32 %v2764_v41, %v911_v42 }
 0x1d5   : > { %v925_v45 = vsub.f32 %v2764_v41, %v921_v43  ;;  %1227 = vst.msk [vmem:[#allocation2] sm:$0xff] %vm695_vm2, %v921_v43  ;;  %939 = vperm.xlu0 %2161, %v921_v43   ;;  %v971_v41 = vld [vmem:[#allocation3 + $0x10] sm:$0xff] }
 0x1d6   : > { %v914_v46 = vpop.xlane.xlu0 %913 }
 0x1d7   : > { %v2772_v47 = vmax.f32 %v2767_v44, %v914_v46  ;;  %v929_v20 = vmul.f32 1.442695, %v925_v45  ;;  %v972_v45 = vld [vmem:[#allocation3 + $0x18] sm:$0xff] }
 0x1d9   : > { %v926_v49 = vsub.f32 %v2767_v44, %v2772_v47  ;;  %1228 = vst.msk [vmem:[#allocation2 + $0x8] sm:$0xff] %vm695_vm2, %v2772_v47  ;;  %944 = vperm.xlu1 %2162, %v2772_v47  }
 0x1da   : > { %v917_v50 = vpop.xlane.xlu1 %916 }
 0x1db   : > { %v2782_v51 = vmax.f32 %v2774_v48, %v917_v50  ;;  %v931_v25 = vmul.f32 1.442695, %v926_v49 }
 0x1dd   : > { %v927_v53 = vsub.f32 %v2774_v48, %v2782_v51  ;;  %1229 = vst.msk [vmem:[#allocation2 + $0x10] sm:$0xff] %vm695_vm2, %v2782_v51  ;;  %949 = vperm.xlu1 %2162, %v2782_v51  }
 0x1de   : > { %v920_v54 = vpop.xlane.xlu1 %919 }
 0x1df   : > { %v2792_v55 = vmax.f32 %v2784_v52, %v920_v54  ;;  %v933_v28 = vmul.f32 1.442695, %v927_v53  ;;  %v1271_v53 = vld [vmem:[#allocation11] sm:$0xf] }
 0x1e0   : > { %v1324_v54 = vsel %vm1037_vm4, %v1271_v53, 0 }
 0x1e1   : > { %v928_v57 = vsub.f32 %v2784_v52, %v2792_v55  ;;  %1230 = vst.msk [vmem:[#allocation2 + $0x18] sm:$0xff] %vm695_vm2, %v2792_v55  ;;  %954 = vperm.xlu1 %2162, %v2792_v55  }
 0x1e3   : > { %v935_v29 = vmul.f32 1.442695, %v928_v57 }
 0x250   : > { %v940_v61 = vpop.permute.xlu0 %939 }
 0x251   : > { %v957_v62 = vsub.f32 %v2754_v18, %v940_v61 }
 0x253   : > { %v961_v63 = vmul.f32 1.442695, %v957_v62 }
 0x254   : > { %v945_v1 = vpop.permute.xlu1 %944 }
 0x255   : > { %2169 = vpow2.f32 %v961_v63  ;;  %v958_v2 = vsub.f32 %v2756_v19, %v945_v1  ;;  %v1177_v19 = vsel %vm1037_vm4, %v1033_v15, 0  ;;  %v998_v63 = vld [vmem:[#allocation4] sm:$0xff] }
 0x257   : > { %v963_v3 = vmul.f32 1.442695, %v958_v2 }
 0x258   : > { %v950_v4 = vpop.permute.xlu1 %949 }
 0x259   : > { %2171 = vpow2.f32 %v963_v3  ;;  %v959_v5 = vsub.f32 %v854_v30, %v950_v4  ;;  %v999_v3 = vld [vmem:[#allocation4 + $0x8] sm:$0xff] }
 0x25b   : > { %v965_v6 = vmul.f32 1.442695, %v959_v5 }
 0x25c   : > { %v955_v7 = vpop.permute.xlu1 %954 }
 0x25d   : > { %2173 = vpow2.f32 %v965_v6  ;;  %v960_v8 = vsub.f32 %v900_v31, %v955_v7 }
 0x25f   : > { %v967_v9 = vmul.f32 1.442695, %v960_v8 }
 0x261   : > { %2175 = vpow2.f32 %v967_v9  ;;  %v1000_v9 = vld [vmem:[#allocation4 + $0x10] sm:$0xff] }
 0x262   : > { %v2170_v11 = vpop.eup %2169  ;;  %2177 = vpow2.f32 %v929_v20 }
 0x263   : > { %v977_v12 = vsel %vm704_vm0, %v2170_v11, 0.0  ;;  %v1026_v13 = vpack.c.bf16 %v2170_v11, %v2170_v11  ;;  %2179 = vpow2.f32 %v931_v25 }
 0x264   : > { %978 = vadd.xlane.f32.xlu0 %v977_v12  ;;  %2181 = vpow2.f32 %v933_v28 }
 0x265   : > { %1992 = vmatmul.mubr.msk.bf16.vlgmr.msra.gmra.mxu0 %vm704_vm0, %v1026_v13  ;;  %2183 = vpow2.f32 %v935_v29 }
 0x266   : > { %v2172_v16 = vpop.eup %2171  ;;  %2002 = vmatpush3.bf16.msra.mxu0 %v1131_v14  ;;  %2003 = vmatprep.mubr.msk.bf16.mxu0 %vm2433_vm1, %v2432_v0 }
 0x267   : > { %v980_v17 = vsel %vm704_vm0, %v2172_v16, 0.0  ;;  %v1027_v18 = vpack.c.bf16 %v2172_v16, %v2172_v16  ;;  %2013 = vmatprep.subr.bf16.mxu0 %v2432_v0 }
 0x268   : > { %981 = vadd.xlane.f32.xlu1 %v980_v17  ;;  %v1001_v17 = vld [vmem:[#allocation4 + $0x18] sm:$0xff] }
 0x269   : > { %1998 = vmatmul.mubr.msk.bf16.vlgmr.msra.gmra.mxu1 %vm704_vm0, %v1027_v18 }
 0x26a   : > { %v2174_v21 = vpop.eup %2173  ;;  %2008 = vmatpush3.bf16.msra.mxu1 %v1177_v19  ;;  %2009 = vmatprep.mubr.msk.bf16.mxu1 %vm2433_vm1, %v2432_v0 }
 0x26b   : > { %v983_v22 = vsel %vm704_vm0, %v2174_v21, 0.0  ;;  %v1028_v23 = vpack.c.bf16 %v2174_v21, %v2174_v21  ;;  %2019 = vmatprep.subr.bf16.mxu1 %v2432_v0 }
 0x26c   : > { %984 = vadd.xlane.f32.xlu1 %v983_v22 }
 0x26d   : > { %2004 = vmatmul.mubr.msk.bf16.vlgmr.msra.gmra.mxu0 %vm704_vm0, %v1028_v23 }
 0x26e   : > { %v2176_v24 = vpop.eup %2175  ;;  %2015 = vmatprep.mubr.msk.bf16.mxu0 %vm2433_vm1, %v2432_v0  ;;  %2014 = vmatpush3.bf16.msra.mxu0 %v1278_v58 }
 0x26f   : > { %v986_v26 = vsel %vm704_vm0, %v2176_v24, 0.0  ;;  %v1029_v27 = vpack.c.bf16 %v2176_v24, %v2176_v24  ;;  %v2178_v30 = vpop.eup %2177  ;;  %2025 = vmatprep.subr.bf16.mxu0 %v2432_v0 }
 0x270   : > { %987 = vadd.xlane.f32.xlu1 %v986_v26  ;;  %v2180_v31 = vpop.eup %2179  ;;  %v973_v35 = vmul.f32 %v2178_v30, %v969_v34 }
 0x271   : > { %2010 = vmatmul.mubr.msk.bf16.vlgmr.msra.gmra.mxu1 %vm704_vm0, %v1029_v27  ;;  %v2182_v32 = vpop.eup %2181  ;;  %v974_v39 = vmul.f32 %v2180_v31, %v970_v37 }
 0x272   : > { %2021 = vmatprep.mubr.msk.bf16.mxu1 %vm2433_vm1, %v2432_v0  ;;  %v2184_v33 = vpop.eup %2183  ;;  %v975_v43 = vmul.f32 %v2182_v32, %v971_v41  ;;  %2020 = vmatpush3.bf16.msra.mxu1 %v1324_v54 }
 0x273   : > { %v976_v48 = vmul.f32 %v2184_v33, %v972_v45  ;;  %2031 = vmatprep.subr.bf16.mxu1 %v2432_v0 }
 0x27a   : > { %1004 = vperm.xlu0 %2161, %v2178_v30  }
 0x281   : > { %1009 = vperm.xlu1 %2162, %v2180_v31  }
 0x285   : > { %1014 = vperm.xlu1 %2162, %v2182_v32  }
 0x289   : > { %1019 = vperm.xlu1 %2162, %v2184_v33   ;;  %v1416_v33 = vld [vmem:[#allocation11 + $0xc] sm:$0xf] }
 0x2ed   : > { %v979_v36 = vpop.xlane.xlu0 %978 }
 0x2ee   : > { %v989_v38 = vadd.f32 %v979_v36, %v973_v35  ;;  %v1421_v36 = vsel %vm1037_vm4, %v1416_v33, 0  ;;  %v1914_v33 = vld [vmem:[%s3017_s18] ss:$0 sm:$0xff]  ;;  %s1701_s18 = scalar_lea.hbm %s3022_s16, %s1927_s26 }
 0x2f0   : > { %994 = vst.msk [vmem:[#allocation3] sm:$0xff] %vm695_vm2, %v989_v38 }
 0x2f1   : > { %v982_v40 = vpop.xlane.xlu1 %981 }
 0x2f2   : > { %v990_v42 = vadd.f32 %v982_v40, %v974_v39  ;;  %v1367_v39 = vld [vmem:[#allocation11 + $0x8] sm:$0xf] }
 0x2f4   : > { %995 = vst.msk [vmem:[#allocation3 + $0x8] sm:$0xff] %vm695_vm2, %v990_v42  ;;  %v1372_v42 = vsel %vm1037_vm4, %v1367_v39, 0 }
 0x2f5   : > { %v985_v44 = vpop.xlane.xlu1 %984  ;;  %v1005_v1 = vpop.permute.xlu0 %1004 }
 0x2f6   : > { %v991_v46 = vadd.f32 %v985_v44, %v975_v43  ;;  %v1022_v2 = vmul.f32 %v1005_v1, %v998_v63  ;;  %v1911_v63 = vld [vmem:[%s2960_s6] ss:$0 sm:$0xff] }
 0x2f7   : > { %v1238_v47 = vld [vmem:[#allocation3] sm:$0xff] }
 0x2f8   : > { %996 = vst.msk [vmem:[#allocation3 + $0x10] sm:$0xff] %vm695_vm2, %v991_v46  ;;  %2185 = vrcp.f32 %v1238_v47 }
 0x2f9   : > { %v988_v49 = vpop.xlane.xlu1 %987 }
 0x2fa   : > { %v992_v50 = vadd.f32 %v988_v49, %v976_v48 }
 0x2fb   : > { %v1239_v51 = vld [vmem:[#allocation3 + $0x8] sm:$0xff] }
 0x2fc   : > { %997 = vst.msk [vmem:[#allocation3 + $0x18] sm:$0xff] %vm695_vm2, %v992_v50  ;;  %2187 = vrcp.f32 %v1239_v51 }
 0x2fd   : > { %v1010_v62 = vpop.permute.xlu1 %1009 }
 0x2fe   : > { %v1023_v8 = vmul.f32 %v1010_v62, %v999_v3 }
 0x2ff   : > { %v1240_v52 = vld [vmem:[#allocation3 + $0x10] sm:$0xff] }
 0x300   : > { %2189 = vrcp.f32 %v1240_v52 }
 0x301   : > { %v1015_v5 = vpop.permute.xlu1 %1014 }
 0x302   : > { %v1024_v15 = vmul.f32 %v1015_v5, %v1000_v9 }
 0x303   : > { %v1241_v55 = vld [vmem:[#allocation3 + $0x18] sm:$0xff] }
 0x304   : > { %2191 = vrcp.f32 %v1241_v55 }
 0x305   : > { %v2186_v57 = vpop.eup %2185  ;;  %v1020_v16 = vpop.permute.xlu1 %1019 }
 0x306   : > { %1248 = vperm.xlu0 %2161, %v2186_v57   ;;  %v1025_v23 = vmul.f32 %v1020_v16, %v1001_v17  ;;  %v2163_v17 = vld [vmem:[#allocation13 + $0x8] sm:$0xff]  }
 0x309   : > { %v2188_v59 = vpop.eup %2187 }
 0x30a   : > { %1253 = vperm.xlu1 %2162, %v2188_v59  }
 0x30d   : > { %v2190_v60 = vpop.eup %2189 }
 0x30e   : > { %1258 = vperm.xlu1 %2162, %v2190_v60  }
 0x311   : > { %v2192_v61 = vpop.eup %2191 }
 0x312   : > { %1263 = vperm.xlu0 %2161, %v2192_v61  }
 0x325   : > { %v1075_v4 = vpop.f32.mrf.mxu0 }
 0x326   : > { %v1219_v6 = vadd.f32 %v1075_v4, %v1022_v2 }
 0x327   : > { %v1993_v7 = vpop.f32.mrf.mxu0 }
 0x328   : > { %1223 = vst.msk [vmem:[#allocation4] sm:$0xff] %vm704_vm0, %v1219_v6  ;;  %v1472_v6 = vld [vmem:[%s689_s30] sm:$0xff]  ;;  %s1689_s30 = scalar_lea.sflag [#allocation7], %s2670_s5 }
 0x329   : > { %v1078_v10 = vpop.f32.mrf.mxu0  ;;  %v1121_v11 = vpop.f32.mrf.mxu1 }
 0x32a   : > { %v1220_v12 = vadd.f32 %v1121_v11, %v1023_v8 }
 0x32b   : > { %v1994_v13 = vpop.f32.mrf.mxu0  ;;  %v1999_v14 = vpop.f32.mrf.mxu1 }
 0x32c   : > { %1224 = vst.msk [vmem:[#allocation4 + $0x8] sm:$0xff] %vm704_vm0, %v1220_v12 }
 0x32d   : > { %v1124_v18 = vpop.f32.mrf.mxu1  ;;  %v1167_v19 = vpop.f32.mrf.mxu0 }
 0x32e   : > { %v1221_v20 = vadd.f32 %v1167_v19, %v1024_v15  ;;  %v2164_v18 = vld [vmem:[#allocation13] sm:$0xff]  }
 0x32f   : > { %v2000_v21 = vpop.f32.mrf.mxu1  ;;  %v2005_v22 = vpop.f32.mrf.mxu0  ;;  %v1234_v31 = vld [vmem:[#allocation4] sm:$0xff]  ;;  %v2165_v19 = vld [vmem:[%s2967_s13 + $0x18] sm:$0xff]  }
 0x330   : > { %1225 = vst.msk [vmem:[#allocation4 + $0x10] sm:$0xff] %vm704_vm0, %v1221_v20  ;;  %v2166_v20 = vld [vmem:[%s2967_s13 + $0x10] sm:$0xff]  }
 0x331   : > { %v1170_v24 = vpop.f32.mrf.mxu0  ;;  %v1213_v25 = vpop.f32.mrf.mxu1 }
 0x332   : > { %v1222_v26 = vadd.f32 %v1213_v25, %v1025_v23  ;;  %v1912_v25 = vld [vmem:[%s2961_s7] ss:$0 sm:$0xff] }
 0x333   : > { %v2006_v27 = vpop.f32.mrf.mxu0  ;;  %v2011_v28 = vpop.f32.mrf.mxu1  ;;  %v1235_v37 = vld [vmem:[#allocation4 + $0x8] sm:$0xff] }
 0x334   : > { %1226 = vst.msk [vmem:[#allocation4 + $0x18] sm:$0xff] %vm704_vm0, %v1222_v26  ;;  %v1913_v27 = vld [vmem:[%s2962_s8] ss:$0 sm:$0xff] }
 0x335   : > { %v1216_v29 = vpop.f32.mrf.mxu1 }
 0x337   : > { %v2012_v30 = vpop.f32.mrf.mxu1  ;;  %v1236_v44 = vld [vmem:[#allocation4 + $0x10] sm:$0xff] }
 0x33b   : > { %v1237_v46 = vld [vmem:[#allocation4 + $0x18] sm:$0xff] }
 0x381   : > { %v1249_v32 = vpop.permute.xlu0 %1248 }
 0x382   : > { %v1266_v34 = vmul.f32 %v1249_v32, %v1234_v31  ;;  %v2167_v31 = vld [vmem:[%s2967_s13 + $0x8] sm:$0xff]   ;;  %v2168_v32 = vld [vmem:[%s2967_s13] sm:$0xff]  }
 0x384   : > { %v1270_v35 = vpack.c.bf16 %v1266_v34, %v1266_v34 }
 0x385   : > { %v1254_v38 = vpop.permute.xlu1 %1253 }
 0x386   : > { %v1267_v40 = vmul.f32 %v1254_v38, %v1235_v37  ;;  %2022 = vmatmul.mubr.msk.bf16.vlgmr.msra.gmra.mxu1 %vm704_vm0, %v1270_v35 }
 0x387   : > { %2032 = vmatpush3.bf16.msra.mxu1 %v1421_v36  ;;  %2033 = vmatprep.mubr.msk.bf16.mxu1 %vm2433_vm1, %v2432_v0 }
 0x388   : > { %v1272_v41 = vpack.c.bf16 %v1267_v40, %v1267_v40  ;;  %2045 = vmatprep.subr.bf16.mxu1 %v2432_v0 }
 0x389   : > { %v1259_v43 = vpop.permute.xlu1 %1258 }
 0x38a   : > { %2016 = vmatmul.mubr.msk.bf16.vlgmr.msra.gmra.mxu0 %vm704_vm0, %v1272_v41  ;;  %v1268_v45 = vmul.f32 %v1259_v43, %v1236_v44 }
 0x38b   : > { %2026 = vmatpush3.bf16.msra.mxu0 %v1372_v42  ;;  %2027 = vmatprep.mubr.msk.bf16.mxu0 %vm2433_vm1, %v2432_v0 }
 0x38c   : > { %2037 = vmatprep.subr.bf16.mxu0 %v2432_v0  ;;  %v1366_v49 = vpack.c.bf16 %v1268_v45, %v1268_v45 }
 0x38d   : > { %v1264_v47 = vpop.permute.xlu0 %1263 }
 0x38e   : > { %v1269_v48 = vmul.f32 %v1264_v47, %v1237_v46 }
 0x390   : > { %v1415_v50 = vpack.c.bf16 %v1269_v48, %v1269_v48 }
 0x392   : > { %2028 = vmatmul.mubr.msk.bf16.vlgmr.msra.gmra.mxu0 %vm704_vm0, %v1366_v49  ;;  %2034 = vmatmul.mubr.msk.bf16.vlgmr.msra.gmra.mxu1 %vm704_vm0, %v1415_v50 }
 0x393   : > { %2041 = vmatprep.mubr.msk.bf16.mxu0 %vm2433_vm1, %v2432_v0  ;;  %2053 = vmatprep.mubr.msk.bf16.mxu1 %vm2433_vm1, %v2432_v0 }
 0x394   : > { %2038 = vmatpush3.bf16.msra.mxu0 %v2163_v17  ;;  %2046 = vmatpush3.bf16.msra.mxu1 %v2165_v19 }
 0x395   : > { %2039 = vmatprep.subr.bf16.mxu0 %v2432_v0  ;;  %2047 = vmatprep.subr.bf16.mxu1 %v2432_v0 }
 0x398   : > { %2040 = vmatpush3.bf16.msra.mxu0 %v2164_v18  ;;  %2048 = vmatpush3.bf16.msra.mxu1 %v2166_v20 }
 0x399   : > { %2049 = vmatprep.subr.bf16.mxu1 %v2432_v0 }
 0x39c   : > { %2050 = vmatpush3.bf16.msra.mxu1 %v2167_v31 }
 0x39d   : > { %2051 = vmatprep.subr.bf16.mxu1 %v2432_v0  ;;  %v1918_v0 = vld [vmem:[%s3018_s17] ss:$0 sm:$0xff]  ;;  %s2436_s17 = smov [#allocation14]  }
 0x39e   : > { %s2335_s22 = sshll.u32 %s2436_s17, 4  ;;  %s2336_s22 = int_to_ptr.vmem [resolvable:$false] %s2335_s22 }
 0x39f   : > { %s2337_s21 = scalar_lea.vmem %s2336_s22, 256  ;;  %p2338_p6 = scmp.lt.s32.totalorder %s1704_s11, %s2336_s22 }
 0x3a0   : > { %2052 = vmatpush3.bf16.msra.mxu1 %v2168_v32  ;;  %p2339_p8 = scmp.lt.s32.totalorder %s2337_s21, %s2331_s1 }
 0x3a2   : > { %p2340_p9 = por %p2339_p8, %p2338_p6 }
 0x3a4   : > { %p2341_p3 = pnand %p2340_p9, %p2334_p2 }
 0x446   : > { %v1360_v51 = vpop.f32.mrf.mxu1 }
 0x448   : > { %v2023_v52 = vpop.f32.mrf.mxu1 }
 0x44a   : > { %v1314_v53 = vpop.f32.mrf.mxu0  ;;  %v1363_v54 = vpop.f32.mrf.mxu1 }
 0x44b   : > { %v1361_v59 = vadd.f32 %v1360_v51, %v1314_v53 }
 0x44c   : > { %v2017_v55 = vpop.f32.mrf.mxu0  ;;  %v2024_v56 = vpop.f32.mrf.mxu1 }
 0x44e   : > { %v1317_v57 = vpop.f32.mrf.mxu0 }
 0x44f   : > { %v1924_v57 = vld [vmem:[%s3020_s25] ss:$0 sm:$0xff] }
 0x450   : > { %v2018_v58 = vpop.f32.mrf.mxu0 }
 0x452   : > { %v1408_v60 = vpop.f32.mrf.mxu0  ;;  %v1457_v61 = vpop.f32.mrf.mxu1 }
 0x453   : > { %v1414_v62 = vadd.f32 %v1408_v60, %v1361_v59  ;;  %v1925_v59 = vld [vmem:[%s3021_s24] ss:$0 sm:$0xff] }
 0x454   : > { %v2029_v1 = vpop.f32.mrf.mxu0  ;;  %v2035_v2 = vpop.f32.mrf.mxu1 }
 0x455   : > { %v1463_v3 = vadd.f32 %v1457_v61, %v1414_v62 }
 0x456   : > { %v1411_v4 = vpop.f32.mrf.mxu0  ;;  %v1460_v5 = vpop.f32.mrf.mxu1 }
 0x457   : > { %v1471_v7 = vadd.f32 %v1911_v63, %v1463_v3 }
 0x458   : > { %v2030_v8 = vpop.f32.mrf.mxu0  ;;  %v2036_v9 = vpop.f32.mrf.mxu1 }
 0x459   : > { %v1473_v10 = vadd.f32 %v1472_v6, %v1471_v7 }
 0x45b   : > { %v1477_v11 = vsel %vm1476_vm5, %v1473_v10, 0.0 }
 0x45c   : > { %1478 = vadd.xlane.f32.xlu1 %v1477_v11 }
 0x4e5   : > { %v1479_v12 = vpop.xlane.xlu1 %1478 }
 0x4e6   : > { %v1481_v13 = vmul.f32 0.03125, %v1479_v12 }
 0x4e8   : > { %v1482_v14 = vsub.f32 %v1473_v10, %v1481_v13 }
 0x4ea   : > { %v1483_v15 = vmul.f32 %v1482_v14, %v1482_v14 }
 0x4ec   : > { %v1484_v16 = vsel %vm1476_vm5, %v1483_v15, 0.0 }
 0x4ed   : > { %1485 = vadd.xlane.f32.xlu0 %v1484_v16 }
 0x576   : > { %v1486_v21 = vpop.xlane.xlu0 %1485 }
 0x577   : > { %v1487_v22 = vmul.f32 0.03125, %v1486_v21 }
 0x579   : > { %v1488_v23 = vadd.f32 1e-05, %v1487_v22 }
 0x57b   : > { %2193 = vrsqrt.f32 %v1488_v23 }
 0x588   : > { %v2194_v24 = vpop.eup %2193 }
 0x589   : > { %v1490_v26 = vmul.f32 %v2194_v24, %v1482_v14 }
 0x58b   : > { %v1497_v28 = vmul.f32 %v1912_v25, %v1490_v26 }
 0x58d   : > { %v1504_v29 = vadd.f32 %v1913_v27, %v1497_v28 }
 0x58f   : > { %v1505_v30 = vpack.c.bf16 %v1504_v29, %v1504_v29 }
 0x591   : > { %2042 = vmatmul.mubr.msk.bf16.vlgmr.msra.gmra.mxu0 %vm1476_vm5, %v1505_v30 }
 0x651   : > { %v1566_v34 = vpop.f32.mrf.mxu0 }
 0x652   : > { %v1567_v35 = vadd.f32 %v1914_v33, %v1566_v34 }
 0x653   : > { %v2043_v36 = vpop.f32.mrf.mxu0 }
 0x654   : > { %v1572_v37 = vmax.f32 %v1567_v35, 0.0 }
 0x655   : > { %v1569_v38 = vpop.f32.mrf.mxu0 }
 0x656   : > { %v1573_v39 = vpack.c.bf16 %v1572_v37, %v1572_v37 }
 0x657   : > { %v2044_v40 = vpop.f32.mrf.mxu0 }
 0x658   : > { %2054 = vmatmul.mubr.msk.bf16.vlgmr.msra.gmra.mxu1 %vm1613_vm6, %v1573_v39 }
 0x718   : > { %v1651_v41 = vpop.f32.mrf.mxu1 }
 0x719   : > { %v1652_v42 = vadd.f32 %v1918_v0, %v1651_v41 }
 0x71a   : > { %v2055_v43 = vpop.f32.mrf.mxu1 }
 0x71b   : > { %v1657_v44 = vadd.f32 %v1652_v42, %v1504_v29 }
 0x71c   : > { %v1654_v45 = vpop.f32.mrf.mxu1 }
 0x71d   : > { %v1660_v46 = vsel %vm1476_vm5, %v1657_v44, 0.0 }
 0x71e   : > { %1661 = vadd.xlane.f32.xlu0 %v1660_v46  ;;  %v2056_v47 = vpop.f32.mrf.mxu1 }
 0x7a7   : > { %v1662_v48 = vpop.xlane.xlu0 %1661 }
 0x7a8   : > { %v1663_v49 = vmul.f32 0.03125, %v1662_v48 }
 0x7aa   : > { %v1664_v50 = vsub.f32 %v1657_v44, %v1663_v49 }
 0x7ac   : > { %v1665_v51 = vmul.f32 %v1664_v50, %v1664_v50 }
 0x7ae   : > { %v1666_v52 = vsel %vm1476_vm5, %v1665_v51, 0.0 }
 0x7af   : > { %1667 = vadd.xlane.f32.xlu1 %v1666_v52 }
 0x838   : > { %v1668_v53 = vpop.xlane.xlu1 %1667 }
 0x839   : > { %v1669_v54 = vmul.f32 0.03125, %v1668_v53 }
 0x83b   : > { %v1670_v55 = vadd.f32 1e-05, %v1669_v54 }
 0x83d   : > { %2195 = vrsqrt.f32 %v1670_v55 }
 0x84a   : > { %v2196_v56 = vpop.eup %2195 }
 0x84b   : > { %v1672_v58 = vmul.f32 %v2196_v56, %v1664_v50 }
 0x84d   : > { %v1679_v60 = vmul.f32 %v1924_v57, %v1672_v58 }
 0x84f   : > { %v1686_v61 = vadd.f32 %v1925_v59, %v1679_v60 }
 0x851   : > { %1687 = vst.msk [vmem:[%s674_s27] sm:$0xff] %vm1476_vm5, %v1686_v61 }
 0x852   : > { %2344 = shalt.err (!%p2341_p3)
}
 0x853   : > { %s2345_s4 = scalar_lea.hbm %s1701_s18, 128  ;;  %s2349_s25 = scalar_lea.hbm %s3022_s16, 256 }
 0x854   : > { %p2346_p4 = scmp.ne.s32.totalorder %s1701_s18, %s2345_s4  ;;  %p2350_p5 = scmp.lt.s32.totalorder %s1701_s18, %s3022_s16 }
 0x855   : > { %p2351_p7 = scmp.lt.s32.totalorder %s2349_s25, %s2345_s4 }
 0x856   : > { %p2347_p11 = pnand %p2346_p4, %p2619_p13 }
 0x857   : > { %p2352_p10 = por %p2351_p7, %p2350_p5 }
 0x858   : > { %p2348_p12 = pneg %p2347_p11 }
 0x85a   : > { %p2353_p0 = pnand %p2352_p10, %p2348_p12 }
 0x85c   : > { %2356 = shalt.err (!%p2353_p0)
}
 0x85d   : > { %2073 = dma.vmem_to_hbm [thread:$0]  (%p2619_p13), %s1704_s11, 128, %s1701_s18, %s1689_s30  }
 0x85e PF: > { %s3023_s24 = sld [smem:[#allocation20_spill]]  ;;  %p3026_p2 = scmp.ge.s32.totalorder %s2423_s23, 2 }
 0x85f   : > { %s3024_s26 = sld [smem:[#allocation22_spill]] }
 0x864   : > { %s1715_s27 = sand.u32 1, %s3023_s24  }
 0x865   : > { %p3025_p1 = scmp.ne.s32.totalorder %s3024_s26, 0  ;;  %s1716_s12 = scalar_lea.sflag [#allocation7], %s1715_s27 }
 0x867   : > { %p2093_p6 = pnand %p3026_p2, %p3025_p1 }
 0x869   : > { %p2094_p8 = pneg %p2093_p6 }
 0x86b   : > { %2398 = dma.done.wait (%p2094_p8), %s1716_s12, 128  }
 0x86c   : > { %2400 = vsyncadd (%p2094_p8), %s1716_s12, 4294967168  ;;  %s35_s23 = sadd.s32 1, %s2423_s23   ;;  %s3027_s21 = sld [smem:[#allocation21_spill]] }
 0x86d   : > { %p32_p9 = scmp.ge.s32.totalorder %s35_s23, 4   ;;  %s3028_s22 = sld [smem:[#allocation24_spill]] }
 0x86e   : > { %s3029_s18 = smov %s2407_s19  ;;  %s3030_s19 = smov %s2411_s20 }
 0x86f   : > { %s3031_s20 = smov %s2631_s15  ;;  %34 = sbr.rel (!%p32_p9) target bundleno = 19 (0x13), region = 165 }
 0x874   :  { %1721 = vsyncpa [#allocation6], 1 }
 0x875   :  { %1723 = vsyncpa [#allocation6 + $0x1], 1 }
 0x876   :  { %1724 = vsyncpa [#allocation9], 1 }
 0x877   :  { %1726 = vsyncpa [#allocation9 + $0x1], 1 }
 0x878   :  { %1727 = vsyncpa [#allocation12], 1 }
 0x879   :  { %1728 = vsyncpa [#allocation7], 1 }
 0x87a   :  { %1730 = vsyncpa [#allocation7 + $0x1], 1 }

</bundles_post_ra>
